<compile_context>
chip_gen: v7x
topology: tpu7x:2x2x1
jax: 0.10.0
libtpu: 0.0.40
codegen_flags: <defaults>
</compile_context>

<pallas_src>
import jax
import jax.numpy as jnp
from jax.experimental import pallas as pl
from jax.experimental.pallas import tpu as pltpu

EPS = 1e-5      # PyTorch BatchNorm2d default
KSIZE = 5       # conv kernel size (all layers)
STRIDE = 2      # conv stride (all layers)
N_PAD = 128     # lane-dense padding of the head output


# ---------------------------------------------------------------------------
# Fused kernel.
#
# Activation layout inside the kernel: [H, W*C]  (rows on sublanes, the
# (width, channel) pair flattened onto lanes).  Per conv layer:
#     act_out = relu( sum_i (R_i @ act) @ Wlow_i + shift )
# where R_i is the one-hot stride-2 row selection for kernel row i and Wlow_i
# is the width-lowered banded weight matrix with the BN scale pre-folded.
# ---------------------------------------------------------------------------
def _dqnn_fused_kernel(x_ref,
                       r1_ref, w1_ref, s1_ref,
                       r2_ref, w2_ref, s2_ref,
                       r3_ref, w3_ref, s3_ref,
                       wh_ref, bh_ref, o_ref):
    act = x_ref[0]                                    # [H, W*C_in]
    for r_ref, w_ref, s_ref in ((r1_ref, w1_ref, s1_ref),
                                (r2_ref, w2_ref, s2_ref),
                                (r3_ref, w3_ref, s3_ref)):
        acc = s_ref[...]                              # [1, OW*C_out] (broadcasts over rows)
        for i in range(r_ref.shape[0]):               # kernel rows, static (5)
            rows = jnp.dot(r_ref[i], act,             # stride-2 row pick -> [OH, W_in*C_in]
                           preferred_element_type=jnp.float32)
            acc = acc + jnp.dot(rows, w_ref[i],       # banded conv matmul -> [OH, OW*C_out]
                                preferred_element_type=jnp.float32)
        act = jnp.maximum(acc, 0.0)                   # folded BN shift + ReLU

    # Linear head (weights pre-permuted to this layout, padded to 128 lanes).
    out = bh_ref[...]                                 # [1, 128]
    for oh in range(wh_ref.shape[0]):                 # static (1 for 32x32 input)
        out = out + jnp.dot(act[oh:oh + 1, :], wh_ref[oh],
                            preferred_element_type=jnp.float32)
    o_ref[...] = jnp.broadcast_to(out, o_ref.shape).astype(o_ref.dtype)


def _const_spec(a):
    zeros = (0,) * a.ndim
    return pl.BlockSpec(a.shape, lambda b, _z=zeros: _z)


def _fused_forward_call(x2, mats):
    B, H, WC = x2.shape
    in_specs = [pl.BlockSpec((1, H, WC), lambda b: (b, 0, 0))]
    in_specs += [_const_spec(m) for m in mats]
    return pl.pallas_call(
        _dqnn_fused_kernel,
        grid=(B,),
        in_specs=in_specs,
        out_specs=pl.BlockSpec((1, 8, N_PAD), lambda b: (b, 0, 0)),
        out_shape=jax.ShapeDtypeStruct((B, 8, N_PAD), jnp.float32),
        compiler_params=pltpu.CompilerParams(dimension_semantics=("parallel",)),
    )(x2, *mats)


# ---------------------------------------------------------------------------
# One-time parameter preparation (all transposes / BN folding hoisted here).
# ---------------------------------------------------------------------------
def _lower_conv_bn(w_oihw, scale, shift, h_in, w_in):
    """Lower a 5x5/stride-2 'valid' conv + folded BN into kernel operands.

    Returns (r, wlow, s, oh, ow) with
      r    [KH, OH, H_in]            one-hot stride-2 row selections
      wlow [KH, W_in*C_in, OW*C_out] width-lowered banded weights (scale folded)
      s    [1, OW*C_out]             shift tiled across output columns
    """
    c_out, c_in, kh, kw = w_oihw.shape
    oh = (h_in - kh) // STRIDE + 1
    ow = (w_in - kw) // STRIDE + 1
    wf = w_oihw * scale[:, None, None, None]                      # fold BN scale

    w_idx = jnp.arange(w_in)
    band = (w_idx[:, None, None] ==
            STRIDE * jnp.arange(ow)[None, :, None] +
            jnp.arange(kw)[None, None, :]).astype(jnp.float32)    # [W_in, OW, KW]
    wlow = jnp.einsum("woj,ncij->iwcon", band, wf)                # [KH,W_in,C_in,OW,C_out]
    wlow = wlow.reshape(kh, w_in * c_in, ow * c_out)

    h_idx = jnp.arange(h_in)
    r = (h_idx[None, None, :] ==
         STRIDE * jnp.arange(oh)[None, :, None] +
         jnp.arange(kh)[:, None, None]).astype(jnp.float32)       # [KH, OH, H_in]

    s = jnp.tile(shift, ow)[None, :]                              # [1, OW*C_out]
    return r, wlow, s, oh, ow


def _lower_head(head_w, head_b, c3, oh3, ow3):
    """Permute head weight (NCHW-flatten order) to the [oh, ow*C+c] layout and
    pad the output dim to 128 lanes."""
    outputs = head_w.shape[0]
    wh = head_w.reshape(outputs, c3, oh3, ow3)
    wh = jnp.transpose(wh, (2, 3, 1, 0)).reshape(oh3, ow3 * c3, outputs)
    wh = jnp.pad(wh, ((0, 0), (0, 0), (0, N_PAD - outputs)))
    bh = jnp.pad(head_b, (0, N_PAD - outputs))[None, :]
    return wh, bh


def prepare_dqnn_params(params, h, w):
    """One-time lowering of PyTorch-style params into fused-kernel operands."""
    mats = []
    hh, ww = h, w
    for name in ("conv1", "conv2", "conv3"):
        p = params[name]
        scale = p["gamma"] / jnp.sqrt(p["var"] + EPS)
        shift = (p["b"] - p["mean"]) * scale + p["beta"]
        r, wlow, s, hh, ww = _lower_conv_bn(p["w"], scale, shift, hh, ww)
        mats += [r, wlow, s]
    c3 = params["conv3"]["w"].shape[0]
    wh, bh = _lower_head(params["head_w"], params["head_b"], c3, hh, ww)
    mats += [wh, bh]
    return tuple(jnp.asarray(m, jnp.float32) for m in mats)


def make_dqnn_forward(prep_mats, n_outputs):
    @jax.jit
    def forward(x_nchw):
        b, c, h, w = x_nchw.shape
        x2 = jnp.transpose(x_nchw, (0, 2, 3, 1)).reshape(b, h, w * c)
        out = _fused_forward_call(x2.astype(jnp.float32), prep_mats)
        return out[:, 0, :n_outputs]
    return forward


# ---------------------------------------------------------------------------
# Parameter construction (matches the PyTorch module structure).
# ---------------------------------------------------------------------------
def conv2d_size_out(size, kernel_size=5, stride=2):
    return (size - (kernel_size - 1) - 1) // stride + 1


def init_dqnn_params(key, h, w, outputs):
    convw = conv2d_size_out(conv2d_size_out(conv2d_size_out(w)))
    convh = conv2d_size_out(conv2d_size_out(conv2d_size_out(h)))
    linear_in = convw * convh * 32

    keys = jax.random.split(key, 20)
    ki = iter(range(20))

    def conv_bn(c_in, c_out):
        wk = jax.random.normal(keys[next(ki)], (c_out, c_in, 5, 5), jnp.float32) * 0.05
        bk = jax.random.normal(keys[next(ki)], (c_out,), jnp.float32) * 0.05
        gamma = 1.0 + 0.1 * jax.random.normal(keys[next(ki)], (c_out,), jnp.float32)
        beta = 0.1 * jax.random.normal(keys[next(ki)], (c_out,), jnp.float32)
        mean = 0.1 * jax.random.normal(keys[next(ki)], (c_out,), jnp.float32)
        var = 1.0 + 0.1 * jnp.abs(jax.random.normal(keys[next(ki)], (c_out,), jnp.float32))
        return dict(w=wk, b=bk, gamma=gamma, beta=beta, mean=mean, var=var)

    return dict(
        conv1=conv_bn(3, 16),
        conv2=conv_bn(16, 32),
        conv3=conv_bn(32, 32),
        head_w=jax.random.normal(keys[18], (outputs, linear_in), jnp.float32) * 0.05,
        head_b=jax.random.normal(keys[19], (outputs,), jnp.float32) * 0.05,
    )


# ---------------------------------------------------------------------------
# Pure-JAX reference (PyTorch eval-mode forward) for verification.
# ---------------------------------------------------------------------------
def dqnn_reference(x_nchw, params):
    x = x_nchw.astype(jnp.float32)
    for name in ("conv1", "conv2", "conv3"):
        p = params[name]
        y = jax.lax.conv_general_dilated(
            x, p["w"], window_strides=(2, 2), padding="VALID",
            dimension_numbers=("NCHW", "OIHW", "NCHW"),
        ) + p["b"][None, :, None, None]
        y = (y - p["mean"][None, :, None, None]) / jnp.sqrt(p["var"][None, :, None, None] + EPS)
        y = y * p["gamma"][None, :, None, None] + p["beta"][None, :, None, None]
        x = jnp.maximum(y, 0.0)
    flat = x.reshape(x.shape[0], -1)
    return flat @ params["head_w"].T + params["head_b"][None, :]


if __name__ == "__main__":
    B, H, W, OUTPUTS = 2, 32, 32, 4   # spatial >= 29 needed for three 5x5/s2 convs
    key = jax.random.PRNGKey(0)
    k_x, k_p = jax.random.split(key)
    x = jax.random.normal(k_x, (B, 3, H, W), jnp.float32)
    params = init_dqnn_params(k_p, H, W, OUTPUTS)

    prep = prepare_dqnn_params(params, H, W)
    dqnn_forward = make_dqnn_forward(prep, OUTPUTS)

    out = jax.block_until_ready(dqnn_forward(x))
    ref = jax.block_until_ready(dqnn_reference(x, params))

    assert out.shape == (B, OUTPUTS), out.shape
    assert jnp.allclose(out, ref, rtol=2e-4, atol=2e-4), (out, ref)
    print("KERNEL_OK")
</pallas_src>

<mosaic_0001>
module attributes {stable_mosaic.version = 11 : i64} {
  func.func @_dqnn_fused_kernel(%arg0: i32, %arg1: memref<1x32x96xf32, #tpu.memory_space<vmem>>, %arg2: memref<5x14x32xf32, #tpu.memory_space<vmem>>, %arg3: memref<5x96x224xf32, #tpu.memory_space<vmem>>, %arg4: memref<1x224xf32, #tpu.memory_space<vmem>>, %arg5: memref<5x5x14xf32, #tpu.memory_space<vmem>>, %arg6: memref<5x224x160xf32, #tpu.memory_space<vmem>>, %arg7: memref<1x160xf32, #tpu.memory_space<vmem>>, %arg8: memref<5x1x5xf32, #tpu.memory_space<vmem>>, %arg9: memref<5x160x32xf32, #tpu.memory_space<vmem>>, %arg10: memref<1x32xf32, #tpu.memory_space<vmem>>, %arg11: memref<1x32x128xf32, #tpu.memory_space<vmem>>, %arg12: memref<1x128xf32, #tpu.memory_space<vmem>>, %arg13: memref<1x8x128xf32, #tpu.memory_space<vmem>>) attributes {dimension_semantics = [#tpu.dimension_semantics<parallel>], iteration_bounds = array<i64: 2>, scalar_prefetch = 0 : i64, scratch_operands = 0 : i64, tpu.core_type = #tpu.core_type<tc>, window_params = [{transform_indices = @transform_0, window_bounds = array<i64: 1, 32, 96>}, {pipeline_mode = #tpu.pipeline_mode<synchronous>, transform_indices = @transform_1, window_bounds = array<i64: 5, 14, 32>}, {pipeline_mode = #tpu.pipeline_mode<synchronous>, transform_indices = @transform_2, window_bounds = array<i64: 5, 96, 224>}, {pipeline_mode = #tpu.pipeline_mode<synchronous>, transform_indices = @transform_3, window_bounds = array<i64: 1, 224>}, {pipeline_mode = #tpu.pipeline_mode<synchronous>, transform_indices = @transform_4, window_bounds = array<i64: 5, 5, 14>}, {pipeline_mode = #tpu.pipeline_mode<synchronous>, transform_indices = @transform_5, window_bounds = array<i64: 5, 224, 160>}, {pipeline_mode = #tpu.pipeline_mode<synchronous>, transform_indices = @transform_6, window_bounds = array<i64: 1, 160>}, {pipeline_mode = #tpu.pipeline_mode<synchronous>, transform_indices = @transform_7, window_bounds = array<i64: 5, 1, 5>}, {pipeline_mode = #tpu.pipeline_mode<synchronous>, transform_indices = @transform_8, window_bounds = array<i64: 5, 160, 32>}, {pipeline_mode = #tpu.pipeline_mode<synchronous>, transform_indices = @transform_9, window_bounds = array<i64: 1, 32>}, {pipeline_mode = #tpu.pipeline_mode<synchronous>, transform_indices = @transform_10, window_bounds = array<i64: 1, 32, 128>}, {pipeline_mode = #tpu.pipeline_mode<synchronous>, transform_indices = @transform_11, window_bounds = array<i64: 1, 128>}, {transform_indices = @transform_12, window_bounds = array<i64: 1, 8, 128>}]} {
    %c0 = arith.constant 0 : index
    %c0_0 = arith.constant 0 : index
    %c0_1 = arith.constant 0 : index
    %0 = vector.load %arg1[%c0, %c0_0, %c0_1] : memref<1x32x96xf32, #tpu.memory_space<vmem>>, vector<1x32x96xf32>
    %1 = vector.shape_cast %0 : vector<1x32x96xf32> to vector<32x96xf32>
    %c0_2 = arith.constant 0 : index
    %c0_3 = arith.constant 0 : index
    %2 = vector.load %arg4[%c0_2, %c0_3] : memref<1x224xf32, #tpu.memory_space<vmem>>, vector<1x224xf32>
    %c0_4 = arith.constant 0 : index
    %c0_5 = arith.constant 0 : index
    %c0_6 = arith.constant 0 : index
    %3 = vector.load %arg2[%c0_4, %c0_5, %c0_6] : memref<5x14x32xf32, #tpu.memory_space<vmem>>, vector<1x14x32xf32>
    %4 = vector.shape_cast %3 : vector<1x14x32xf32> to vector<14x32xf32>
    %cst = arith.constant dense<0.000000e+00> : vector<14x96xf32>
    %5 = tpu.matmul %4, %1, %cst {dimension_numbers = #tpu.dot_dimension_numbers<[1], [0], [0], [1], [0, 0, 1, 1], [], []>} : vector<14x32xf32>, vector<32x96xf32>, vector<14x96xf32> -> vector<14x96xf32>
    %c0_7 = arith.constant 0 : index
    %c0_8 = arith.constant 0 : index
    %c0_9 = arith.constant 0 : index
    %6 = vector.load %arg3[%c0_7, %c0_8, %c0_9] : memref<5x96x224xf32, #tpu.memory_space<vmem>>, vector<1x96x224xf32>
    %7 = vector.shape_cast %6 : vector<1x96x224xf32> to vector<96x224xf32>
    %cst_10 = arith.constant dense<0.000000e+00> : vector<14x224xf32>
    %8 = tpu.matmul %5, %7, %cst_10 {dimension_numbers = #tpu.dot_dimension_numbers<[1], [0], [0], [1], [0, 0, 1, 1], [], []>} : vector<14x96xf32>, vector<96x224xf32>, vector<14x224xf32> -> vector<14x224xf32>
    %9 = vector.broadcast %2 : vector<1x224xf32> to vector<14x224xf32>
    %10 = arith.addf %9, %8 : vector<14x224xf32>
    %c1 = arith.constant 1 : index
    %c0_11 = arith.constant 0 : index
    %c0_12 = arith.constant 0 : index
    %11 = vector.load %arg2[%c1, %c0_11, %c0_12] : memref<5x14x32xf32, #tpu.memory_space<vmem>>, vector<1x14x32xf32>
    %12 = vector.shape_cast %11 : vector<1x14x32xf32> to vector<14x32xf32>
    %cst_13 = arith.constant dense<0.000000e+00> : vector<14x96xf32>
    %13 = tpu.matmul %12, %1, %cst_13 {dimension_numbers = #tpu.dot_dimension_numbers<[1], [0], [0], [1], [0, 0, 1, 1], [], []>} : vector<14x32xf32>, vector<32x96xf32>, vector<14x96xf32> -> vector<14x96xf32>
    %c1_14 = arith.constant 1 : index
    %c0_15 = arith.constant 0 : index
    %c0_16 = arith.constant 0 : index
    %14 = vector.load %arg3[%c1_14, %c0_15, %c0_16] : memref<5x96x224xf32, #tpu.memory_space<vmem>>, vector<1x96x224xf32>
    %15 = vector.shape_cast %14 : vector<1x96x224xf32> to vector<96x224xf32>
    %cst_17 = arith.constant dense<0.000000e+00> : vector<14x224xf32>
    %16 = tpu.matmul %13, %15, %cst_17 {dimension_numbers = #tpu.dot_dimension_numbers<[1], [0], [0], [1], [0, 0, 1, 1], [], []>} : vector<14x96xf32>, vector<96x224xf32>, vector<14x224xf32> -> vector<14x224xf32>
    %17 = arith.addf %10, %16 : vector<14x224xf32>
    %c2 = arith.constant 2 : index
    %c0_18 = arith.constant 0 : index
    %c0_19 = arith.constant 0 : index
    %18 = vector.load %arg2[%c2, %c0_18, %c0_19] : memref<5x14x32xf32, #tpu.memory_space<vmem>>, vector<1x14x32xf32>
    %19 = vector.shape_cast %18 : vector<1x14x32xf32> to vector<14x32xf32>
    %cst_20 = arith.constant dense<0.000000e+00> : vector<14x96xf32>
    %20 = tpu.matmul %19, %1, %cst_20 {dimension_numbers = #tpu.dot_dimension_numbers<[1], [0], [0], [1], [0, 0, 1, 1], [], []>} : vector<14x32xf32>, vector<32x96xf32>, vector<14x96xf32> -> vector<14x96xf32>
    %c2_21 = arith.constant 2 : index
    %c0_22 = arith.constant 0 : index
    %c0_23 = arith.constant 0 : index
    %21 = vector.load %arg3[%c2_21, %c0_22, %c0_23] : memref<5x96x224xf32, #tpu.memory_space<vmem>>, vector<1x96x224xf32>
    %22 = vector.shape_cast %21 : vector<1x96x224xf32> to vector<96x224xf32>
    %cst_24 = arith.constant dense<0.000000e+00> : vector<14x224xf32>
    %23 = tpu.matmul %20, %22, %cst_24 {dimension_numbers = #tpu.dot_dimension_numbers<[1], [0], [0], [1], [0, 0, 1, 1], [], []>} : vector<14x96xf32>, vector<96x224xf32>, vector<14x224xf32> -> vector<14x224xf32>
    %24 = arith.addf %17, %23 : vector<14x224xf32>
    %c3 = arith.constant 3 : index
    %c0_25 = arith.constant 0 : index
    %c0_26 = arith.constant 0 : index
    %25 = vector.load %arg2[%c3, %c0_25, %c0_26] : memref<5x14x32xf32, #tpu.memory_space<vmem>>, vector<1x14x32xf32>
    %26 = vector.shape_cast %25 : vector<1x14x32xf32> to vector<14x32xf32>
    %cst_27 = arith.constant dense<0.000000e+00> : vector<14x96xf32>
    %27 = tpu.matmul %26, %1, %cst_27 {dimension_numbers = #tpu.dot_dimension_numbers<[1], [0], [0], [1], [0, 0, 1, 1], [], []>} : vector<14x32xf32>, vector<32x96xf32>, vector<14x96xf32> -> vector<14x96xf32>
    %c3_28 = arith.constant 3 : index
    %c0_29 = arith.constant 0 : index
    %c0_30 = arith.constant 0 : index
    %28 = vector.load %arg3[%c3_28, %c0_29, %c0_30] : memref<5x96x224xf32, #tpu.memory_space<vmem>>, vector<1x96x224xf32>
    %29 = vector.shape_cast %28 : vector<1x96x224xf32> to vector<96x224xf32>
    %cst_31 = arith.constant dense<0.000000e+00> : vector<14x224xf32>
    %30 = tpu.matmul %27, %29, %cst_31 {dimension_numbers = #tpu.dot_dimension_numbers<[1], [0], [0], [1], [0, 0, 1, 1], [], []>} : vector<14x96xf32>, vector<96x224xf32>, vector<14x224xf32> -> vector<14x224xf32>
    %31 = arith.addf %24, %30 : vector<14x224xf32>
    %c4 = arith.constant 4 : index
    %c0_32 = arith.constant 0 : index
    %c0_33 = arith.constant 0 : index
    %32 = vector.load %arg2[%c4, %c0_32, %c0_33] : memref<5x14x32xf32, #tpu.memory_space<vmem>>, vector<1x14x32xf32>
    %33 = vector.shape_cast %32 : vector<1x14x32xf32> to vector<14x32xf32>
    %cst_34 = arith.constant dense<0.000000e+00> : vector<14x96xf32>
    %34 = tpu.matmul %33, %1, %cst_34 {dimension_numbers = #tpu.dot_dimension_numbers<[1], [0], [0], [1], [0, 0, 1, 1], [], []>} : vector<14x32xf32>, vector<32x96xf32>, vector<14x96xf32> -> vector<14x96xf32>
    %c4_35 = arith.constant 4 : index
    %c0_36 = arith.constant 0 : index
    %c0_37 = arith.constant 0 : index
    %35 = vector.load %arg3[%c4_35, %c0_36, %c0_37] : memref<5x96x224xf32, #tpu.memory_space<vmem>>, vector<1x96x224xf32>
    %36 = vector.shape_cast %35 : vector<1x96x224xf32> to vector<96x224xf32>
    %cst_38 = arith.constant dense<0.000000e+00> : vector<14x224xf32>
    %37 = tpu.matmul %34, %36, %cst_38 {dimension_numbers = #tpu.dot_dimension_numbers<[1], [0], [0], [1], [0, 0, 1, 1], [], []>} : vector<14x96xf32>, vector<96x224xf32>, vector<14x224xf32> -> vector<14x224xf32>
    %38 = arith.addf %31, %37 : vector<14x224xf32>
    %cst_39 = arith.constant 0.000000e+00 : f32
    %39 = vector.broadcast %cst_39 : f32 to vector<14x224xf32>
    %40 = arith.maximumf %38, %39 : vector<14x224xf32>
    %c0_40 = arith.constant 0 : index
    %c0_41 = arith.constant 0 : index
    %41 = vector.load %arg7[%c0_40, %c0_41] : memref<1x160xf32, #tpu.memory_space<vmem>>, vector<1x160xf32>
    %c0_42 = arith.constant 0 : index
    %c0_43 = arith.constant 0 : index
    %c0_44 = arith.constant 0 : index
    %42 = vector.load %arg5[%c0_42, %c0_43, %c0_44] : memref<5x5x14xf32, #tpu.memory_space<vmem>>, vector<1x5x14xf32>
    %43 = vector.shape_cast %42 : vector<1x5x14xf32> to vector<5x14xf32>
    %cst_45 = arith.constant dense<0.000000e+00> : vector<5x224xf32>
    %44 = tpu.matmul %43, %40, %cst_45 {dimension_numbers = #tpu.dot_dimension_numbers<[1], [0], [0], [1], [0, 0, 1, 1], [], []>} : vector<5x14xf32>, vector<14x224xf32>, vector<5x224xf32> -> vector<5x224xf32>
    %c0_46 = arith.constant 0 : index
    %c0_47 = arith.constant 0 : index
    %c0_48 = arith.constant 0 : index
    %45 = vector.load %arg6[%c0_46, %c0_47, %c0_48] : memref<5x224x160xf32, #tpu.memory_space<vmem>>, vector<1x224x160xf32>
    %46 = vector.shape_cast %45 : vector<1x224x160xf32> to vector<224x160xf32>
    %cst_49 = arith.constant dense<0.000000e+00> : vector<5x160xf32>
    %47 = tpu.matmul %44, %46, %cst_49 {dimension_numbers = #tpu.dot_dimension_numbers<[1], [0], [0], [1], [0, 0, 1, 1], [], []>} : vector<5x224xf32>, vector<224x160xf32>, vector<5x160xf32> -> vector<5x160xf32>
    %48 = vector.broadcast %41 : vector<1x160xf32> to vector<5x160xf32>
    %49 = arith.addf %48, %47 : vector<5x160xf32>
    %c1_50 = arith.constant 1 : index
    %c0_51 = arith.constant 0 : index
    %c0_52 = arith.constant 0 : index
    %50 = vector.load %arg5[%c1_50, %c0_51, %c0_52] : memref<5x5x14xf32, #tpu.memory_space<vmem>>, vector<1x5x14xf32>
    %51 = vector.shape_cast %50 : vector<1x5x14xf32> to vector<5x14xf32>
    %cst_53 = arith.constant dense<0.000000e+00> : vector<5x224xf32>
    %52 = tpu.matmul %51, %40, %cst_53 {dimension_numbers = #tpu.dot_dimension_numbers<[1], [0], [0], [1], [0, 0, 1, 1], [], []>} : vector<5x14xf32>, vector<14x224xf32>, vector<5x224xf32> -> vector<5x224xf32>
    %c1_54 = arith.constant 1 : index
    %c0_55 = arith.constant 0 : index
    %c0_56 = arith.constant 0 : index
    %53 = vector.load %arg6[%c1_54, %c0_55, %c0_56] : memref<5x224x160xf32, #tpu.memory_space<vmem>>, vector<1x224x160xf32>
    %54 = vector.shape_cast %53 : vector<1x224x160xf32> to vector<224x160xf32>
    %cst_57 = arith.constant dense<0.000000e+00> : vector<5x160xf32>
    %55 = tpu.matmul %52, %54, %cst_57 {dimension_numbers = #tpu.dot_dimension_numbers<[1], [0], [0], [1], [0, 0, 1, 1], [], []>} : vector<5x224xf32>, vector<224x160xf32>, vector<5x160xf32> -> vector<5x160xf32>
    %56 = arith.addf %49, %55 : vector<5x160xf32>
    %c2_58 = arith.constant 2 : index
    %c0_59 = arith.constant 0 : index
    %c0_60 = arith.constant 0 : index
    %57 = vector.load %arg5[%c2_58, %c0_59, %c0_60] : memref<5x5x14xf32, #tpu.memory_space<vmem>>, vector<1x5x14xf32>
    %58 = vector.shape_cast %57 : vector<1x5x14xf32> to vector<5x14xf32>
    %cst_61 = arith.constant dense<0.000000e+00> : vector<5x224xf32>
    %59 = tpu.matmul %58, %40, %cst_61 {dimension_numbers = #tpu.dot_dimension_numbers<[1], [0], [0], [1], [0, 0, 1, 1], [], []>} : vector<5x14xf32>, vector<14x224xf32>, vector<5x224xf32> -> vector<5x224xf32>
    %c2_62 = arith.constant 2 : index
    %c0_63 = arith.constant 0 : index
    %c0_64 = arith.constant 0 : index
    %60 = vector.load %arg6[%c2_62, %c0_63, %c0_64] : memref<5x224x160xf32, #tpu.memory_space<vmem>>, vector<1x224x160xf32>
    %61 = vector.shape_cast %60 : vector<1x224x160xf32> to vector<224x160xf32>
    %cst_65 = arith.constant dense<0.000000e+00> : vector<5x160xf32>
    %62 = tpu.matmul %59, %61, %cst_65 {dimension_numbers = #tpu.dot_dimension_numbers<[1], [0], [0], [1], [0, 0, 1, 1], [], []>} : vector<5x224xf32>, vector<224x160xf32>, vector<5x160xf32> -> vector<5x160xf32>
    %63 = arith.addf %56, %62 : vector<5x160xf32>
    %c3_66 = arith.constant 3 : index
    %c0_67 = arith.constant 0 : index
    %c0_68 = arith.constant 0 : index
    %64 = vector.load %arg5[%c3_66, %c0_67, %c0_68] : memref<5x5x14xf32, #tpu.memory_space<vmem>>, vector<1x5x14xf32>
    %65 = vector.shape_cast %64 : vector<1x5x14xf32> to vector<5x14xf32>
    %cst_69 = arith.constant dense<0.000000e+00> : vector<5x224xf32>
    %66 = tpu.matmul %65, %40, %cst_69 {dimension_numbers = #tpu.dot_dimension_numbers<[1], [0], [0], [1], [0, 0, 1, 1], [], []>} : vector<5x14xf32>, vector<14x224xf32>, vector<5x224xf32> -> vector<5x224xf32>
    %c3_70 = arith.constant 3 : index
    %c0_71 = arith.constant 0 : index
    %c0_72 = arith.constant 0 : index
    %67 = vector.load %arg6[%c3_70, %c0_71, %c0_72] : memref<5x224x160xf32, #tpu.memory_space<vmem>>, vector<1x224x160xf32>
    %68 = vector.shape_cast %67 : vector<1x224x160xf32> to vector<224x160xf32>
    %cst_73 = arith.constant dense<0.000000e+00> : vector<5x160xf32>
    %69 = tpu.matmul %66, %68, %cst_73 {dimension_numbers = #tpu.dot_dimension_numbers<[1], [0], [0], [1], [0, 0, 1, 1], [], []>} : vector<5x224xf32>, vector<224x160xf32>, vector<5x160xf32> -> vector<5x160xf32>
    %70 = arith.addf %63, %69 : vector<5x160xf32>
    %c4_74 = arith.constant 4 : index
    %c0_75 = arith.constant 0 : index
    %c0_76 = arith.constant 0 : index
    %71 = vector.load %arg5[%c4_74, %c0_75, %c0_76] : memref<5x5x14xf32, #tpu.memory_space<vmem>>, vector<1x5x14xf32>
    %72 = vector.shape_cast %71 : vector<1x5x14xf32> to vector<5x14xf32>
    %cst_77 = arith.constant dense<0.000000e+00> : vector<5x224xf32>
    %73 = tpu.matmul %72, %40, %cst_77 {dimension_numbers = #tpu.dot_dimension_numbers<[1], [0], [0], [1], [0, 0, 1, 1], [], []>} : vector<5x14xf32>, vector<14x224xf32>, vector<5x224xf32> -> vector<5x224xf32>
    %c4_78 = arith.constant 4 : index
    %c0_79 = arith.constant 0 : index
    %c0_80 = arith.constant 0 : index
    %74 = vector.load %arg6[%c4_78, %c0_79, %c0_80] : memref<5x224x160xf32, #tpu.memory_space<vmem>>, vector<1x224x160xf32>
    %75 = vector.shape_cast %74 : vector<1x224x160xf32> to vector<224x160xf32>
    %cst_81 = arith.constant dense<0.000000e+00> : vector<5x160xf32>
    %76 = tpu.matmul %73, %75, %cst_81 {dimension_numbers = #tpu.dot_dimension_numbers<[1], [0], [0], [1], [0, 0, 1, 1], [], []>} : vector<5x224xf32>, vector<224x160xf32>, vector<5x160xf32> -> vector<5x160xf32>
    %77 = arith.addf %70, %76 : vector<5x160xf32>
    %cst_82 = arith.constant 0.000000e+00 : f32
    %78 = vector.broadcast %cst_82 : f32 to vector<5x160xf32>
    %79 = arith.maximumf %77, %78 : vector<5x160xf32>
    %c0_83 = arith.constant 0 : index
    %c0_84 = arith.constant 0 : index
    %80 = vector.load %arg10[%c0_83, %c0_84] : memref<1x32xf32, #tpu.memory_space<vmem>>, vector<1x32xf32>
    %c0_85 = arith.constant 0 : index
    %c0_86 = arith.constant 0 : index
    %c0_87 = arith.constant 0 : index
    %81 = vector.load %arg8[%c0_85, %c0_86, %c0_87] : memref<5x1x5xf32, #tpu.memory_space<vmem>>, vector<1x1x5xf32>
    %82 = vector.shape_cast %81 : vector<1x1x5xf32> to vector<1x5xf32>
    %cst_88 = arith.constant dense<0.000000e+00> : vector<1x160xf32>
    %83 = tpu.matmul %82, %79, %cst_88 {dimension_numbers = #tpu.dot_dimension_numbers<[1], [0], [0], [1], [0, 0, 1, 1], [], []>} : vector<1x5xf32>, vector<5x160xf32>, vector<1x160xf32> -> vector<1x160xf32>
    %c0_89 = arith.constant 0 : index
    %c0_90 = arith.constant 0 : index
    %c0_91 = arith.constant 0 : index
    %84 = vector.load %arg9[%c0_89, %c0_90, %c0_91] : memref<5x160x32xf32, #tpu.memory_space<vmem>>, vector<1x160x32xf32>
    %85 = vector.shape_cast %84 : vector<1x160x32xf32> to vector<160x32xf32>
    %cst_92 = arith.constant dense<0.000000e+00> : vector<1x32xf32>
    %86 = tpu.matmul %83, %85, %cst_92 {dimension_numbers = #tpu.dot_dimension_numbers<[1], [0], [0], [1], [0, 0, 1, 1], [], []>} : vector<1x160xf32>, vector<160x32xf32>, vector<1x32xf32> -> vector<1x32xf32>
    %87 = arith.addf %80, %86 : vector<1x32xf32>
    %c1_93 = arith.constant 1 : index
    %c0_94 = arith.constant 0 : index
    %c0_95 = arith.constant 0 : index
    %88 = vector.load %arg8[%c1_93, %c0_94, %c0_95] : memref<5x1x5xf32, #tpu.memory_space<vmem>>, vector<1x1x5xf32>
    %89 = vector.shape_cast %88 : vector<1x1x5xf32> to vector<1x5xf32>
    %cst_96 = arith.constant dense<0.000000e+00> : vector<1x160xf32>
    %90 = tpu.matmul %89, %79, %cst_96 {dimension_numbers = #tpu.dot_dimension_numbers<[1], [0], [0], [1], [0, 0, 1, 1], [], []>} : vector<1x5xf32>, vector<5x160xf32>, vector<1x160xf32> -> vector<1x160xf32>
    %c1_97 = arith.constant 1 : index
    %c0_98 = arith.constant 0 : index
    %c0_99 = arith.constant 0 : index
    %91 = vector.load %arg9[%c1_97, %c0_98, %c0_99] : memref<5x160x32xf32, #tpu.memory_space<vmem>>, vector<1x160x32xf32>
    %92 = vector.shape_cast %91 : vector<1x160x32xf32> to vector<160x32xf32>
    %cst_100 = arith.constant dense<0.000000e+00> : vector<1x32xf32>
    %93 = tpu.matmul %90, %92, %cst_100 {dimension_numbers = #tpu.dot_dimension_numbers<[1], [0], [0], [1], [0, 0, 1, 1], [], []>} : vector<1x160xf32>, vector<160x32xf32>, vector<1x32xf32> -> vector<1x32xf32>
    %94 = arith.addf %87, %93 : vector<1x32xf32>
    %c2_101 = arith.constant 2 : index
    %c0_102 = arith.constant 0 : index
    %c0_103 = arith.constant 0 : index
    %95 = vector.load %arg8[%c2_101, %c0_102, %c0_103] : memref<5x1x5xf32, #tpu.memory_space<vmem>>, vector<1x1x5xf32>
    %96 = vector.shape_cast %95 : vector<1x1x5xf32> to vector<1x5xf32>
    %cst_104 = arith.constant dense<0.000000e+00> : vector<1x160xf32>
    %97 = tpu.matmul %96, %79, %cst_104 {dimension_numbers = #tpu.dot_dimension_numbers<[1], [0], [0], [1], [0, 0, 1, 1], [], []>} : vector<1x5xf32>, vector<5x160xf32>, vector<1x160xf32> -> vector<1x160xf32>
    %c2_105 = arith.constant 2 : index
    %c0_106 = arith.constant 0 : index
    %c0_107 = arith.constant 0 : index
    %98 = vector.load %arg9[%c2_105, %c0_106, %c0_107] : memref<5x160x32xf32, #tpu.memory_space<vmem>>, vector<1x160x32xf32>
    %99 = vector.shape_cast %98 : vector<1x160x32xf32> to vector<160x32xf32>
    %cst_108 = arith.constant dense<0.000000e+00> : vector<1x32xf32>
    %100 = tpu.matmul %97, %99, %cst_108 {dimension_numbers = #tpu.dot_dimension_numbers<[1], [0], [0], [1], [0, 0, 1, 1], [], []>} : vector<1x160xf32>, vector<160x32xf32>, vector<1x32xf32> -> vector<1x32xf32>
    %101 = arith.addf %94, %100 : vector<1x32xf32>
    %c3_109 = arith.constant 3 : index
    %c0_110 = arith.constant 0 : index
    %c0_111 = arith.constant 0 : index
    %102 = vector.load %arg8[%c3_109, %c0_110, %c0_111] : memref<5x1x5xf32, #tpu.memory_space<vmem>>, vector<1x1x5xf32>
    %103 = vector.shape_cast %102 : vector<1x1x5xf32> to vector<1x5xf32>
    %cst_112 = arith.constant dense<0.000000e+00> : vector<1x160xf32>
    %104 = tpu.matmul %103, %79, %cst_112 {dimension_numbers = #tpu.dot_dimension_numbers<[1], [0], [0], [1], [0, 0, 1, 1], [], []>} : vector<1x5xf32>, vector<5x160xf32>, vector<1x160xf32> -> vector<1x160xf32>
    %c3_113 = arith.constant 3 : index
    %c0_114 = arith.constant 0 : index
    %c0_115 = arith.constant 0 : index
    %105 = vector.load %arg9[%c3_113, %c0_114, %c0_115] : memref<5x160x32xf32, #tpu.memory_space<vmem>>, vector<1x160x32xf32>
    %106 = vector.shape_cast %105 : vector<1x160x32xf32> to vector<160x32xf32>
    %cst_116 = arith.constant dense<0.000000e+00> : vector<1x32xf32>
    %107 = tpu.matmul %104, %106, %cst_116 {dimension_numbers = #tpu.dot_dimension_numbers<[1], [0], [0], [1], [0, 0, 1, 1], [], []>} : vector<1x160xf32>, vector<160x32xf32>, vector<1x32xf32> -> vector<1x32xf32>
    %108 = arith.addf %101, %107 : vector<1x32xf32>
    %c4_117 = arith.constant 4 : index
    %c0_118 = arith.constant 0 : index
    %c0_119 = arith.constant 0 : index
    %109 = vector.load %arg8[%c4_117, %c0_118, %c0_119] : memref<5x1x5xf32, #tpu.memory_space<vmem>>, vector<1x1x5xf32>
    %110 = vector.shape_cast %109 : vector<1x1x5xf32> to vector<1x5xf32>
    %cst_120 = arith.constant dense<0.000000e+00> : vector<1x160xf32>
    %111 = tpu.matmul %110, %79, %cst_120 {dimension_numbers = #tpu.dot_dimension_numbers<[1], [0], [0], [1], [0, 0, 1, 1], [], []>} : vector<1x5xf32>, vector<5x160xf32>, vector<1x160xf32> -> vector<1x160xf32>
    %c4_121 = arith.constant 4 : index
    %c0_122 = arith.constant 0 : index
    %c0_123 = arith.constant 0 : index
    %112 = vector.load %arg9[%c4_121, %c0_122, %c0_123] : memref<5x160x32xf32, #tpu.memory_space<vmem>>, vector<1x160x32xf32>
    %113 = vector.shape_cast %112 : vector<1x160x32xf32> to vector<160x32xf32>
    %cst_124 = arith.constant dense<0.000000e+00> : vector<1x32xf32>
    %114 = tpu.matmul %111, %113, %cst_124 {dimension_numbers = #tpu.dot_dimension_numbers<[1], [0], [0], [1], [0, 0, 1, 1], [], []>} : vector<1x160xf32>, vector<160x32xf32>, vector<1x32xf32> -> vector<1x32xf32>
    %115 = arith.addf %108, %114 : vector<1x32xf32>
    %cst_125 = arith.constant 0.000000e+00 : f32
    %116 = vector.broadcast %cst_125 : f32 to vector<1x32xf32>
    %117 = arith.maximumf %115, %116 : vector<1x32xf32>
    %c0_126 = arith.constant 0 : index
    %c0_127 = arith.constant 0 : index
    %118 = vector.load %arg12[%c0_126, %c0_127] : memref<1x128xf32, #tpu.memory_space<vmem>>, vector<1x128xf32>
    %c0_128 = arith.constant 0 : index
    %c0_129 = arith.constant 0 : index
    %c0_130 = arith.constant 0 : index
    %119 = vector.load %arg11[%c0_128, %c0_129, %c0_130] : memref<1x32x128xf32, #tpu.memory_space<vmem>>, vector<1x32x128xf32>
    %120 = vector.shape_cast %119 : vector<1x32x128xf32> to vector<32x128xf32>
    %cst_131 = arith.constant dense<0.000000e+00> : vector<1x128xf32>
    %121 = tpu.matmul %117, %120, %cst_131 {dimension_numbers = #tpu.dot_dimension_numbers<[1], [0], [0], [1], [0, 0, 1, 1], [], []>} : vector<1x32xf32>, vector<32x128xf32>, vector<1x128xf32> -> vector<1x128xf32>
    %122 = arith.addf %118, %121 : vector<1x128xf32>
    %123 = vector.shape_cast %122 : vector<1x128xf32> to vector<1x1x128xf32>
    %124 = vector.broadcast %123 : vector<1x1x128xf32> to vector<1x8x128xf32>
    %c0_132 = arith.constant 0 : index
    %c0_133 = arith.constant 0 : index
    %c0_134 = arith.constant 0 : index
    %125 = vector.load %arg13[%c0_132, %c0_133, %c0_134] : memref<1x8x128xf32, #tpu.memory_space<vmem>>, vector<1x8x128xf32>
    tpu.vector_store %arg13[%c0_132, %c0_133, %c0_134], %124 {strides = array<i32>} : memref<1x8x128xf32, #tpu.memory_space<vmem>>, vector<1x8x128xf32>,
    return
  }
  func.func @transform_0(%arg0: i32) -> (i32, i32, i32) {
    %c0_i32 = arith.constant 0 : i32
    %c0_i32_0 = arith.constant 0 : i32
    %c0_i32_1 = arith.constant 0 : i32
    return %arg0, %c0_i32, %c0_i32_0 : i32, i32, i32
  }
  func.func @transform_1(%arg0: i32) -> (i32, i32, i32) {
    %c0_i32 = arith.constant 0 : i32
    %c0_i32_0 = arith.constant 0 : i32
    %c0_i32_1 = arith.constant 0 : i32
    %c0_i32_2 = arith.constant 0 : i32
    return %c0_i32, %c0_i32_0, %c0_i32_1 : i32, i32, i32
  }
  func.func @transform_2(%arg0: i32) -> (i32, i32, i32) {
    %c0_i32 = arith.constant 0 : i32
    %c0_i32_0 = arith.constant 0 : i32
    %c0_i32_1 = arith.constant 0 : i32
    %c0_i32_2 = arith.constant 0 : i32
    return %c0_i32, %c0_i32_0, %c0_i32_1 : i32, i32, i32
  }
  func.func @transform_3(%arg0: i32) -> (i32, i32) {
    %c0_i32 = arith.constant 0 : i32
    %c0_i32_0 = arith.constant 0 : i32
    %c0_i32_1 = arith.constant 0 : i32
    return %c0_i32, %c0_i32_0 : i32, i32
  }
  func.func @transform_4(%arg0: i32) -> (i32, i32, i32) {
    %c0_i32 = arith.constant 0 : i32
    %c0_i32_0 = arith.constant 0 : i32
    %c0_i32_1 = arith.constant 0 : i32
    %c0_i32_2 = arith.constant 0 : i32
    return %c0_i32, %c0_i32_0, %c0_i32_1 : i32, i32, i32
  }
  func.func @transform_5(%arg0: i32) -> (i32, i32, i32) {
    %c0_i32 = arith.constant 0 : i32
    %c0_i32_0 = arith.constant 0 : i32
    %c0_i32_1 = arith.constant 0 : i32
    %c0_i32_2 = arith.constant 0 : i32
    return %c0_i32, %c0_i32_0, %c0_i32_1 : i32, i32, i32
  }
  func.func @transform_6(%arg0: i32) -> (i32, i32) {
    %c0_i32 = arith.constant 0 : i32
    %c0_i32_0 = arith.constant 0 : i32
    %c0_i32_1 = arith.constant 0 : i32
    return %c0_i32, %c0_i32_0 : i32, i32
  }
  func.func @transform_7(%arg0: i32) -> (i32, i32, i32) {
    %c0_i32 = arith.constant 0 : i32
    %c0_i32_0 = arith.constant 0 : i32
    %c0_i32_1 = arith.constant 0 : i32
    %c0_i32_2 = arith.constant 0 : i32
    return %c0_i32, %c0_i32_0, %c0_i32_1 : i32, i32, i32
  }
  func.func @transform_8(%arg0: i32) -> (i32, i32, i32) {
    %c0_i32 = arith.constant 0 : i32
    %c0_i32_0 = arith.constant 0 : i32
    %c0_i32_1 = arith.constant 0 : i32
    %c0_i32_2 = arith.constant 0 : i32
    return %c0_i32, %c0_i32_0, %c0_i32_1 : i32, i32, i32
  }
  func.func @transform_9(%arg0: i32) -> (i32, i32) {
    %c0_i32 = arith.constant 0 : i32
    %c0_i32_0 = arith.constant 0 : i32
    %c0_i32_1 = arith.constant 0 : i32
    return %c0_i32, %c0_i32_0 : i32, i32
  }
  func.func @transform_10(%arg0: i32) -> (i32, i32, i32) {
    %c0_i32 = arith.constant 0 : i32
    %c0_i32_0 = arith.constant 0 : i32
    %c0_i32_1 = arith.constant 0 : i32
    %c0_i32_2 = arith.constant 0 : i32
    return %c0_i32, %c0_i32_0, %c0_i32_1 : i32, i32, i32
  }
  func.func @transform_11(%arg0: i32) -> (i32, i32) {
    %c0_i32 = arith.constant 0 : i32
    %c0_i32_0 = arith.constant 0 : i32
    %c0_i32_1 = arith.constant 0 : i32
    return %c0_i32, %c0_i32_0 : i32, i32
  }
  func.func @transform_12(%arg0: i32) -> (i32, i32, i32) {
    %c0_i32 = arith.constant 0 : i32
    %c0_i32_0 = arith.constant 0 : i32
    %c0_i32_1 = arith.constant 0 : i32
    return %arg0, %c0_i32, %c0_i32_0 : i32, i32, i32
  }
}

</mosaic_0001>

<bundles_post_ra>
// kernel: forward.1
= control target key start
LH: loop header
LB: loop body
LE: loop exit
PB: predicated region body
PF: predicated region fallthrough
CT: control target
= control target key end

     0   :  { %s5716_s0 = inlined_call_operand.vmem [shape: f32[2,32,96], index: 0, kind: input, shape index: {}]   ;;  %s5717_s1 = inlined_call_operand.hbm [shape: f32[5,14,32], index: 1, kind: input, shape index: {}]   ;;  %s5718_s2 = inlined_call_operand.hbm [shape: f32[5,96,224], index: 2, kind: input, shape index: {}]   ;;  %s5719_s3 = inlined_call_operand.hbm [shape: f32[1,224], index: 3, kind: input, shape index: {}]   ;;  %s5720_s4 = inlined_call_operand.hbm [shape: f32[5,5,14], index: 4, kind: input, shape index: {}]   ;;  %s5721_s5 = inlined_call_operand.hbm [shape: f32[5,224,160], index: 5, kind: input, shape index: {}]   ;;  %s5722_s6 = inlined_call_operand.hbm [shape: f32[1,160], index: 6, kind: input, shape index: {}]   ;;  %s5723_s7 = inlined_call_operand.hbm [shape: f32[5,1,5], index: 7, kind: input, shape index: {}]   ;;  %s5724_s8 = inlined_call_operand.hbm [shape: f32[5,160,32], index: 8, kind: input, shape index: {}]   ;;  %s5725_s9 = inlined_call_operand.hbm [shape: f32[1,32], index: 9, kind: input, shape index: {}]   ;;  %s5726_s10 = inlined_call_operand.hbm [shape: f32[1,32,128], index: 10, kind: input, shape index: {}]   ;;  %s5727_s11 = inlined_call_operand.hbm [shape: f32[1,128], index: 11, kind: input, shape index: {}]   ;;  %s5728_s12 = inlined_call_operand.vmem [shape: f32[2,8,128], index: 12, kind: output, shape index: {}]  }
   0x1   :  { %5735 = sst [smem:[#allocation26_spill]] %s5717_s1 }
   0x2   :  { %17 = vsyncpa [#allocation3], 0 }
   0x3   :  { %18 = vsyncpa [#allocation5], 0 }
   0x4   :  { %19 = vsyncpa [#allocation8], 0 }
   0x5   :  { %20 = vsyncpa [#allocation11], 0 }
   0x6   :  { %21 = vsyncpa [#allocation14], 0 }
   0x7   :  { %22 = vsyncpa [#allocation17], 0  ;;  %s5151_s21 = smov 0  }
   0x8 LB: > { %5736 = sst [smem:[#allocation25_spill]] %s5064_s21  ;;  %s5066_s22 = smov [#allocation4]   ;;  %s5064_s21 = sphi %s5151_s21, %s28_s21  }
   0x9   : > { %s341_s23 = sshll.u32 %s5066_s22, 4  ;;  %s5157_s24 = sadd.s32 4294967295, %s5064_s21   ;;  %s5162_s23 = int_to_ptr.vmem [resolvable:$true] %s341_s23 }
   0xa   : > { %p3740_p0 = scmp.ge.s32.totalorder %s5064_s21, 1  ;;  %p316_p1 = scmp.lt.s32.totalorder %s5064_s21, 3 }
   0xb   : > { %p5733_p2 = scmp.eq.s32.totalorder %s5157_s24, 0  ;;  %s5067_s27 = smov [#allocation7]  }
   0xc   : > { %p5164_p3 = pnand %p3740_p0, %p316_p1  ;;  %s365_s28 = sshll.u32 %s5067_s27, 4  ;;  %s5176_s28 = int_to_ptr.vmem [resolvable:$true] %s365_s28 }
   0xd   : > { %s5068_s29 = smov [#allocation10]   ;;  %s4726_s15 = scalar_lea.hbm %s5718_s2, 15360 }
   0xe   : > { %s5737_s25 = scalar_select %p5164_p3, 1, 0 }
   0xf   : > { %p4642_p4 = pneg %p5164_p3  ;;  %s392_s30 = sshll.u32 %s5068_s29, 4  ;;  %s5178_s30 = int_to_ptr.vmem [resolvable:$true] %s392_s30 }
  0x10   : > { %p4727_p6 = scmp.ne.s32.totalorder %s5718_s2, %s4726_s15  ;;  %p4733_p10 = scmp.lt.u32.totalorder %s4726_s15, %s5718_s2 }
  0x11   : > { %p5172_p5 = pnand %p5733_p2, %p4642_p4 }
  0x13   : > { %p5188_p7 = pneg %p5172_p5 }
  0x15   : > { %p4729_p8 = pnand %p5188_p7, %p4727_p6 }
  0x17   : > { %p4730_p9 = pneg %p4729_p8 }
  0x19   : > { %p4735_p11 = pnand %p4733_p10, %p4730_p9 }
  0x1b   : > { %4738 = shalt.err (!%p4735_p11)
}
  0x1c   : > { %s4739_s22 = scalar_lea.vmem %s5162_s23, 15360  ;;  %p4747_p1 = scmp.lt.s32.totalorder %s5162_s23, %s5162_s23 }
  0x1d   : > { %p4740_p12 = scmp.ne.s32.totalorder %s5162_s23, %s4739_s22  ;;  %p4748_p4 = scmp.lt.s32.totalorder %s4739_s22, %s4739_s22 }
  0x1f   : > { %p4742_p13 = pnand %p4740_p12, %p5188_p7  ;;  %p4749_p6 = por %p4748_p4, %p4747_p1 }
  0x21   : > { %p4743_p0 = pneg %p4742_p13 }
  0x23   : > { %p4750_p8 = pnand %p4749_p6, %p4743_p0 }
  0x25   : > { %4753 = shalt.err (!%p4750_p8)
}
  0x26   : > { %s5730_s27 = smov 256   ;;  %s5731_s29 = smov 16  }
  0x27   : > { %4648 = dma.hbm_to_vmem [thread:$0]  (!%p5172_p5), %s5718_s2, 15360, %s5162_s23, [#allocation5], %s5730_s27, %s5730_s27, %s5731_s29  }
  0x28   : > { %s4754_s17 = scalar_lea.hbm %s5720_s4, 640 }
  0x29   : > { %p4755_p9 = scmp.ne.s32.totalorder %s5720_s4, %s4754_s17  ;;  %p4761_p12 = scmp.lt.u32.totalorder %s4754_s17, %s5720_s4 }
  0x2b   : > { %p4757_p10 = pnand %p4755_p9, %p5188_p7 }
  0x2d   : > { %p4758_p11 = pneg %p4757_p10 }
  0x2f   : > { %p4763_p13 = pnand %p4761_p12, %p4758_p11 }
  0x31   : > { %4766 = shalt.err (!%p4763_p13)
}
  0x32   : > { %s4767_s23 = scalar_lea.vmem %s5176_s28, 640  ;;  %p4775_p6 = scmp.lt.s32.totalorder %s5176_s28, %s5176_s28 }
  0x33   : > { %p4768_p0 = scmp.ne.s32.totalorder %s5176_s28, %s4767_s23  ;;  %p4776_p8 = scmp.lt.s32.totalorder %s4767_s23, %s4767_s23 }
  0x35   : > { %p4770_p1 = pnand %p4768_p0, %p5188_p7  ;;  %p4777_p9 = por %p4776_p8, %p4775_p6 }
  0x37   : > { %p4771_p4 = pneg %p4770_p1 }
  0x39   : > { %p4778_p10 = pnand %p4777_p9, %p4771_p4 }
  0x3b   : > { %4781 = shalt.err (!%p4778_p10)
}
  0x3c   : > { %s5071_s13 = smov 128   ;;  %s5072_s21 = smov 8  }
  0x3d   : > { %4654 = dma.hbm_to_vmem [thread:$0]  (!%p5172_p5), %s5720_s4, 640, %s5176_s28, [#allocation8], %s5071_s13, %s5071_s13, %s5072_s21  }
  0x3e   : > { %s4782_s19 = scalar_lea.hbm %s5722_s6, 32 }
  0x3f   : > { %p4783_p11 = scmp.ne.s32.totalorder %s5722_s6, %s4782_s19  ;;  %p4789_p0 = scmp.lt.u32.totalorder %s4782_s19, %s5722_s6 }
  0x41   : > { %p4785_p12 = pnand %p4783_p11, %p5188_p7 }
  0x43   : > { %p4786_p13 = pneg %p4785_p12 }
  0x45   : > { %p4791_p1 = pnand %p4789_p0, %p4786_p13 }
  0x47   : > { %4794 = shalt.err (!%p4791_p1)
}
  0x48   : > { %s4795_s28 = scalar_lea.vmem %s5178_s30, 32  ;;  %p4803_p9 = scmp.lt.s32.totalorder %s5178_s30, %s5178_s30 }
  0x49   : > { %p4796_p4 = scmp.ne.s32.totalorder %s5178_s30, %s4795_s28  ;;  %p4804_p10 = scmp.lt.s32.totalorder %s4795_s28, %s4795_s28 }
  0x4b   : > { %p4798_p6 = pnand %p4796_p4, %p5188_p7  ;;  %p4805_p11 = por %p4804_p10, %p4803_p9 }
  0x4d   : > { %p4799_p8 = pneg %p4798_p6 }
  0x4f   : > { %p4806_p12 = pnand %p4805_p11, %p4799_p8 }
  0x51   : > { %4809 = shalt.err (!%p4806_p12)
}
  0x52   : > { %4660 = dma.hbm_to_vmem [thread:$0]  (!%p5172_p5), %s5722_s6, 32, %s5178_s30, [#allocation11]  }
  0x53   : > { %s5073_s15 = smov [#allocation13]   ;;  %s5074_s17 = smov [#allocation16]  }
  0x54   : > { %s415_s16 = sshll.u32 %s5073_s15, 4  ;;  %s439_s19 = sshll.u32 %s5074_s17, 4  ;;  %s416_s16 = int_to_ptr.vmem [resolvable:$true] %s415_s16  ;;  %s5261_s19 = int_to_ptr.vmem [resolvable:$true] %s439_s19 }
  0x55   : > { %s4810_s23 = scalar_lea.hbm %s5724_s8, 12800 }
  0x56   : > { %p4811_p13 = scmp.ne.s32.totalorder %s5724_s8, %s4810_s23  ;;  %p4817_p4 = scmp.lt.u32.totalorder %s4810_s23, %s5724_s8 }
  0x58   : > { %p4813_p0 = pnand %p4811_p13, %p5188_p7 }
  0x5a   : > { %p4814_p1 = pneg %p4813_p0 }
  0x5c   : > { %p4819_p6 = pnand %p4817_p4, %p4814_p1 }
  0x5e   : > { %4822 = shalt.err (!%p4819_p6)
}
  0x5f   : > { %s4823_s14 = scalar_lea.vmem %s416_s16, 12800  ;;  %p4831_p11 = scmp.lt.s32.totalorder %s416_s16, %s416_s16 }
  0x60   : > { %p4824_p8 = scmp.ne.s32.totalorder %s416_s16, %s4823_s14  ;;  %p4832_p12 = scmp.lt.s32.totalorder %s4823_s14, %s4823_s14 }
  0x62   : > { %p4826_p9 = pnand %p4824_p8, %p5188_p7  ;;  %p4833_p2 = por %p4832_p12, %p4831_p11 }
  0x64   : > { %p4827_p10 = pneg %p4826_p9 }
  0x66   : > { %p4834_p3 = pnand %p4833_p2, %p4827_p10 }
  0x68   : > { %4837 = shalt.err (!%p4834_p3)
}
  0x69   : > { %4666 = dma.hbm_to_vmem [thread:$0]  (!%p5172_p5), %s5724_s8, 12800, %s416_s16, [#allocation14], %s5071_s13, %s5071_s13, %s5072_s21  }
  0x6a   : > { %s4838_s22 = scalar_lea.hbm %s5726_s10, 512 }
  0x6b   : > { %p4839_p13 = scmp.ne.s32.totalorder %s5726_s10, %s4838_s22  ;;  %p4845_p0 = scmp.lt.u32.totalorder %s4838_s22, %s5726_s10 }
  0x6d   : > { %p4841_p2 = pnand %p4839_p13, %p5188_p7 }
  0x6f   : > { %p4842_p3 = pneg %p4841_p2 }
  0x71   : > { %p4847_p1 = pnand %p4845_p0, %p4842_p3 }
  0x73   : > { %4850 = shalt.err (!%p4847_p1)
}
  0x74   : > { %s4851_s16 = scalar_lea.vmem %s5261_s19, 512  ;;  %p4859_p9 = scmp.lt.s32.totalorder %s5261_s19, %s5261_s19 }
  0x75   : > { %p4852_p4 = scmp.ne.s32.totalorder %s5261_s19, %s4851_s16  ;;  %p4860_p10 = scmp.lt.s32.totalorder %s4851_s16, %s4851_s16 }
  0x77   : > { %p4854_p6 = pnand %p4852_p4, %p5188_p7  ;;  %p4861_p11 = por %p4860_p10, %p4859_p9 }
  0x79   : > { %p4855_p8 = pneg %p4854_p6 }
  0x7b   : > { %p4862_p12 = pnand %p4861_p11, %p4855_p8 }
  0x7d   : > { %4865 = shalt.err (!%p4862_p12)
}
  0x7e   : > { %4672 = dma.hbm_to_vmem [thread:$0]  (!%p5172_p5), %s5726_s10, 512, %s5261_s19, [#allocation17], %s5071_s13, %s5071_s13, %s5072_s21  }
  0x7f   : > { %s5075_s15 = smov [#allocation2]   ;;  %s5076_s20 = smov [#allocation6]  }
  0x80   : > { %s328_s17 = sshll.u32 %s5075_s15, 4  ;;  %s355_s22 = sshll.u32 %s5076_s20, 4  ;;  %s329_s17 = int_to_ptr.vmem [resolvable:$true] %s328_s17  ;;  %s5310_s22 = int_to_ptr.vmem [resolvable:$true] %s355_s22 }
  0x81   : > { %s5740_s1 = sld [smem:[#allocation26_spill]] }
  0x87   : > { %s4866_s27 = scalar_lea.hbm %s5740_s1, 1280 }
  0x88   : > { %p4867_p13 = scmp.ne.s32.totalorder %s5740_s1, %s4866_s27  ;;  %p4873_p0 = scmp.lt.u32.totalorder %s4866_s27, %s5740_s1 }
  0x8a   : > { %p4869_p2 = pnand %p4867_p13, %p5188_p7 }
  0x8c   : > { %p4870_p3 = pneg %p4869_p2 }
  0x8e   : > { %p4875_p1 = pnand %p4873_p0, %p4870_p3 }
  0x90   : > { %4878 = shalt.err (!%p4875_p1)
}
  0x91   : > { %s4879_s29 = scalar_lea.vmem %s329_s17, 1280  ;;  %p4887_p9 = scmp.lt.s32.totalorder %s329_s17, %s329_s17 }
  0x92   : > { %p4880_p4 = scmp.ne.s32.totalorder %s329_s17, %s4879_s29  ;;  %p4888_p10 = scmp.lt.s32.totalorder %s4879_s29, %s4879_s29 }
  0x94   : > { %p4882_p6 = pnand %p4880_p4, %p5188_p7  ;;  %p4889_p11 = por %p4888_p10, %p4887_p9 }
  0x96   : > { %p4883_p8 = pneg %p4882_p6 }
  0x98   : > { %p4890_p12 = pnand %p4889_p11, %p4883_p8 }
  0x9a   : > { %4893 = shalt.err (!%p4890_p12)
}
  0x9b   : > { %4645 = dma.hbm_to_vmem [thread:$0]  (!%p5172_p5), %s5740_s1, 1280, %s329_s17, [#allocation3], %s5071_s13, %s5071_s13, %s5072_s21  }
  0x9c   : > { %s4894_s27 = scalar_lea.hbm %s5719_s3, 32 }
  0x9d   : > { %p4895_p13 = scmp.ne.s32.totalorder %s5719_s3, %s4894_s27  ;;  %p4901_p0 = scmp.lt.u32.totalorder %s4894_s27, %s5719_s3 }
  0x9f   : > { %p4897_p2 = pnand %p4895_p13, %p5188_p7 }
  0xa1   : > { %p4898_p3 = pneg %p4897_p2 }
  0xa3   : > { %p4903_p1 = pnand %p4901_p0, %p4898_p3 }
  0xa5   : > { %4906 = shalt.err (!%p4903_p1)
}
  0xa6   : > { %s4907_s13 = scalar_lea.vmem %s5310_s22, 32  ;;  %p4915_p9 = scmp.lt.s32.totalorder %s5310_s22, %s5310_s22 }
  0xa7   : > { %p4908_p4 = scmp.ne.s32.totalorder %s5310_s22, %s4907_s13  ;;  %p4916_p10 = scmp.lt.s32.totalorder %s4907_s13, %s4907_s13 }
  0xa9   : > { %p4910_p6 = pnand %p4908_p4, %p5188_p7  ;;  %p4917_p11 = por %p4916_p10, %p4915_p9 }
  0xab   : > { %p4911_p8 = pneg %p4910_p6 }
  0xad   : > { %p4918_p12 = pnand %p4917_p11, %p4911_p8 }
  0xaf   : > { %4921 = shalt.err (!%p4918_p12)
}
  0xb0   : > { %4651 = dma.hbm_to_vmem [thread:$0]  (!%p5172_p5), %s5719_s3, 32, %s5310_s22, [#allocation5]  }
  0xb1   : > { %s5077_s29 = smov [#allocation9]   ;;  %s5078_s20 = smov [#allocation12]  }
  0xb2   : > { %s378_s15 = sshll.u32 %s5077_s29, 4  ;;  %s402_s23 = sshll.u32 %s5078_s20, 4  ;;  %s379_s15 = int_to_ptr.vmem [resolvable:$true] %s378_s15  ;;  %s5356_s23 = int_to_ptr.vmem [resolvable:$true] %s402_s23 }
  0xb3   : > { %s4922_s30 = scalar_lea.hbm %s5721_s5, 35840 }
  0xb4   : > { %p4923_p13 = scmp.ne.s32.totalorder %s5721_s5, %s4922_s30  ;;  %p4929_p0 = scmp.lt.u32.totalorder %s4922_s30, %s5721_s5 }
  0xb6   : > { %p4925_p2 = pnand %p4923_p13, %p5188_p7 }
  0xb8   : > { %p4926_p3 = pneg %p4925_p2 }
  0xba   : > { %p4931_p1 = pnand %p4929_p0, %p4926_p3 }
  0xbc   : > { %4934 = shalt.err (!%p4931_p1)
}
  0xbd   : > { %s4935_s13 = scalar_lea.vmem %s379_s15, 35840  ;;  %p4943_p9 = scmp.lt.s32.totalorder %s379_s15, %s379_s15 }
  0xbe   : > { %p4936_p4 = scmp.ne.s32.totalorder %s379_s15, %s4935_s13  ;;  %p4944_p10 = scmp.lt.s32.totalorder %s4935_s13, %s4935_s13 }
  0xc0   : > { %p4938_p6 = pnand %p4936_p4, %p5188_p7  ;;  %p4945_p11 = por %p4944_p10, %p4943_p9 }
  0xc2   : > { %p4939_p8 = pneg %p4938_p6 }
  0xc4   : > { %p4946_p12 = pnand %p4945_p11, %p4939_p8 }
  0xc6   : > { %4949 = shalt.err (!%p4946_p12)
}
  0xc7   : > { %s5741_s21 = smov 16   ;;  %s5742_s17 = smov 256  }
  0xc8   : > { %4657 = dma.hbm_to_vmem [thread:$0]  (!%p5172_p5), %s5721_s5, 35840, %s379_s15, [#allocation8], %s5742_s17, %s5742_s17, %s5741_s21  }
  0xc9   : > { %s4950_s30 = scalar_lea.hbm %s5723_s7, 80 }
  0xca   : > { %p4951_p13 = scmp.ne.s32.totalorder %s5723_s7, %s4950_s30  ;;  %p4957_p0 = scmp.lt.u32.totalorder %s4950_s30, %s5723_s7 }
  0xcc   : > { %p4953_p2 = pnand %p4951_p13, %p5188_p7 }
  0xce   : > { %p4954_p3 = pneg %p4953_p2 }
  0xd0   : > { %p4959_p1 = pnand %p4957_p0, %p4954_p3 }
  0xd2   : > { %4962 = shalt.err (!%p4959_p1)
}
  0xd3   : > { %s4963_s15 = scalar_lea.vmem %s5356_s23, 80  ;;  %s4970_s13 = scalar_lea.vmem %s5356_s23, 96 }
  0xd4   : > { %p4964_p4 = scmp.ne.s32.totalorder %s5356_s23, %s4963_s15  ;;  %p4971_p9 = scmp.lt.s32.totalorder %s5356_s23, %s5356_s23 }
  0xd5   : > { %p4972_p10 = scmp.lt.s32.totalorder %s4970_s13, %s4963_s15 }
  0xd6   : > { %p4966_p6 = pnand %p4964_p4, %p5188_p7 }
  0xd7   : > { %p4973_p11 = por %p4972_p10, %p4971_p9 }
  0xd8   : > { %p4967_p8 = pneg %p4966_p6 }
  0xda   : > { %p4974_p12 = pnand %p4973_p11, %p4967_p8 }
  0xdc   : > { %4977 = shalt.err (!%p4974_p12)
}
  0xdd   : > { %s5079_s17 = smov 1   ;;  %s5080_s28 = smov [#allocation15]  }
  0xde   : > { %4663 = dma.hbm_to_vmem [thread:$0]  (!%p5172_p5), %s5723_s7, 80, %s5356_s23, [#allocation11], %s5741_s21, %s5741_s21, %s5079_s17  }
  0xdf   : > { %s429_s27 = sshll.u32 %s5080_s28, 4  ;;  %s5081_s30 = smov [#allocation18]   ;;  %s430_s27 = int_to_ptr.vmem [resolvable:$true] %s429_s27 }
  0xe0   : > { %s453_s16 = sshll.u32 %s5081_s30, 4  ;;  %s4978_s22 = scalar_lea.hbm %s5725_s9, 16  ;;  %s454_s16 = int_to_ptr.vmem [resolvable:$true] %s453_s16 }
  0xe1   : > { %p4979_p13 = scmp.ne.s32.totalorder %s5725_s9, %s4978_s22  ;;  %p4985_p0 = scmp.lt.u32.totalorder %s4978_s22, %s5725_s9 }
  0xe3   : > { %p4981_p2 = pnand %p4979_p13, %p5188_p7 }
  0xe5   : > { %p4982_p3 = pneg %p4981_p2 }
  0xe7   : > { %p4987_p1 = pnand %p4985_p0, %p4982_p3 }
  0xe9   : > { %4990 = shalt.err (!%p4987_p1)
}
  0xea   : > { %s4991_s23 = scalar_lea.vmem %s430_s27, 16  ;;  %s4998_s21 = scalar_lea.vmem %s430_s27, 32 }
  0xeb   : > { %p4992_p4 = scmp.ne.s32.totalorder %s430_s27, %s4991_s23  ;;  %p4999_p9 = scmp.lt.s32.totalorder %s430_s27, %s430_s27 }
  0xec   : > { %p5000_p10 = scmp.lt.s32.totalorder %s4998_s21, %s4991_s23 }
  0xed   : > { %p4994_p6 = pnand %p4992_p4, %p5188_p7 }
  0xee   : > { %p5001_p11 = por %p5000_p10, %p4999_p9 }
  0xef   : > { %p4995_p8 = pneg %p4994_p6 }
  0xf1   : > { %p5002_p12 = pnand %p5001_p11, %p4995_p8 }
  0xf3   : > { %5005 = shalt.err (!%p5002_p12)
}
  0xf4   : > { %4669 = dma.hbm_to_vmem [thread:$0]  (!%p5172_p5), %s5725_s9, 16, %s430_s27, [#allocation14]  }
  0xf5   : > { %s5006_s30 = scalar_lea.hbm %s5727_s11, 16 }
  0xf6   : > { %p5007_p13 = scmp.ne.s32.totalorder %s5727_s11, %s5006_s30  ;;  %p5013_p0 = scmp.lt.u32.totalorder %s5006_s30, %s5727_s11 }
  0xf8   : > { %p5009_p2 = pnand %p5007_p13, %p5188_p7 }
  0xfa   : > { %p5010_p3 = pneg %p5009_p2 }
  0xfc   : > { %p5015_p1 = pnand %p5013_p0, %p5010_p3 }
  0xfe   : > { %5018 = shalt.err (!%p5015_p1)
}
  0xff   : > { %s5019_s13 = scalar_lea.vmem %s454_s16, 16  ;;  %s5026_s27 = scalar_lea.vmem %s454_s16, 32 }
 0x100   : > { %p5020_p4 = scmp.ne.s32.totalorder %s454_s16, %s5019_s13  ;;  %p5027_p9 = scmp.lt.s32.totalorder %s454_s16, %s454_s16 }
 0x101   : > { %p5028_p10 = scmp.lt.s32.totalorder %s5026_s27, %s5019_s13 }
 0x102   : > { %p5022_p6 = pnand %p5020_p4, %p5188_p7 }
 0x103   : > { %p5029_p11 = por %p5028_p10, %p5027_p9 }
 0x104   : > { %p5023_p8 = pneg %p5022_p6 }
 0x106   : > { %p5030_p12 = pnand %p5029_p11, %p5023_p8 }
 0x108   : > { %5033 = shalt.err (!%p5030_p12)
}
 0x109   : > { %4675 = dma.hbm_to_vmem [thread:$0]  (!%p5172_p5), %s5727_s11, 16, %s454_s16, [#allocation17]  }
 0x10a   : > { %p5743_p13 = scmp.ne.s32.totalorder %s5737_s25, 0 }
 0x10b   : > { %p5744_p2 = scmp.eq.s32.totalorder (!%p5743_p13), %s5157_s24, 0 }
 0x10c   : > { %474 = sbr.rel (%p5743_p13) target bundleno = 3506 (0xdb2), region = 68 }
 0x113   : > { %5039 = dma.done.wait (%p5744_p2), [#allocation3], 1280   ;;  %p5745_p7 = pmov %p5744_p2 }
 0x114   : > { %p5746_p3 = pmov %p5744_p2 }
 0x115   : > { %5041 = vsyncadd (%p5745_p7), [#allocation3], 4294966016 }
 0x116   : > { %5043 = dma.done.wait (%p5746_p3), [#allocation5], 15392   ;;  %p5747_p0 = pmov %p5744_p2 }
 0x118   : > { %5045 = vsyncadd (%p5747_p0), [#allocation5], 4294951904  ;;  %p5748_p1 = pmov %p5747_p0 }
 0x119   : > { %p5749_p5 = pmov %p5747_p0 }
 0x11a   : > { %5047 = dma.done.wait (%p5748_p1), [#allocation8], 36480  }
 0x11b   : > { %5049 = vsyncadd (%p5749_p5), [#allocation8], 4294930816  ;;  %p5750_p4 = pmov %p5747_p0 }
 0x11c   : > { %p5751_p6 = pmov %p5747_p0 }
 0x11d   : > { %5051 = dma.done.wait (%p5750_p4), [#allocation11], 112  }
 0x11e   : > { %5053 = vsyncadd (%p5751_p6), [#allocation11], 4294967184  ;;  %p5752_p8 = pmov %p5747_p0 }
 0x11f   : > { %p5753_p9 = pmov %p5747_p0 }
 0x120   : > { %5055 = dma.done.wait (%p5752_p8), [#allocation14], 12816  }
 0x121   : > { %5057 = vsyncadd (%p5753_p9), [#allocation14], 4294954480  ;;  %p5754_p10 = pmov %p5747_p0 }
 0x122   : > { %p5755_p11 = pmov %p5747_p0 }
 0x123   : > { %5059 = dma.done.wait (%p5754_p10), [#allocation17], 528  }
 0x124   : > { %5061 = vsyncadd (%p5755_p11), [#allocation17], 4294966768  ;;  %p555_p12 = scmp.lt.s32.totalorder %s5157_s24, 1  ;;  %vm571_vm0 = vcmask 261120   ;;  %v569_v5 = vld [vmem:[#allocation2] sm:$0xff]  ;;  %v654_v7 = vld [vmem:[#allocation4 + $0x8] sm:$0xff] }
 0x125   : > { %3875 = vmatprep.mubr.msk.f32.mxu0 %vm571_vm0, %v569_v5  ;;  %v656_v8 = vld [vmem:[#allocation4 + $0x18] sm:$0xff]  ;;  %v653_v9 = vld [vmem:[#allocation4] sm:$0xff]  ;;  %v655_v10 = vld [vmem:[#allocation4 + $0x10] sm:$0xff]  ;;  %v5082_v55 = vmov 0.0   ;;  %vm677_vm1 = vcmask 785408   ;;  %vm1570_vm2 = vcmask 1045504  }
 0x126   : > { %s5760_s24 = smov (!%p555_p12, %s5157_s24), 1  ;;  %v3941_v11 = vpack.c.bf16 %v656_v8, %v654_v7  ;;  %v3943_v12 = vpack.c.bf16 %v655_v10, %v653_v9  ;;  %v658_v13 = vld [vmem:[#allocation4 + $0x28] sm:$0xff]  ;;  %v660_v14 = vld [vmem:[#allocation4 + $0x38] sm:$0xff]  ;;  %v657_v15 = vld [vmem:[#allocation4 + $0x20] sm:$0xff]  ;;  %748 = vmatprep.mubr.f32.mxu1 %v5082_v55  ;;  %vm5083_vm3 = vmmov 1   ;;  %vm1566_vm5 = vcmask 113664  }
 0x127   : > { %s3831_s25 = sshll.u32 %s5760_s24, 5  ;;  %v3945_v16 = vpack.c.bf16 %v660_v14, %v658_v13  ;;  %v659_v17 = vld [vmem:[#allocation4 + $0x30] sm:$0xff]  ;;  %v662_v18 = vld [vmem:[#allocation4 + $0x48] sm:$0xff]  ;;  %v664_v19 = vld [vmem:[#allocation4 + $0x58] sm:$0xff]  ;;  %vm2635_vm6 = vcmask 1044480   ;;  %vm2631_vm7 = vcmask 39936  }
 0x128   : > { %s559_s16 = scalar_lea.vmem %s5716_s0, %s3831_s25  ;;  %v570_v20 = vld [vmem:[#allocation2 + $0x8] sm:$0x3f]  ;;  %3942 = vmatprep.subr.bf16.mxu1 %v3941_v11  ;;  %v777_v21 = vld [vmem:[#allocation2 + $0x10] sm:$0xff]  ;;  %v3947_v22 = vpack.c.bf16 %v659_v17, %v657_v15  ;;  %v3949_v23 = vpack.c.bf16 %v664_v19, %v662_v18  ;;  %v663_v25 = vld [vmem:[#allocation4 + $0x50] sm:$0xff]  ;;  %vm5085_vm8 = vmmov 0   ;;  %s3767_s21 = sshll.u32 %s5760_s24, 3 }
 0x129   : > { %v564_v0 = vld [vmem:[%s559_s16] sm:$0xff]  ;;  %v565_v1 = vld [vmem:[%s559_s16 + $0x8] sm:$0xff]  ;;  %v566_v2 = vld [vmem:[%s559_s16 + $0x10] sm:$0xff]  ;;  %3944 = vmatpush1.bf16.msra.mxu1 %v3943_v12  ;;  %s563_s1 = scalar_lea.vmem %s5728_s12, %s3767_s21 }
 0x12a   : > { %v5475_v3 = vpack.c.bf16 %v565_v1, %v564_v0  ;;  %v567_v4 = vld [vmem:[%s559_s16 + $0x18] sm:$0xff]  ;;  %3946 = vmatprep.subr.bf16.mxu1 %v3945_v16  ;;  %v661_v24 = vld [vmem:[#allocation4 + $0x40] sm:$0xff]  ;;  %v668_v27 = vld [vmem:[#allocation4 + $0x78] sm:$0xff] }
 0x12b   : > { %v5477_v6 = vpack.c.bf16 %v567_v4, %v566_v2  ;;  %v666_v26 = vld [vmem:[#allocation4 + $0x68] sm:$0xff]  ;;  %v3951_v28 = vpack.c.bf16 %v663_v25, %v661_v24  ;;  %v665_v30 = vld [vmem:[#allocation4 + $0x60] sm:$0xff]  ;;  %v667_v31 = vld [vmem:[#allocation4 + $0x70] sm:$0xff] }
 0x12c   : > { %3934 = vmatprep.subr.bf16.mxu0 %v5475_v3  ;;  %v3953_v29 = vpack.c.bf16 %v668_v27, %v666_v26  ;;  %v670_v32 = vld [vmem:[#allocation4 + $0x88] sm:$0xff]  ;;  %v672_v33 = vld [vmem:[#allocation4 + $0x98] sm:$0xff]  ;;  %v973_v35 = vld [vmem:[#allocation2 + $0x20] sm:$0xff]  ;;  %v3955_v36 = vpack.c.bf16 %v667_v31, %v665_v30 }
 0x12d   : > { %3936 = vmatpush3.bf16.msra.mxu0 %v5475_v3  ;;  %3948 = vmatpush1.bf16.msra.mxu1 %v3947_v22  ;;  %v778_v34 = vld [vmem:[#allocation2 + $0x18] sm:$0x3f]  ;;  %v3957_v37 = vpack.c.bf16 %v672_v33, %v670_v32  ;;  %v669_v38 = vld [vmem:[#allocation4 + $0x80] sm:$0xff]  ;;  %v671_v39 = vld [vmem:[#allocation4 + $0x90] sm:$0xff] }
 0x12e   : > { %3938 = vmatprep.subr.bf16.mxu0 %v5477_v6  ;;  %3950 = vmatprep.subr.bf16.mxu1 %v3949_v23  ;;  %v674_v40 = vld [vmem:[#allocation4 + $0xa8] sm:$0xff]  ;;  %v676_v41 = vld [vmem:[#allocation4 + $0xb8] sm:$0xff]  ;;  %v3959_v42 = vpack.c.bf16 %v671_v39, %v669_v38  ;;  %v673_v44 = vld [vmem:[#allocation4 + $0xa0] sm:$0xff] }
 0x12f   : > { %v3961_v43 = vpack.c.bf16 %v676_v41, %v674_v40  ;;  %v675_v45 = vld [vmem:[#allocation4 + $0xb0] sm:$0xff]  ;;  %v974_v46 = vld [vmem:[#allocation2 + $0x28] sm:$0x3f]  ;;  %v1169_v47 = vld [vmem:[#allocation2 + $0x30] sm:$0xff] }
 0x130   : > { %v3963_v48 = vpack.c.bf16 %v675_v45, %v673_v44  ;;  %v1170_v49 = vld [vmem:[#allocation2 + $0x38] sm:$0x3f]  ;;  %v1365_v50 = vld [vmem:[#allocation2 + $0x40] sm:$0xff]  ;;  %v1366_v51 = vld [vmem:[#allocation2 + $0x48] sm:$0x3f] }
 0x131   : > { %3940 = vmatpush3.bf16.msra.mxu0 %v5477_v6  ;;  %3952 = vmatpush1.bf16.msra.mxu1 %v3951_v28  ;;  %v862_v52 = vld [vmem:[#allocation4 + $0xc8] sm:$0xff]  ;;  %v864_v53 = vld [vmem:[#allocation4 + $0xd8] sm:$0xff]  ;;  %v861_v56 = vld [vmem:[#allocation4 + $0xc0] sm:$0xff] }
 0x132   : > { %3966 = vmatprep.subr.bf16.mxu0 %v5475_v3  ;;  %3954 = vmatprep.subr.bf16.mxu1 %v3953_v29  ;;  %v3973_v54 = vpack.c.bf16 %v864_v53, %v862_v52  ;;  %v863_v57 = vld [vmem:[#allocation4 + $0xd0] sm:$0xff]  ;;  %v866_v58 = vld [vmem:[#allocation4 + $0xe8] sm:$0xff]  ;;  %v868_v59 = vld [vmem:[#allocation4 + $0xf8] sm:$0xff] }
 0x133   : > { %v3975_v60 = vpack.c.bf16 %v863_v57, %v861_v56  ;;  %v3977_v62 = vpack.c.bf16 %v868_v59, %v866_v58  ;;  %v865_v63 = vld [vmem:[#allocation4 + $0xe0] sm:$0xff]  ;;  %v867_v0 = vld [vmem:[#allocation4 + $0xf0] sm:$0xff]  ;;  %v870_v2 = vld [vmem:[#allocation4 + $0x108] sm:$0xff] }
 0x134   : > { %3876 = vmatmul.mubr.msk.f32.vlgmr.msra.gmra.mrb[0].mxu0 %vm571_vm0, %v570_v20  ;;  %v3979_v4 = vpack.c.bf16 %v867_v0, %v865_v63  ;;  %v871_v7 = vld [vmem:[#allocation4 + $0x110] sm:$0xff]  ;;  %v874_v8 = vld [vmem:[#allocation4 + $0x128] sm:$0xff]  ;;  %v876_v9 = vld [vmem:[#allocation4 + $0x138] sm:$0xff] }
 0x135   : > { %3968 = vmatpush3.bf16.msra.mxu0 %v5475_v3  ;;  %3886 = vmatprep.mubr.msk.f32.mxu0 %vm571_vm0, %v777_v21  ;;  %v3985_v11 = vpack.c.bf16 %v876_v9, %v874_v8  ;;  %v873_v12 = vld [vmem:[#allocation4 + $0x120] sm:$0xff]  ;;  %v875_v13 = vld [vmem:[#allocation4 + $0x130] sm:$0xff]  ;;  %v878_v15 = vld [vmem:[#allocation4 + $0x148] sm:$0xff] }
 0x136   : > { %3970 = vmatprep.subr.bf16.mxu0 %v5477_v6  ;;  %3956 = vmatpush1.bf16.msra.mxu1 %v3955_v36  ;;  %v880_v16 = vld [vmem:[#allocation4 + $0x158] sm:$0xff]  ;;  %v3987_v18 = vpack.c.bf16 %v875_v13, %v873_v12  ;;  %v877_v20 = vld [vmem:[#allocation4 + $0x140] sm:$0xff]  ;;  %v879_v21 = vld [vmem:[#allocation4 + $0x150] sm:$0xff] }
 0x137   : > { %3958 = vmatprep.subr.bf16.mxu1 %v3957_v37  ;;  %v3989_v19 = vpack.c.bf16 %v880_v16, %v878_v15  ;;  %v882_v22 = vld [vmem:[#allocation4 + $0x168] sm:$0xff]  ;;  %v884_v23 = vld [vmem:[#allocation4 + $0x178] sm:$0xff]  ;;  %v3991_v24 = vpack.c.bf16 %v879_v21, %v877_v20  ;;  %v881_v26 = vld [vmem:[#allocation4 + $0x160] sm:$0xff] }
 0x138   : > { %v3993_v25 = vpack.c.bf16 %v884_v23, %v882_v22  ;;  %v883_v27 = vld [vmem:[#allocation4 + $0x170] sm:$0xff]  ;;  %v1058_v29 = vld [vmem:[#allocation4 + $0x188] sm:$0xff]  ;;  %v1060_v30 = vld [vmem:[#allocation4 + $0x198] sm:$0xff] }
 0x139   : > { %3972 = vmatpush3.bf16.msra.mxu0 %v5477_v6  ;;  %v3995_v32 = vpack.c.bf16 %v883_v27, %v881_v26  ;;  %v4005_v33 = vpack.c.bf16 %v1060_v30, %v1058_v29  ;;  %v1062_v36 = vld [vmem:[#allocation4 + $0x1a8] sm:$0xff]  ;;  %v1064_v37 = vld [vmem:[#allocation4 + $0x1b8] sm:$0xff]  ;;  %v1061_v40 = vld [vmem:[#allocation4 + $0x1a0] sm:$0xff] }
 0x13a   : > { %3998 = vmatprep.subr.bf16.mxu0 %v5475_v3  ;;  %3960 = vmatpush1.bf16.msra.mxu1 %v3959_v42  ;;  %v4009_v39 = vpack.c.bf16 %v1064_v37, %v1062_v36  ;;  %v1063_v41 = vld [vmem:[#allocation4 + $0x1b0] sm:$0xff]  ;;  %v1068_v44 = vld [vmem:[#allocation4 + $0x1d8] sm:$0xff]  ;;  %v1074_v58 = vld [vmem:[#allocation4 + $0x208] sm:$0xff] }
 0x13b   : > { %3962 = vmatprep.subr.bf16.mxu1 %v3961_v43  ;;  %v1066_v43 = vld [vmem:[#allocation4 + $0x1c8] sm:$0xff]  ;;  %v1071_v56 = vld [vmem:[#allocation4 + $0x1f0] sm:$0xff]  ;;  %v1076_v59 = vld [vmem:[#allocation4 + $0x218] sm:$0xff] }
 0x13c   : > { %3887 = vmatmul.mubr.msk.f32.vlgmr.msra.gmra.mrb[2].mxu0 %vm571_vm0, %v778_v34  ;;  %v1057_v34 = vld [vmem:[#allocation4 + $0x180] sm:$0xff]  ;;  %v1075_v0 = vld [vmem:[#allocation4 + $0x210] sm:$0xff]  ;;  %v1256_v8 = vld [vmem:[#allocation4 + $0x258] sm:$0xff] }
 0x13d   : > { %4000 = vmatpush3.bf16.msra.mxu0 %v5475_v3  ;;  %3897 = vmatprep.mubr.msk.f32.mxu0 %vm571_vm0, %v973_v35  ;;  %v1059_v35 = vld [vmem:[#allocation4 + $0x190] sm:$0xff]  ;;  %v1073_v63 = vld [vmem:[#allocation4 + $0x200] sm:$0xff]  ;;  %v1258_v13 = vld [vmem:[#allocation4 + $0x268] sm:$0xff] }
 0x13e   : > { %4002 = vmatprep.subr.bf16.mxu0 %v5477_v6  ;;  %3964 = vmatpush1.bf16.msra.mxu1 %v3963_v48  ;;  %v4007_v38 = vpack.c.bf16 %v1059_v35, %v1057_v34  ;;  %v1065_v48 = vld [vmem:[#allocation4 + $0x1c0] sm:$0xff]  ;;  %v1255_v12 = vld [vmem:[#allocation4 + $0x250] sm:$0xff]  ;;  %v1264_v20 = vld [vmem:[#allocation4 + $0x298] sm:$0xff] }
 0x13f   : > { %3974 = vmatprep.subr.bf16.mxu1 %v3973_v54  ;;  %v1069_v54 = vld [vmem:[#allocation4 + $0x1e0] sm:$0xff]  ;;  %v1268_v26 = vld [vmem:[#allocation4 + $0x2b8] sm:$0xff]  ;;  %v1271_v37 = vld [vmem:[#allocation4 + $0x2d0] sm:$0xff] }
 0x140   : > { %v1261_v23 = vld [vmem:[#allocation4 + $0x280] sm:$0xff]  ;;  %vm5560_vm4 = vmpackc.low %vm1570_vm2, %vm5083_vm3 }
 0x141   : > { %4004 = vmatpush3.bf16.msra.mxu0 %v5477_v6  ;;  %v1265_v30 = vld [vmem:[#allocation4 + $0x2a0] sm:$0xff] }
 0x142   : > { %4030 = vmatprep.subr.bf16.mxu0 %v5475_v3  ;;  %v1269_v36 = vld [vmem:[#allocation4 + $0x2c0] sm:$0xff] }
 0x144   : > { %3898 = vmatmul.mubr.msk.f32.vlgmr.msra.gmra.mrb[4].mxu0 %vm571_vm0, %v974_v46  ;;  %v4011_v46 = vpack.c.bf16 %v1063_v41, %v1061_v40  ;;  %v1273_v41 = vld [vmem:[#allocation4 + $0x2e0] sm:$0xff] }
 0x145   : > { %4032 = vmatpush3.bf16.msra.mxu0 %v5475_v3  ;;  %3908 = vmatprep.mubr.msk.f32.mxu0 %vm571_vm0, %v1169_v47  ;;  %v4013_v47 = vpack.c.bf16 %v1068_v44, %v1066_v43  ;;  %v1275_v43 = vld [vmem:[#allocation4 + $0x2f0] sm:$0xff]  ;;  %v1450_v44 = vld [vmem:[#allocation4 + $0x308] sm:$0xff] }
 0x146   : > { %4034 = vmatprep.subr.bf16.mxu0 %v5477_v6 }
 0x149   : > { %4036 = vmatpush3.bf16.msra.mxu0 %v5477_v6 }
 0x14a   : > { %4062 = vmatprep.subr.bf16.mxu0 %v5475_v3 }
 0x14c   : > { %3909 = vmatmul.mubr.msk.f32.vlgmr.msra.gmra.mrb[6].mxu0 %vm571_vm0, %v1170_v49  ;;  %v1067_v49 = vld [vmem:[#allocation4 + $0x1d0] sm:$0xff] }
 0x14d   : > { %4064 = vmatpush3.bf16.msra.mxu0 %v5475_v3  ;;  %3919 = vmatprep.mubr.msk.f32.mxu0 %vm571_vm0, %v1365_v50  ;;  %v872_v3 = vld [vmem:[#allocation4 + $0x118] sm:$0xff]  ;;  %v1070_v50 = vld [vmem:[#allocation4 + $0x1e8] sm:$0xff]  ;;  %v4015_v52 = vpack.c.bf16 %v1067_v49, %v1065_v48  ;;  %v1449_v49 = vld [vmem:[#allocation4 + $0x300] sm:$0xff] }
 0x14e   : > { %4066 = vmatprep.subr.bf16.mxu0 %v5477_v6  ;;  %v3981_v5 = vpack.c.bf16 %v872_v3, %v870_v2  ;;  %v1080_v2 = vld [vmem:[#allocation4 + $0x238] sm:$0xff]  ;;  %v4023_v3 = vpack.c.bf16 %v1075_v0, %v1073_v63  ;;  %v1457_v0 = vld [vmem:[#allocation4 + $0x340] sm:$0xff] }
 0x151   : > { %4068 = vmatpush3.bf16.msra.mxu0 %v5477_v6  ;;  %v869_v6 = vld [vmem:[#allocation4 + $0x100] sm:$0xff] }
 0x152   : > { %v3983_v10 = vpack.c.bf16 %v871_v7, %v869_v6  ;;  %v1079_v6 = vld [vmem:[#allocation4 + $0x230] sm:$0xff]  ;;  %v1254_v7 = vld [vmem:[#allocation4 + $0x248] sm:$0xff] }
 0x154   : > { %3920 = vmatmul.mubr.msk.f32.vlgmr.msra.gmra.mrb[8].mxu0 %vm571_vm0, %v1366_v51  ;;  %v1072_v51 = vld [vmem:[#allocation4 + $0x1f8] sm:$0xff] }
 0x155   : > { %1641 = vmatprep.mubr.f32.mxu0 %v5082_v55  ;;  %v4017_v53 = vpack.c.bf16 %v1072_v51, %v1070_v50  ;;  %v1451_v50 = vld [vmem:[#allocation4 + $0x310] sm:$0xff]  ;;  %v1454_v51 = vld [vmem:[#allocation4 + $0x328] sm:$0xff] }
 0x207   : > { %v3877_v61 = vpop.f32.mrb[0].mxu0 }
 0x208   : > { %v644_v1 = vpop.f32.mrb[1].mxu0 }
 0x209   : > { %3770 = vmatmul.mubr.msk.f32.vlgmr.msra.gmra.mrb[0].mxu1 %vm677_vm1, %v644_v1  ;;  %v1078_v1 = vld [vmem:[#allocation4 + $0x228] sm:$0xff] }
 0x20a   : > { %3976 = vmatpush1.bf16.msra.mxu1 %v3975_v60  ;;  %754 = vmatprep.mubr.f32.mxu1 %v5082_v55 }
 0x20b   : > { %3978 = vmatprep.subr.bf16.mxu1 %v3977_v62  ;;  %v4021_v62 = vpack.c.bf16 %v1076_v59, %v1074_v58  ;;  %v1455_v58 = vld [vmem:[#allocation4 + $0x330] sm:$0xff]  ;;  %v1458_v59 = vld [vmem:[#allocation4 + $0x348] sm:$0xff] }
 0x20d   : > { %3771 = vmatmul.mubr.msk.f32.gmra.mrb[2].mxu1 %vm677_vm1, %v3877_v61  ;;  %v4019_v61 = vpack.c.bf16 %v1071_v56, %v1069_v54  ;;  %v1453_v56 = vld [vmem:[#allocation4 + $0x320] sm:$0xff] }
 0x20e   : > { %3980 = vmatpush1.bf16.msra.mxu1 %v3979_v4  ;;  %955 = vmatprep.mubr.f32.mxu1 %v5082_v55  ;;  %v4025_v4 = vpack.c.bf16 %v1080_v2, %v1078_v1  ;;  %v1459_v1 = vld [vmem:[#allocation4 + $0x350] sm:$0xff]  ;;  %v1462_v2 = vld [vmem:[#allocation4 + $0x368] sm:$0xff] }
 0x20f   : > { %3982 = vmatprep.subr.bf16.mxu1 %v3981_v5  ;;  %v3888_v14 = vpop.f32.mrb[2].mxu0  ;;  %v1077_v5 = vld [vmem:[#allocation4 + $0x220] sm:$0xff] }
 0x210   : > { %v851_v17 = vpop.f32.mrb[3].mxu0  ;;  %v4027_v9 = vpack.c.bf16 %v1079_v6, %v1077_v5  ;;  %v1463_v6 = vld [vmem:[#allocation4 + $0x370] sm:$0xff] }
 0x212   : > { %3984 = vmatpush1.bf16.msra.mxu1 %v3983_v10  ;;  %v4037_v10 = vpack.c.bf16 %v1256_v8, %v1254_v7  ;;  %v1466_v7 = vld [vmem:[#allocation4 + $0x388] sm:$0xff]  ;;  %v1468_v8 = vld [vmem:[#allocation4 + $0x398] sm:$0xff] }
 0x213   : > { %3986 = vmatprep.subr.bf16.mxu1 %v3985_v11  ;;  %v1253_v11 = vld [vmem:[#allocation4 + $0x240] sm:$0xff] }
 0x214   : > { %v4039_v15 = vpack.c.bf16 %v1255_v12, %v1253_v11  ;;  %v1465_v11 = vld [vmem:[#allocation4 + $0x380] sm:$0xff]  ;;  %v1467_v12 = vld [vmem:[#allocation4 + $0x390] sm:$0xff] }
 0x216   : > { %3988 = vmatpush1.bf16.msra.mxu1 %v3987_v18  ;;  %v1259_v18 = vld [vmem:[#allocation4 + $0x270] sm:$0xff] }
 0x217   : > { %3990 = vmatprep.subr.bf16.mxu1 %v3989_v19  ;;  %v5515_v28 = vpop.f32.mrb[4].mxu0  ;;  %v1262_v19 = vld [vmem:[#allocation4 + $0x288] sm:$0xff] }
 0x218   : > { %v5517_v31 = vpop.f32.mrb[5].mxu0  ;;  %v4045_v22 = vpack.c.bf16 %v1264_v20, %v1262_v19  ;;  %v762_v19 = vlaneseq }
 0x21a   : > { %3992 = vmatpush1.bf16.msra.mxu1 %v3991_v24  ;;  %v1263_v24 = vld [vmem:[#allocation4 + $0x290] sm:$0xff]  ;;  %v5549_v20 = vshrl.u32 %v762_v19, 7  ;;  %v1674_v19 = vld [vmem:[#allocation9 + $0xd0] sm:$0xff] }
 0x21b   : > { %3994 = vmatprep.subr.bf16.mxu1 %v3993_v25  ;;  %v1266_v25 = vld [vmem:[#allocation4 + $0x2a8] sm:$0xff]  ;;  %v4047_v27 = vpack.c.bf16 %v1263_v24, %v1261_v23 }
 0x21c   : > { %v4049_v29 = vpack.c.bf16 %v1268_v26, %v1266_v25  ;;  %v768_v23 = vsub.s32 1, %v5549_v20 }
 0x21e   : > { %3996 = vmatpush1.bf16.msra.mxu1 %v3995_v32  ;;  %v1270_v32 = vld [vmem:[#allocation4 + $0x2c8] sm:$0xff] }
 0x21f   : > { %4006 = vmatprep.subr.bf16.mxu1 %v4005_v33  ;;  %v5519_v42 = vpop.f32.mrb[6].mxu0  ;;  %v1272_v33 = vld [vmem:[#allocation4 + $0x2d8] sm:$0xff] }
 0x220   : > { %v5521_v45 = vpop.f32.mrb[7].mxu0  ;;  %v4053_v35 = vpack.c.bf16 %v1272_v33, %v1270_v32 }
 0x221   : > { %3774 = vmatmul.mubr.msk.f32.vlgmr.msra.gmra.mrb[0].mxu1 %vm677_vm1, %v851_v17  ;;  %v1257_v17 = vld [vmem:[#allocation4 + $0x260] sm:$0xff] }
 0x222   : > { %4008 = vmatpush1.bf16.msra.mxu1 %v4007_v38  ;;  %961 = vmatprep.mubr.f32.mxu1 %v5082_v55  ;;  %v4043_v21 = vpack.c.bf16 %v1259_v18, %v1257_v17  ;;  %v1274_v38 = vld [vmem:[#allocation4 + $0x2e8] sm:$0xff]  ;;  %v1471_v17 = vld [vmem:[#allocation4 + $0x3b0] sm:$0xff] }
 0x223   : > { %4010 = vmatprep.subr.bf16.mxu1 %v4009_v39  ;;  %v1276_v39 = vld [vmem:[#allocation4 + $0x2f8] sm:$0xff] }
 0x224   : > { %v4057_v40 = vpack.c.bf16 %v1276_v39, %v1274_v38 }
 0x225   : > { %3775 = vmatmul.mubr.msk.f32.gmra.mrb[2].mxu1 %vm677_vm1, %v3888_v14  ;;  %v1260_v14 = vld [vmem:[#allocation4 + $0x278] sm:$0xff] }
 0x226   : > { %4012 = vmatpush1.bf16.msra.mxu1 %v4011_v46  ;;  %1151 = vmatprep.mubr.f32.mxu1 %v5082_v55  ;;  %v4041_v16 = vpack.c.bf16 %v1260_v14, %v1258_v13  ;;  %v1452_v46 = vld [vmem:[#allocation4 + $0x318] sm:$0xff]  ;;  %v1470_v13 = vld [vmem:[#allocation4 + $0x3a8] sm:$0xff] }
 0x227   : > { %4014 = vmatprep.subr.bf16.mxu1 %v4013_v47  ;;  %v5527_v57 = vpop.f32.mrb[8].mxu0  ;;  %v4059_v47 = vpack.c.bf16 %v1275_v43, %v1273_v41  ;;  %v4069_v48 = vpack.c.bf16 %v1452_v46, %v1450_v44  ;;  %v1472_v14 = vld [vmem:[#allocation4 + $0x3b8] sm:$0xff]  ;;  %v1648_v43 = vld [vmem:[#allocation9] sm:$0xff] }
 0x228   : > { %v5529_v60 = vpop.f32.mrb[9].mxu0  ;;  %v1650_v44 = vld [vmem:[#allocation9 + $0x10] sm:$0xff]  ;;  %v1653_v46 = vld [vmem:[#allocation9 + $0x28] sm:$0xff] }
 0x22a   : > { %4016 = vmatpush1.bf16.msra.mxu1 %v4015_v52  ;;  %v1456_v52 = vld [vmem:[#allocation4 + $0x338] sm:$0xff] }
 0x22b   : > { %4018 = vmatprep.subr.bf16.mxu1 %v4017_v53  ;;  %v4071_v53 = vpack.c.bf16 %v1451_v50, %v1449_v49  ;;  %v4073_v54 = vpack.c.bf16 %v1456_v52, %v1454_v51  ;;  %v4101_v49 = vpack.c.bf16 %v1650_v44, %v1648_v43  ;;  %v1652_v51 = vld [vmem:[#allocation9 + $0x20] sm:$0xff]  ;;  %v1654_v52 = vld [vmem:[#allocation9 + $0x30] sm:$0xff]  ;;  %v1689_v43 = vld [vmem:[#allocation9 + $0x148] sm:$0xff] }
 0x22c   : > { %v1691_v44 = vld [vmem:[#allocation9 + $0x158] sm:$0xff] }
 0x22e   : > { %4020 = vmatpush1.bf16.msra.mxu1 %v4019_v61  ;;  %v1460_v61 = vld [vmem:[#allocation4 + $0x358] sm:$0xff] }
 0x22f   : > { %4022 = vmatprep.subr.bf16.mxu1 %v4021_v62  ;;  %v4075_v62 = vpack.c.bf16 %v1455_v58, %v1453_v56  ;;  %v4077_v63 = vpack.c.bf16 %v1460_v61, %v1458_v59  ;;  %v4105_v56 = vpack.c.bf16 %v1654_v52, %v1652_v51  ;;  %v1656_v59 = vld [vmem:[#allocation9 + $0x40] sm:$0xff]  ;;  %v1658_v61 = vld [vmem:[#allocation9 + $0x50] sm:$0xff]  ;;  %v1695_v51 = vld [vmem:[#allocation9 + $0x178] sm:$0xff] }
 0x232   : > { %4024 = vmatpush1.bf16.msra.mxu1 %v4023_v3  ;;  %v1464_v3 = vld [vmem:[#allocation4 + $0x378] sm:$0xff] }
 0x233   : > { %4026 = vmatprep.subr.bf16.mxu1 %v4025_v4  ;;  %v4079_v4 = vpack.c.bf16 %v1459_v1, %v1457_v0  ;;  %v4081_v5 = vpack.c.bf16 %v1464_v3, %v1462_v2  ;;  %v4109_v0 = vpack.c.bf16 %v1658_v61, %v1656_v59  ;;  %v1660_v2 = vld [vmem:[#allocation9 + $0x60] sm:$0xff]  ;;  %v1662_v3 = vld [vmem:[#allocation9 + $0x70] sm:$0xff]  ;;  %v1699_v59 = vld [vmem:[#allocation9 + $0x198] sm:$0xff] }
 0x236   : > { %4028 = vmatpush1.bf16.msra.mxu1 %v4027_v9 }
 0x237   : > { %4038 = vmatprep.subr.bf16.mxu1 %v4037_v10  ;;  %v4085_v10 = vpack.c.bf16 %v1468_v8, %v1466_v7  ;;  %v1664_v7 = vld [vmem:[#allocation9 + $0x80] sm:$0xff]  ;;  %v1666_v8 = vld [vmem:[#allocation9 + $0x90] sm:$0xff] }
 0x239   : > { %3778 = vmatmul.mubr.msk.f32.vlgmr.msra.gmra.mrb[0].mxu1 %vm677_vm1, %v5517_v31  ;;  %v1267_v31 = vld [vmem:[#allocation4 + $0x2b0] sm:$0xff] }
 0x23a   : > { %4040 = vmatpush1.bf16.msra.mxu1 %v4039_v15  ;;  %1157 = vmatprep.mubr.f32.mxu1 %v5082_v55  ;;  %v4051_v34 = vpack.c.bf16 %v1267_v31, %v1265_v30  ;;  %v4089_v15 = vpack.c.bf16 %v1472_v14, %v1470_v13  ;;  %v1668_v13 = vld [vmem:[#allocation9 + $0xa0] sm:$0xff]  ;;  %v1670_v14 = vld [vmem:[#allocation9 + $0xb0] sm:$0xff] }
 0x23b   : > { %4042 = vmatprep.subr.bf16.mxu1 %v4041_v16  ;;  %v1469_v16 = vld [vmem:[#allocation4 + $0x3a0] sm:$0xff] }
 0x23c   : > { %v4091_v18 = vpack.c.bf16 %v1471_v17, %v1469_v16  ;;  %v4121_v16 = vpack.c.bf16 %v1670_v14, %v1668_v13  ;;  %v1870_v13 = vld [vmem:[#allocation9 + $0x1d0] sm:$0xff]  ;;  %v1873_v14 = vld [vmem:[#allocation9 + $0x1e8] sm:$0xff] }
 0x23d   : > { %3779 = vmatmul.mubr.msk.f32.gmra.mrb[2].mxu1 %vm677_vm1, %v5515_v28  ;;  %v4055_v28 = vpack.c.bf16 %v1271_v37, %v1269_v36  ;;  %v1651_v36 = vld [vmem:[#allocation9 + $0x18] sm:$0xff] }
 0x23e   : > { %4044 = vmatpush1.bf16.msra.mxu1 %v4043_v21  ;;  %1347 = vmatprep.mubr.f32.mxu1 %v5082_v55  ;;  %v5552_v21 = vsub.s32 0, %v5549_v20  ;;  %v2716_v20 = vld [vmem:[#allocation13 + $0x18] sm:$0xff] }
 0x23f   : > { %4046 = vmatprep.subr.bf16.mxu1 %v4045_v22  ;;  %v568_v22 = vld [vmem:[#allocation6] sm:$0x3] }
 0x240   : > { %v765_v24 = vrot.slane %v568_v22, %v5552_v21 }
 0x242   : > { %4048 = vmatpush1.bf16.msra.mxu1 %v4047_v27 }
 0x243   : > { %4050 = vmatprep.subr.bf16.mxu1 %v4049_v29 }
 0x246   : > { %4052 = vmatpush1.bf16.msra.mxu1 %v4051_v34 }
 0x247   : > { %4054 = vmatprep.subr.bf16.mxu1 %v4053_v35  ;;  %v1649_v35 = vld [vmem:[#allocation9 + $0x8] sm:$0xff] }
 0x248   : > { %v4099_v41 = vpack.c.bf16 %v1651_v36, %v1649_v35  ;;  %v1687_v35 = vld [vmem:[#allocation9 + $0x138] sm:$0xff] }
 0x24a   : > { %4056 = vmatpush1.bf16.msra.mxu1 %v4055_v28  ;;  %v2299_v28 = vld [vmem:[#allocation9 + $0x5a8] sm:$0xff] }
 0x24b   : > { %4058 = vmatprep.subr.bf16.mxu1 %v4057_v40 }
 0x24e   : > { %4060 = vmatpush1.bf16.msra.mxu1 %v4059_v47  ;;  %v1655_v47 = vld [vmem:[#allocation9 + $0x38] sm:$0xff] }
 0x24f   : > { %4070 = vmatprep.subr.bf16.mxu1 %v4069_v48  ;;  %v1565_v48 = vld [vmem:[#allocation7] sm:$0x1f]  ;;  %v4103_v50 = vpack.c.bf16 %v1655_v47, %v1653_v46  ;;  %v4139_v47 = vpack.c.bf16 %v1691_v44, %v1689_v43  ;;  %v1889_v43 = vld [vmem:[#allocation9 + $0x268] sm:$0xff] }
 0x250   : > { %v1891_v44 = vld [vmem:[#allocation9 + $0x278] sm:$0xff] }
 0x251   : > { %3782 = vmatmul.mubr.msk.f32.vlgmr.msra.gmra.mrb[0].mxu1 %vm677_vm1, %v5521_v45  ;;  %v1461_v45 = vld [vmem:[#allocation4 + $0x360] sm:$0xff] }
 0x252   : > { %4072 = vmatpush1.bf16.msra.mxu1 %v4071_v53  ;;  %1353 = vmatprep.mubr.f32.mxu1 %v5082_v55  ;;  %v4083_v9 = vpack.c.bf16 %v1463_v6, %v1461_v45  ;;  %v1657_v53 = vld [vmem:[#allocation9 + $0x48] sm:$0xff]  ;;  %v4113_v45 = vpack.c.bf16 %v1662_v3, %v1660_v2  ;;  %v1703_v2 = vld [vmem:[#allocation9 + $0x1b8] sm:$0xff] }
 0x253   : > { %4074 = vmatprep.subr.bf16.mxu1 %v4073_v54  ;;  %v1659_v54 = vld [vmem:[#allocation9 + $0x58] sm:$0xff] }
 0x254   : > { %v4107_v58 = vpack.c.bf16 %v1659_v54, %v1657_v53  ;;  %v1692_v54 = vld [vmem:[#allocation9 + $0x160] sm:$0xff] }
 0x255   : > { %3783 = vmatmul.mubr.msk.f32.gmra.mrb[2].mxu1 %vm677_vm1, %v5519_v42  ;;  %v4087_v42 = vpack.c.bf16 %v1467_v12, %v1465_v11  ;;  %v4117_v11 = vpack.c.bf16 %v1666_v8, %v1664_v7  ;;  %v1869_v7 = vld [vmem:[#allocation9 + $0x1c8] sm:$0xff]  ;;  %v1871_v8 = vld [vmem:[#allocation9 + $0x1d8] sm:$0xff] }
 0x256   : > { %4076 = vmatpush1.bf16.msra.mxu1 %v4075_v62  ;;  %1543 = vmatprep.mubr.f32.mxu1 %v5082_v55  ;;  %v1661_v62 = vld [vmem:[#allocation9 + $0x68] sm:$0xff] }
 0x257   : > { %4078 = vmatprep.subr.bf16.mxu1 %v4077_v63  ;;  %v1663_v63 = vld [vmem:[#allocation9 + $0x78] sm:$0xff] }
 0x258   : > { %v4111_v1 = vpack.c.bf16 %v1663_v63, %v1661_v62  ;;  %v1696_v63 = vld [vmem:[#allocation9 + $0x180] sm:$0xff] }
 0x25a   : > { %4080 = vmatpush1.bf16.msra.mxu1 %v4079_v4  ;;  %v1665_v4 = vld [vmem:[#allocation9 + $0x88] sm:$0xff] }
 0x25b   : > { %4082 = vmatprep.subr.bf16.mxu1 %v4081_v5  ;;  %v1667_v5 = vld [vmem:[#allocation9 + $0x98] sm:$0xff] }
 0x25c   : > { %v4115_v6 = vpack.c.bf16 %v1667_v5, %v1665_v4  ;;  %v1700_v5 = vld [vmem:[#allocation9 + $0x1a0] sm:$0xff] }
 0x25e   : > { %4084 = vmatpush1.bf16.msra.mxu1 %v4083_v9  ;;  %v1669_v9 = vld [vmem:[#allocation9 + $0xa8] sm:$0xff] }
 0x25f   : > { %4086 = vmatprep.subr.bf16.mxu1 %v4085_v10  ;;  %v1671_v10 = vld [vmem:[#allocation9 + $0xb8] sm:$0xff] }
 0x260   : > { %v4119_v12 = vpack.c.bf16 %v1671_v10, %v1669_v9 }
 0x262   : > { %4088 = vmatpush1.bf16.msra.mxu1 %v4087_v42  ;;  %v1673_v42 = vld [vmem:[#allocation9 + $0xc8] sm:$0xff] }
 0x263   : > { %4090 = vmatprep.subr.bf16.mxu1 %v4089_v15  ;;  %v1675_v15 = vld [vmem:[#allocation9 + $0xd8] sm:$0xff] }
 0x264   : > { %v4123_v17 = vpack.c.bf16 %v1675_v15, %v1673_v42  ;;  %v1875_v42 = vld [vmem:[#allocation9 + $0x1f8] sm:$0xff]  ;;  %v1792_v15 = vld [vmem:[#allocation7 + $0x8] sm:$0x1f] }
 0x266   : > { %4092 = vmatpush1.bf16.msra.mxu1 %v4091_v18  ;;  %v1672_v18 = vld [vmem:[#allocation9 + $0xc0] sm:$0xff] }
 0x269   : > { %3786 = vmatmul.mubr.msk.f32.vlgmr.msra.gmra.mrb[0].mxu1 %vm677_vm1, %v5529_v60  ;;  %v769_v60 = vrot.slane %v568_v22, %v768_v23  ;;  %v1677_v22 = vld [vmem:[#allocation9 + $0xe8] sm:$0xff] }
 0x26a   : > { %1549 = vmatprep.mubr.f32.mxu1 %v5082_v55 }
 0x26d   : > { %3787 = vmatmul.mubr.msk.f32.gmra.mrb[2].mxu1 %vm677_vm1, %v5527_v57 }
 0x26e   : > { %2487 = vmatprep.mubr.f32.mxu1 %v5082_v55 }
 0x33c   : > { %v1545_v25 = vpop.f32.mrb[0].mxu1 }
 0x33d   : > { %v1547_v26 = vpop.f32.mrb[1].mxu1  ;;  %v4559_v27 = vadd.f32 %v1545_v25, %v765_v24  ;;  %v4125_v25 = vpack.c.bf16 %v1674_v19, %v1672_v18  ;;  %v1872_v18 = vld [vmem:[#allocation9 + $0x1e0] sm:$0xff]  ;;  %v1874_v19 = vld [vmem:[#allocation9 + $0x1f0] sm:$0xff] }
 0x33e   : > { %v4560_v57 = vadd.f32 %v1547_v26, %v769_v60  ;;  %v1676_v26 = vld [vmem:[#allocation9 + $0xe0] sm:$0xff] }
 0x33f   : > { %v1560_v33 = vmax.f32 %v4559_v27, 0.0  ;;  %v1678_v27 = vld [vmem:[#allocation9 + $0xf0] sm:$0xff] }
 0x340   : > { %v1551_v29 = vpop.f32.mrb[2].mxu1  ;;  %v1561_v37 = vmax.f32 %v4560_v57, 0.0  ;;  %v1681_v57 = vld [vmem:[#allocation9 + $0x108] sm:$0xff] }
 0x341   : > { %v4561_v30 = vadd.f32 %v1551_v29, %v765_v24  ;;  %v1553_v31 = vpop.f32.mrb[3].mxu1  ;;  %v1679_v24 = vld [vmem:[#allocation9 + $0xf8] sm:$0xff] }
 0x342   : > { %v4562_v32 = vadd.f32 %v1553_v31, %v769_v60  ;;  %v4127_v60 = vpack.c.bf16 %v1679_v24, %v1677_v22  ;;  %v1683_v29 = vld [vmem:[#allocation9 + $0x118] sm:$0xff]  ;;  %v1877_v22 = vld [vmem:[#allocation9 + $0x208] sm:$0xff] }
 0x343   : > { %v1562_v34 = vmax.f32 %v4561_v30, 0.0  ;;  %v4129_v30 = vpack.c.bf16 %v1678_v27, %v1676_v26  ;;  %v4131_v31 = vpack.c.bf16 %v1683_v29, %v1681_v57  ;;  %v1879_v24 = vld [vmem:[#allocation9 + $0x218] sm:$0xff]  ;;  %v1876_v26 = vld [vmem:[#allocation9 + $0x200] sm:$0xff]  ;;  %v1878_v27 = vld [vmem:[#allocation9 + $0x210] sm:$0xff] }
 0x344   : > { %v1563_v38 = vmax.f32 %v4562_v32, 0.0  ;;  %v1680_v32 = vld [vmem:[#allocation9 + $0x100] sm:$0xff]  ;;  %v1881_v57 = vld [vmem:[#allocation9 + $0x228] sm:$0xff]  ;;  %v1883_v29 = vld [vmem:[#allocation9 + $0x238] sm:$0xff] }
 0x345   : > { %v5558_v39 = vpack.c.bf16 %v1562_v34, %v1560_v33  ;;  %v1682_v33 = vld [vmem:[#allocation9 + $0x110] sm:$0xff]  ;;  %v1685_v34 = vld [vmem:[#allocation9 + $0x128] sm:$0xff] }
 0x346   : > { %v5564_v40 = vpack.c.bf16 %v1563_v38, %v1561_v37  ;;  %v4133_v36 = vpack.c.bf16 %v1682_v33, %v1680_v32  ;;  %v4135_v37 = vpack.c.bf16 %v1687_v35, %v1685_v34  ;;  %v1684_v38 = vld [vmem:[#allocation9 + $0x120] sm:$0xff]  ;;  %v1882_v33 = vld [vmem:[#allocation9 + $0x230] sm:$0xff]  ;;  %v1885_v34 = vld [vmem:[#allocation9 + $0x248] sm:$0xff] }
 0x347   : > { %v1880_v32 = vld [vmem:[#allocation9 + $0x220] sm:$0xff]  ;;  %v1887_v35 = vld [vmem:[#allocation9 + $0x258] sm:$0xff] }
 0x348   : > { %4095 = vmatprep.subr.msk.bf16.mxu0 %vm5560_vm4, %v5564_v40  ;;  %4343 = vmatprep.subr.msk.bf16.mxu1 %vm5560_vm4, %v5564_v40 }
 0x349   : > { %4098 = vmatpush1.bf16.msk.msra.mxu0 %vm5560_vm4, %v5558_v39  ;;  %4346 = vmatpush1.bf16.msk.msra.mxu1 %vm5560_vm4, %v5558_v39 }
 0x34a   : > { %4100 = vmatprep.subr.bf16.mxu0 %v4099_v41  ;;  %v1686_v41 = vld [vmem:[#allocation9 + $0x130] sm:$0xff] }
 0x34b   : > { %v4137_v46 = vpack.c.bf16 %v1686_v41, %v1684_v38  ;;  %v1884_v38 = vld [vmem:[#allocation9 + $0x240] sm:$0xff]  ;;  %v1886_v41 = vld [vmem:[#allocation9 + $0x250] sm:$0xff] }
 0x34c   : > { %3790 = vmatmul.mubr.msk.f32.vlgmr.msra.gmra.mrb[10].mxu0 %vm1566_vm5, %v1565_v48  ;;  %v1688_v48 = vld [vmem:[#allocation9 + $0x140] sm:$0xff] }
 0x34d   : > { %4102 = vmatpush1.bf16.msra.mxu0 %v4101_v49  ;;  %v1690_v49 = vld [vmem:[#allocation9 + $0x150] sm:$0xff] }
 0x34e   : > { %4104 = vmatprep.subr.bf16.mxu0 %v4103_v50  ;;  %v1693_v50 = vld [vmem:[#allocation9 + $0x168] sm:$0xff]  ;;  %v4141_v52 = vpack.c.bf16 %v1690_v49, %v1688_v48  ;;  %v1888_v48 = vld [vmem:[#allocation9 + $0x260] sm:$0xff]  ;;  %v1890_v49 = vld [vmem:[#allocation9 + $0x270] sm:$0xff] }
 0x34f   : > { %v4143_v53 = vpack.c.bf16 %v1695_v51, %v1693_v50  ;;  %v1893_v50 = vld [vmem:[#allocation9 + $0x288] sm:$0xff]  ;;  %v1895_v51 = vld [vmem:[#allocation9 + $0x298] sm:$0xff] }
 0x351   : > { %4106 = vmatpush1.bf16.msra.mxu0 %v4105_v56  ;;  %v1694_v56 = vld [vmem:[#allocation9 + $0x170] sm:$0xff] }
 0x352   : > { %4108 = vmatprep.subr.bf16.mxu0 %v4107_v58  ;;  %v1697_v58 = vld [vmem:[#allocation9 + $0x188] sm:$0xff]  ;;  %v4145_v61 = vpack.c.bf16 %v1694_v56, %v1692_v54  ;;  %v1892_v54 = vld [vmem:[#allocation9 + $0x280] sm:$0xff]  ;;  %v1894_v56 = vld [vmem:[#allocation9 + $0x290] sm:$0xff] }
 0x353   : > { %v4147_v62 = vpack.c.bf16 %v1699_v59, %v1697_v58  ;;  %v1897_v58 = vld [vmem:[#allocation9 + $0x2a8] sm:$0xff]  ;;  %v1899_v59 = vld [vmem:[#allocation9 + $0x2b8] sm:$0xff] }
 0x355   : > { %4110 = vmatpush1.bf16.msra.mxu0 %v4109_v0  ;;  %v1698_v0 = vld [vmem:[#allocation9 + $0x190] sm:$0xff] }
 0x356   : > { %4112 = vmatprep.subr.bf16.mxu0 %v4111_v1  ;;  %v1701_v1 = vld [vmem:[#allocation9 + $0x1a8] sm:$0xff]  ;;  %v4149_v3 = vpack.c.bf16 %v1698_v0, %v1696_v63  ;;  %v1896_v63 = vld [vmem:[#allocation9 + $0x2a0] sm:$0xff]  ;;  %v1898_v0 = vld [vmem:[#allocation9 + $0x2b0] sm:$0xff] }
 0x357   : > { %v4151_v4 = vpack.c.bf16 %v1703_v2, %v1701_v1  ;;  %v1901_v1 = vld [vmem:[#allocation9 + $0x2c8] sm:$0xff]  ;;  %v1903_v2 = vld [vmem:[#allocation9 + $0x2d8] sm:$0xff] }
 0x359   : > { %4114 = vmatpush1.bf16.msra.mxu0 %v4113_v45  ;;  %v1702_v45 = vld [vmem:[#allocation9 + $0x1b0] sm:$0xff] }
 0x35a   : > { %4116 = vmatprep.subr.bf16.mxu0 %v4115_v6  ;;  %v4153_v6 = vpack.c.bf16 %v1702_v45, %v1700_v5  ;;  %v1900_v5 = vld [vmem:[#allocation9 + $0x2c0] sm:$0xff]  ;;  %v1902_v45 = vld [vmem:[#allocation9 + $0x2d0] sm:$0xff] }
 0x35d   : > { %4118 = vmatpush1.bf16.msra.mxu0 %v4117_v11  ;;  %v4161_v11 = vpack.c.bf16 %v1871_v8, %v1869_v7  ;;  %v1907_v7 = vld [vmem:[#allocation9 + $0x2f8] sm:$0xff]  ;;  %v4195_v8 = vpack.c.bf16 %v1902_v45, %v1900_v5  ;;  %v2089_v5 = vld [vmem:[#allocation9 + $0x3e0] sm:$0xff]  ;;  %v2091_v45 = vld [vmem:[#allocation9 + $0x3f0] sm:$0xff] }
 0x35e   : > { %4120 = vmatprep.subr.bf16.mxu0 %v4119_v12  ;;  %v1868_v12 = vld [vmem:[#allocation9 + $0x1c0] sm:$0xff] }
 0x361   : > { %4122 = vmatpush1.bf16.msra.mxu0 %v4121_v16  ;;  %v4163_v16 = vpack.c.bf16 %v1870_v13, %v1868_v12  ;;  %v1909_v12 = vld [vmem:[#allocation9 + $0x308] sm:$0xff]  ;;  %v1911_v13 = vld [vmem:[#allocation9 + $0x318] sm:$0xff] }
 0x362   : > { %4124 = vmatprep.subr.bf16.mxu0 %v4123_v17  ;;  %v4165_v17 = vpack.c.bf16 %v1875_v42, %v1873_v14  ;;  %v4201_v42 = vpack.c.bf16 %v1911_v13, %v1909_v12  ;;  %v2098_v12 = vld [vmem:[#allocation9 + $0x428] sm:$0xff]  ;;  %v2100_v13 = vld [vmem:[#allocation9 + $0x438] sm:$0xff] }
 0x365   : > { %4126 = vmatpush1.bf16.msra.mxu0 %v4125_v25  ;;  %v4167_v25 = vpack.c.bf16 %v1874_v19, %v1872_v18  ;;  %v1915_v18 = vld [vmem:[#allocation9 + $0x338] sm:$0xff] }
 0x366   : > { %4128 = vmatprep.subr.bf16.mxu0 %v4127_v60  ;;  %v4169_v60 = vpack.c.bf16 %v1879_v24, %v1877_v22  ;;  %v1912_v24 = vld [vmem:[#allocation9 + $0x320] sm:$0xff] }
 0x369   : > { %4130 = vmatpush1.bf16.msra.mxu0 %v4129_v30  ;;  %v4171_v30 = vpack.c.bf16 %v1878_v27, %v1876_v26  ;;  %v1919_v26 = vld [vmem:[#allocation9 + $0x358] sm:$0xff] }
 0x36a   : > { %4132 = vmatprep.subr.bf16.mxu0 %v4131_v31  ;;  %v4173_v31 = vpack.c.bf16 %v1883_v29, %v1881_v57  ;;  %v1916_v29 = vld [vmem:[#allocation9 + $0x340] sm:$0xff] }
 0x36d   : > { %4134 = vmatpush1.bf16.msra.mxu0 %v4133_v36  ;;  %v4175_v36 = vpack.c.bf16 %v1882_v33, %v1880_v32  ;;  %v1923_v32 = vld [vmem:[#allocation9 + $0x378] sm:$0xff] }
 0x36e   : > { %4136 = vmatprep.subr.bf16.mxu0 %v4135_v37  ;;  %v4177_v37 = vpack.c.bf16 %v1887_v35, %v1885_v34  ;;  %v1920_v35 = vld [vmem:[#allocation9 + $0x360] sm:$0xff] }
 0x371   : > { %4138 = vmatpush1.bf16.msra.mxu0 %v4137_v46  ;;  %v4179_v46 = vpack.c.bf16 %v1886_v41, %v1884_v38  ;;  %v2078_v38 = vld [vmem:[#allocation9 + $0x388] sm:$0xff]  ;;  %v2080_v41 = vld [vmem:[#allocation9 + $0x398] sm:$0xff] }
 0x372   : > { %4140 = vmatprep.subr.bf16.mxu0 %v4139_v47  ;;  %v4181_v47 = vpack.c.bf16 %v1891_v44, %v1889_v43 }
 0x375   : > { %4142 = vmatpush1.bf16.msra.mxu0 %v4141_v52  ;;  %v4183_v52 = vpack.c.bf16 %v1890_v49, %v1888_v48  ;;  %v2079_v48 = vld [vmem:[#allocation9 + $0x390] sm:$0xff]  ;;  %v2082_v49 = vld [vmem:[#allocation9 + $0x3a8] sm:$0xff] }
 0x376   : > { %4144 = vmatprep.subr.bf16.mxu0 %v4143_v53  ;;  %v4185_v53 = vpack.c.bf16 %v1895_v51, %v1893_v50  ;;  %v2084_v50 = vld [vmem:[#allocation9 + $0x3b8] sm:$0xff]  ;;  %v2001_v51 = vld [vmem:[#allocation7 + $0x10] sm:$0x1f] }
 0x379   : > { %4146 = vmatpush1.bf16.msra.mxu0 %v4145_v61  ;;  %v4187_v61 = vpack.c.bf16 %v1894_v56, %v1892_v54  ;;  %v2081_v54 = vld [vmem:[#allocation9 + $0x3a0] sm:$0xff]  ;;  %v2083_v56 = vld [vmem:[#allocation9 + $0x3b0] sm:$0xff] }
 0x37a   : > { %4148 = vmatprep.subr.bf16.mxu0 %v4147_v62  ;;  %v4189_v62 = vpack.c.bf16 %v1899_v59, %v1897_v58  ;;  %v2086_v58 = vld [vmem:[#allocation9 + $0x3c8] sm:$0xff]  ;;  %v2088_v59 = vld [vmem:[#allocation9 + $0x3d8] sm:$0xff] }
 0x37d   : > { %4150 = vmatpush1.bf16.msra.mxu0 %v4149_v3  ;;  %v4191_v3 = vpack.c.bf16 %v1898_v0, %v1896_v63  ;;  %v2085_v63 = vld [vmem:[#allocation9 + $0x3c0] sm:$0xff]  ;;  %v2087_v0 = vld [vmem:[#allocation9 + $0x3d0] sm:$0xff] }
 0x37e   : > { %4152 = vmatprep.subr.bf16.mxu0 %v4151_v4  ;;  %v4193_v4 = vpack.c.bf16 %v1903_v2, %v1901_v1  ;;  %v2090_v1 = vld [vmem:[#allocation9 + $0x3e8] sm:$0xff]  ;;  %v2092_v2 = vld [vmem:[#allocation9 + $0x3f8] sm:$0xff] }
 0x381   : > { %4154 = vmatpush1.bf16.msra.mxu0 %v4153_v6  ;;  %v1905_v6 = vld [vmem:[#allocation9 + $0x2e8] sm:$0xff] }
 0x382   : > { %4157 = vmatprep.subr.msk.bf16.mxu0 %vm5560_vm4, %v5564_v40 }
 0x41f   : > { %v1643_v9 = vpop.f32.mrb[10].mxu0 }
 0x420   : > { %v1645_v10 = vpop.f32.mrb[11].mxu0 }
 0x421   : > { %3791 = vmatprep.mubr.msk.f32.mxu0 %vm677_vm1, %v1645_v10  ;;  %v1904_v10 = vld [vmem:[#allocation9 + $0x2e0] sm:$0xff] }
 0x422   : > { %1772 = vmatmul.mubr.f32.vlgmr.msra.gmra.mrb[12].mxu0 %v1643_v9  ;;  %v4197_v9 = vpack.c.bf16 %v1907_v7, %v1905_v6  ;;  %v2094_v6 = vld [vmem:[#allocation9 + $0x408] sm:$0xff]  ;;  %v2096_v7 = vld [vmem:[#allocation9 + $0x418] sm:$0xff] }
 0x423   : > { %4160 = vmatpush1.bf16.msk.msra.mxu0 %vm5560_vm4, %v5558_v39  ;;  %1860 = vmatprep.mubr.f32.mxu0 %v5082_v55 }
 0x424   : > { %4162 = vmatprep.subr.bf16.mxu0 %v4161_v11  ;;  %v1906_v11 = vld [vmem:[#allocation9 + $0x2f0] sm:$0xff] }
 0x425   : > { %v4199_v14 = vpack.c.bf16 %v1906_v11, %v1904_v10  ;;  %v2093_v10 = vld [vmem:[#allocation9 + $0x400] sm:$0xff]  ;;  %v2095_v11 = vld [vmem:[#allocation9 + $0x410] sm:$0xff] }
 0x426   : > { %3794 = vmatmul.mubr.msk.f32.vlgmr.msra.gmra.mrb[14].mxu0 %vm1566_vm5, %v1792_v15  ;;  %v1908_v15 = vld [vmem:[#allocation9 + $0x300] sm:$0xff] }
 0x427   : > { %4164 = vmatpush1.bf16.msra.mxu0 %v4163_v16  ;;  %v1910_v16 = vld [vmem:[#allocation9 + $0x310] sm:$0xff] }
 0x428   : > { %4166 = vmatprep.subr.bf16.mxu0 %v4165_v17  ;;  %v1913_v17 = vld [vmem:[#allocation9 + $0x328] sm:$0xff]  ;;  %v4203_v19 = vpack.c.bf16 %v1910_v16, %v1908_v15  ;;  %v2097_v15 = vld [vmem:[#allocation9 + $0x420] sm:$0xff]  ;;  %v2099_v16 = vld [vmem:[#allocation9 + $0x430] sm:$0xff] }
 0x429   : > { %v4205_v22 = vpack.c.bf16 %v1915_v18, %v1913_v17  ;;  %v2102_v17 = vld [vmem:[#allocation9 + $0x448] sm:$0xff]  ;;  %v2104_v18 = vld [vmem:[#allocation9 + $0x458] sm:$0xff] }
 0x42b   : > { %4168 = vmatpush1.bf16.msra.mxu0 %v4167_v25  ;;  %v1914_v25 = vld [vmem:[#allocation9 + $0x330] sm:$0xff] }
 0x42c   : > { %4170 = vmatprep.subr.bf16.mxu0 %v4169_v60  ;;  %v1917_v60 = vld [vmem:[#allocation9 + $0x348] sm:$0xff]  ;;  %v4207_v27 = vpack.c.bf16 %v1914_v25, %v1912_v24  ;;  %v2101_v24 = vld [vmem:[#allocation9 + $0x440] sm:$0xff]  ;;  %v2103_v25 = vld [vmem:[#allocation9 + $0x450] sm:$0xff] }
 0x42d   : > { %v4209_v57 = vpack.c.bf16 %v1919_v26, %v1917_v60  ;;  %v2106_v60 = vld [vmem:[#allocation9 + $0x468] sm:$0xff]  ;;  %v2108_v26 = vld [vmem:[#allocation9 + $0x478] sm:$0xff] }
 0x42f   : > { %4172 = vmatpush1.bf16.msra.mxu0 %v4171_v30  ;;  %v1918_v30 = vld [vmem:[#allocation9 + $0x350] sm:$0xff] }
 0x430   : > { %4174 = vmatprep.subr.bf16.mxu0 %v4173_v31  ;;  %v1921_v31 = vld [vmem:[#allocation9 + $0x368] sm:$0xff]  ;;  %v4211_v33 = vpack.c.bf16 %v1918_v30, %v1916_v29  ;;  %v2105_v29 = vld [vmem:[#allocation9 + $0x460] sm:$0xff]  ;;  %v2107_v30 = vld [vmem:[#allocation9 + $0x470] sm:$0xff] }
 0x431   : > { %v4213_v34 = vpack.c.bf16 %v1923_v32, %v1921_v31  ;;  %v2110_v31 = vld [vmem:[#allocation9 + $0x488] sm:$0xff]  ;;  %v2112_v32 = vld [vmem:[#allocation9 + $0x498] sm:$0xff] }
 0x433   : > { %4176 = vmatpush1.bf16.msra.mxu0 %v4175_v36  ;;  %v1922_v36 = vld [vmem:[#allocation9 + $0x370] sm:$0xff] }
 0x434   : > { %4178 = vmatprep.subr.bf16.mxu0 %v4177_v37  ;;  %v4215_v37 = vpack.c.bf16 %v1922_v36, %v1920_v35  ;;  %v2109_v35 = vld [vmem:[#allocation9 + $0x480] sm:$0xff]  ;;  %v2111_v36 = vld [vmem:[#allocation9 + $0x490] sm:$0xff] }
 0x437   : > { %4180 = vmatpush1.bf16.msra.mxu0 %v4179_v46  ;;  %v4223_v46 = vpack.c.bf16 %v2080_v41, %v2078_v38  ;;  %v2116_v38 = vld [vmem:[#allocation9 + $0x4b8] sm:$0xff]  ;;  %v4257_v41 = vpack.c.bf16 %v2111_v36, %v2109_v35  ;;  %v2303_v35 = vld [vmem:[#allocation9 + $0x5c8] sm:$0xff] }
 0x438   : > { %4182 = vmatprep.subr.bf16.mxu0 %v4181_v47  ;;  %v2077_v47 = vld [vmem:[#allocation9 + $0x380] sm:$0xff]  ;;  %v2305_v36 = vld [vmem:[#allocation9 + $0x5d8] sm:$0xff] }
 0x43b   : > { %4184 = vmatpush1.bf16.msra.mxu0 %v4183_v52  ;;  %v4225_v52 = vpack.c.bf16 %v2079_v48, %v2077_v47  ;;  %v2118_v47 = vld [vmem:[#allocation9 + $0x4c8] sm:$0xff]  ;;  %v2120_v48 = vld [vmem:[#allocation9 + $0x4d8] sm:$0xff] }
 0x43c   : > { %4186 = vmatprep.subr.bf16.mxu0 %v4185_v53  ;;  %v4227_v53 = vpack.c.bf16 %v2084_v50, %v2082_v49  ;;  %v4263_v50 = vpack.c.bf16 %v2120_v48, %v2118_v47 }
 0x43f   : > { %4188 = vmatpush1.bf16.msra.mxu0 %v4187_v61  ;;  %v4229_v61 = vpack.c.bf16 %v2083_v56, %v2081_v54  ;;  %v2124_v54 = vld [vmem:[#allocation9 + $0x4f8] sm:$0xff] }
 0x440   : > { %4190 = vmatprep.subr.bf16.mxu0 %v4189_v62  ;;  %v4231_v62 = vpack.c.bf16 %v2088_v59, %v2086_v58  ;;  %v2121_v59 = vld [vmem:[#allocation9 + $0x4e0] sm:$0xff] }
 0x443   : > { %4192 = vmatpush1.bf16.msra.mxu0 %v4191_v3  ;;  %v4233_v3 = vpack.c.bf16 %v2087_v0, %v2085_v63  ;;  %v2128_v63 = vld [vmem:[#allocation9 + $0x518] sm:$0xff] }
 0x444   : > { %4194 = vmatprep.subr.bf16.mxu0 %v4193_v4  ;;  %v4235_v4 = vpack.c.bf16 %v2092_v2, %v2090_v1  ;;  %v2125_v2 = vld [vmem:[#allocation9 + $0x500] sm:$0xff] }
 0x447   : > { %4196 = vmatpush1.bf16.msra.mxu0 %v4195_v8  ;;  %v4237_v8 = vpack.c.bf16 %v2091_v45, %v2089_v5  ;;  %v2132_v5 = vld [vmem:[#allocation9 + $0x538] sm:$0xff] }
 0x448   : > { %4198 = vmatprep.subr.bf16.mxu0 %v4197_v9  ;;  %v4239_v9 = vpack.c.bf16 %v2096_v7, %v2094_v6  ;;  %v2129_v7 = vld [vmem:[#allocation9 + $0x520] sm:$0xff] }
 0x44b   : > { %4200 = vmatpush1.bf16.msra.mxu0 %v4199_v14  ;;  %v4241_v14 = vpack.c.bf16 %v2095_v11, %v2093_v10  ;;  %v2419_v10 = vld [vmem:[#allocation7 + $0x20] sm:$0x1f]  ;;  %v2287_v11 = vld [vmem:[#allocation9 + $0x548] sm:$0xff] }
 0x44c   : > { %4202 = vmatprep.subr.bf16.mxu0 %v4201_v42  ;;  %v4243_v42 = vpack.c.bf16 %v2100_v13, %v2098_v12  ;;  %3806 = vmatmul.mubr.msk.f32.vlgmr.msra.gmra.mrb[4].mxu1 %vm1566_vm5, %v2419_v10  ;;  %v2289_v12 = vld [vmem:[#allocation9 + $0x558] sm:$0xff] }
 0x44d   : > { %2706 = vmatprep.mubr.f32.mxu1 %v5082_v55 }
 0x44f   : > { %4204 = vmatpush1.bf16.msra.mxu0 %v4203_v19  ;;  %v4245_v19 = vpack.c.bf16 %v2099_v16, %v2097_v15  ;;  %v2286_v15 = vld [vmem:[#allocation9 + $0x540] sm:$0xff]  ;;  %v2288_v16 = vld [vmem:[#allocation9 + $0x550] sm:$0xff] }
 0x450   : > { %4206 = vmatprep.subr.bf16.mxu0 %v4205_v22  ;;  %v4247_v22 = vpack.c.bf16 %v2104_v18, %v2102_v17  ;;  %v2291_v17 = vld [vmem:[#allocation9 + $0x568] sm:$0xff]  ;;  %v2293_v18 = vld [vmem:[#allocation9 + $0x578] sm:$0xff] }
 0x453   : > { %4208 = vmatpush1.bf16.msra.mxu0 %v4207_v27  ;;  %v4249_v27 = vpack.c.bf16 %v2103_v25, %v2101_v24  ;;  %v2290_v24 = vld [vmem:[#allocation9 + $0x560] sm:$0xff]  ;;  %v2292_v25 = vld [vmem:[#allocation9 + $0x570] sm:$0xff] }
 0x454   : > { %4210 = vmatprep.subr.bf16.mxu0 %v4209_v57  ;;  %v4251_v57 = vpack.c.bf16 %v2108_v26, %v2106_v60  ;;  %v2295_v60 = vld [vmem:[#allocation9 + $0x588] sm:$0xff]  ;;  %v2297_v26 = vld [vmem:[#allocation9 + $0x598] sm:$0xff] }
 0x457   : > { %4212 = vmatpush1.bf16.msra.mxu0 %v4211_v33  ;;  %v4253_v33 = vpack.c.bf16 %v2107_v30, %v2105_v29  ;;  %v2294_v29 = vld [vmem:[#allocation9 + $0x580] sm:$0xff]  ;;  %v2296_v30 = vld [vmem:[#allocation9 + $0x590] sm:$0xff] }
 0x458   : > { %4214 = vmatprep.subr.bf16.mxu0 %v4213_v34  ;;  %v4255_v34 = vpack.c.bf16 %v2112_v32, %v2110_v31  ;;  %v4295_v31 = vpack.c.bf16 %v2296_v30, %v2294_v29  ;;  %v2334_v29 = vld [vmem:[#allocation9 + $0x6c0] sm:$0xff]  ;;  %v2336_v30 = vld [vmem:[#allocation9 + $0x6d0] sm:$0xff] }
 0x45b   : > { %4216 = vmatpush1.bf16.msra.mxu0 %v4215_v37  ;;  %v2114_v37 = vld [vmem:[#allocation9 + $0x4a8] sm:$0xff] }
 0x45c   : > { %4219 = vmatprep.subr.msk.bf16.mxu0 %vm5560_vm4, %v5564_v40 }
 0x4f9   : > { %v1862_v43 = vpop.f32.mrb[14].mxu0 }
 0x4fa   : > { %v1864_v44 = vpop.f32.mrb[15].mxu0 }
 0x4fb   : > { %3795 = vmatprep.mubr.msk.f32.mxu0 %vm677_vm1, %v1864_v44  ;;  %v2113_v44 = vld [vmem:[#allocation9 + $0x4a0] sm:$0xff] }
 0x4fc   : > { %1992 = vmatmul.mubr.f32.vlgmr.msra.gmra.mrb[12].mxu0 %v1862_v43  ;;  %v4259_v43 = vpack.c.bf16 %v2116_v38, %v2114_v37  ;;  %v4301_v38 = vpack.c.bf16 %v2305_v36, %v2303_v35  ;;  %v2496_v36 = vld [vmem:[#allocation9 + $0x708] sm:$0xff] }
 0x4fd   : > { %4222 = vmatpush1.bf16.msk.msra.mxu0 %vm5560_vm4, %v5558_v39  ;;  %2069 = vmatprep.mubr.f32.mxu0 %v5082_v55 }
 0x4fe   : > { %4224 = vmatprep.subr.bf16.mxu0 %v4223_v46  ;;  %v2115_v46 = vld [vmem:[#allocation9 + $0x4b0] sm:$0xff] }
 0x4ff   : > { %v4261_v49 = vpack.c.bf16 %v2115_v46, %v2113_v44  ;;  %v2307_v44 = vld [vmem:[#allocation9 + $0x5e8] sm:$0xff]  ;;  %v2309_v46 = vld [vmem:[#allocation9 + $0x5f8] sm:$0xff] }
 0x500   : > { %3798 = vmatmul.mubr.msk.f32.vlgmr.msra.gmra.mrb[16].mxu0 %vm1566_vm5, %v2001_v51  ;;  %v2117_v51 = vld [vmem:[#allocation9 + $0x4c0] sm:$0xff]  ;;  %v4305_v48 = vpack.c.bf16 %v2309_v46, %v2307_v44  ;;  %v2497_v46 = vld [vmem:[#allocation9 + $0x710] sm:$0xff] }
 0x501   : > { %4226 = vmatpush1.bf16.msra.mxu0 %v4225_v52  ;;  %v2119_v52 = vld [vmem:[#allocation9 + $0x4d0] sm:$0xff]  ;;  %v2495_v44 = vld [vmem:[#allocation9 + $0x700] sm:$0xff] }
 0x502   : > { %4228 = vmatprep.subr.bf16.mxu0 %v4227_v53  ;;  %v2122_v53 = vld [vmem:[#allocation9 + $0x4e8] sm:$0xff]  ;;  %v4265_v56 = vpack.c.bf16 %v2119_v52, %v2117_v51  ;;  %v2313_v52 = vld [vmem:[#allocation9 + $0x618] sm:$0xff] }
 0x503   : > { %v4267_v58 = vpack.c.bf16 %v2124_v54, %v2122_v53  ;;  %v2311_v51 = vld [vmem:[#allocation9 + $0x608] sm:$0xff] }
 0x504   : > { %v4309_v54 = vpack.c.bf16 %v2313_v52, %v2311_v51 }
 0x505   : > { %4230 = vmatpush1.bf16.msra.mxu0 %v4229_v61  ;;  %v2123_v61 = vld [vmem:[#allocation9 + $0x4f0] sm:$0xff] }
 0x506   : > { %4232 = vmatprep.subr.bf16.mxu0 %v4231_v62  ;;  %v2126_v62 = vld [vmem:[#allocation9 + $0x508] sm:$0xff]  ;;  %v4269_v0 = vpack.c.bf16 %v2123_v61, %v2121_v59  ;;  %v2317_v61 = vld [vmem:[#allocation9 + $0x638] sm:$0xff] }
 0x507   : > { %v4271_v1 = vpack.c.bf16 %v2128_v63, %v2126_v62  ;;  %v2315_v59 = vld [vmem:[#allocation9 + $0x628] sm:$0xff] }
 0x508   : > { %v4313_v63 = vpack.c.bf16 %v2317_v61, %v2315_v59 }
 0x509   : > { %4234 = vmatpush1.bf16.msra.mxu0 %v4233_v3  ;;  %v2127_v3 = vld [vmem:[#allocation9 + $0x510] sm:$0xff] }
 0x50a   : > { %4236 = vmatprep.subr.bf16.mxu0 %v4235_v4  ;;  %v2130_v4 = vld [vmem:[#allocation9 + $0x528] sm:$0xff]  ;;  %v4273_v45 = vpack.c.bf16 %v2127_v3, %v2125_v2  ;;  %v2321_v3 = vld [vmem:[#allocation9 + $0x658] sm:$0xff] }
 0x50b   : > { %v4275_v6 = vpack.c.bf16 %v2132_v5, %v2130_v4  ;;  %v2319_v2 = vld [vmem:[#allocation9 + $0x648] sm:$0xff] }
 0x50c   : > { %v4317_v5 = vpack.c.bf16 %v2321_v3, %v2319_v2 }
 0x50d   : > { %4238 = vmatpush1.bf16.msra.mxu0 %v4237_v8  ;;  %v2131_v8 = vld [vmem:[#allocation9 + $0x530] sm:$0xff] }
 0x50e   : > { %4240 = vmatprep.subr.bf16.mxu0 %v4239_v9  ;;  %v4277_v9 = vpack.c.bf16 %v2131_v8, %v2129_v7  ;;  %v2323_v7 = vld [vmem:[#allocation9 + $0x668] sm:$0xff]  ;;  %v2325_v8 = vld [vmem:[#allocation9 + $0x678] sm:$0xff] }
 0x50f   : > { %v4321_v10 = vpack.c.bf16 %v2325_v8, %v2323_v7 }
 0x511   : > { %4242 = vmatpush1.bf16.msra.mxu0 %v4241_v14 }
 0x512   : > { %4244 = vmatprep.subr.bf16.mxu0 %v4243_v42  ;;  %v4285_v42 = vpack.c.bf16 %v2289_v12, %v2287_v11  ;;  %v2322_v11 = vld [vmem:[#allocation9 + $0x660] sm:$0xff]  ;;  %v2324_v12 = vld [vmem:[#allocation9 + $0x670] sm:$0xff] }
 0x515   : > { %4246 = vmatpush1.bf16.msra.mxu0 %v4245_v19  ;;  %v4287_v19 = vpack.c.bf16 %v2288_v16, %v2286_v15  ;;  %v2326_v16 = vld [vmem:[#allocation9 + $0x680] sm:$0xff] }
 0x516   : > { %4248 = vmatprep.subr.bf16.mxu0 %v4247_v22  ;;  %v4289_v22 = vpack.c.bf16 %v2293_v18, %v2291_v17  ;;  %v2328_v17 = vld [vmem:[#allocation9 + $0x690] sm:$0xff]  ;;  %v2331_v18 = vld [vmem:[#allocation9 + $0x6a8] sm:$0xff] }
 0x519   : > { %4250 = vmatpush1.bf16.msra.mxu0 %v4249_v27  ;;  %v4291_v27 = vpack.c.bf16 %v2292_v25, %v2290_v24  ;;  %v2330_v24 = vld [vmem:[#allocation9 + $0x6a0] sm:$0xff]  ;;  %v2332_v25 = vld [vmem:[#allocation9 + $0x6b0] sm:$0xff] }
 0x51a   : > { %4252 = vmatprep.subr.bf16.mxu0 %v4251_v57  ;;  %v4293_v57 = vpack.c.bf16 %v2297_v26, %v2295_v60  ;;  %v2335_v60 = vld [vmem:[#allocation9 + $0x6c8] sm:$0xff]  ;;  %v2337_v26 = vld [vmem:[#allocation9 + $0x6d8] sm:$0xff] }
 0x51d   : > { %4254 = vmatpush1.bf16.msra.mxu0 %v4253_v33  ;;  %v2298_v33 = vld [vmem:[#allocation9 + $0x5a0] sm:$0xff] }
 0x51e   : > { %4256 = vmatprep.subr.bf16.mxu0 %v4255_v34  ;;  %v2300_v34 = vld [vmem:[#allocation9 + $0x5b0] sm:$0xff] }
 0x51f   : > { %v4299_v37 = vpack.c.bf16 %v2300_v34, %v2298_v33  ;;  %v2338_v33 = vld [vmem:[#allocation9 + $0x6e0] sm:$0xff]  ;;  %v2340_v34 = vld [vmem:[#allocation9 + $0x6f0] sm:$0xff] }
 0x520   : > { %v4339_v35 = vpack.c.bf16 %v2340_v34, %v2338_v33  ;;  %v2532_v33 = vld [vmem:[#allocation9 + $0x828] sm:$0xff]  ;;  %v2534_v34 = vld [vmem:[#allocation9 + $0x838] sm:$0xff] }
 0x521   : > { %4258 = vmatpush1.bf16.msra.mxu0 %v4257_v41  ;;  %v2302_v41 = vld [vmem:[#allocation9 + $0x5c0] sm:$0xff] }
 0x522   : > { %4260 = vmatprep.subr.bf16.mxu0 %v4259_v43  ;;  %v2304_v43 = vld [vmem:[#allocation9 + $0x5d0] sm:$0xff] }
 0x523   : > { %v4303_v47 = vpack.c.bf16 %v2304_v43, %v2302_v41  ;;  %v5608_v41 = vpop.f32.mrb[4].mxu1 }
 0x524   : > { %v2491_v43 = vpop.f32.mrb[5].mxu1 }
 0x525   : > { %4262 = vmatpush1.bf16.msra.mxu0 %v4261_v49  ;;  %v2306_v49 = vld [vmem:[#allocation9 + $0x5e0] sm:$0xff] }
 0x526   : > { %4264 = vmatprep.subr.bf16.mxu0 %v4263_v50  ;;  %v2308_v50 = vld [vmem:[#allocation9 + $0x5f0] sm:$0xff] }
 0x527   : > { %v4307_v53 = vpack.c.bf16 %v2308_v50, %v2306_v49  ;;  %v4349_v50 = vpack.c.bf16 %v2497_v46, %v2495_v44  ;;  %v2538_v44 = vld [vmem:[#allocation9 + $0x858] sm:$0xff] }
 0x529   : > { %4266 = vmatpush1.bf16.msra.mxu0 %v4265_v56  ;;  %v2310_v56 = vld [vmem:[#allocation9 + $0x600] sm:$0xff] }
 0x52a   : > { %4268 = vmatprep.subr.bf16.mxu0 %v4267_v58  ;;  %v2312_v58 = vld [vmem:[#allocation9 + $0x610] sm:$0xff] }
 0x52b   : > { %v4311_v62 = vpack.c.bf16 %v2312_v58, %v2310_v56  ;;  %v2504_v56 = vld [vmem:[#allocation9 + $0x748] sm:$0xff]  ;;  %v2506_v58 = vld [vmem:[#allocation9 + $0x758] sm:$0xff] }
 0x52c   : > { %v4355_v61 = vpack.c.bf16 %v2506_v58, %v2504_v56  ;;  %v2541_v56 = vld [vmem:[#allocation9 + $0x870] sm:$0xff]  ;;  %v2544_v58 = vld [vmem:[#allocation9 + $0x888] sm:$0xff] }
 0x52d   : > { %4270 = vmatpush1.bf16.msra.mxu0 %v4269_v0  ;;  %v2314_v0 = vld [vmem:[#allocation9 + $0x620] sm:$0xff] }
 0x52e   : > { %4272 = vmatprep.subr.bf16.mxu0 %v4271_v1  ;;  %v2316_v1 = vld [vmem:[#allocation9 + $0x630] sm:$0xff] }
 0x52f   : > { %v4315_v4 = vpack.c.bf16 %v2316_v1, %v2314_v0  ;;  %v2508_v0 = vld [vmem:[#allocation9 + $0x768] sm:$0xff]  ;;  %v2510_v1 = vld [vmem:[#allocation9 + $0x778] sm:$0xff] }
 0x530   : > { %v4359_v3 = vpack.c.bf16 %v2510_v1, %v2508_v0  ;;  %v2545_v0 = vld [vmem:[#allocation9 + $0x890] sm:$0xff]  ;;  %v2548_v1 = vld [vmem:[#allocation9 + $0x8a8] sm:$0xff] }
 0x531   : > { %4274 = vmatpush1.bf16.msra.mxu0 %v4273_v45  ;;  %v2318_v45 = vld [vmem:[#allocation9 + $0x640] sm:$0xff] }
 0x532   : > { %4276 = vmatprep.subr.bf16.mxu0 %v4275_v6  ;;  %v2320_v6 = vld [vmem:[#allocation9 + $0x650] sm:$0xff] }
 0x535   : > { %4278 = vmatpush1.bf16.msra.mxu0 %v4277_v9  ;;  %v4319_v9 = vpack.c.bf16 %v2320_v6, %v2318_v45  ;;  %v2512_v45 = vld [vmem:[#allocation9 + $0x788] sm:$0xff]  ;;  %v2514_v6 = vld [vmem:[#allocation9 + $0x798] sm:$0xff] }
 0x536   : > { %4281 = vmatprep.subr.msk.bf16.mxu0 %vm5560_vm4, %v5564_v40  ;;  %v2210_v40 = vld [vmem:[#allocation7 + $0x18] sm:$0x1f]  ;;  %v4363_v8 = vpack.c.bf16 %v2514_v6, %v2512_v45 }
 0x537   : > { %v2549_v45 = vld [vmem:[#allocation9 + $0x8b0] sm:$0xff] }
 0x5d3   : > { %v2071_v13 = vpop.f32.mrb[16].mxu0 }
 0x5d4   : > { %v2073_v14 = vpop.f32.mrb[17].mxu0 }
 0x5d5   : > { %3799 = vmatprep.mubr.msk.f32.mxu0 %vm677_vm1, %v2073_v14  ;;  %v2329_v14 = vld [vmem:[#allocation9 + $0x698] sm:$0xff] }
 0x5d6   : > { %2201 = vmatmul.mubr.f32.vlgmr.msra.gmra.mrb[12].mxu0 %v2071_v13  ;;  %v2327_v13 = vld [vmem:[#allocation9 + $0x688] sm:$0xff] }
 0x5d7   : > { %4284 = vmatpush1.bf16.msk.msra.mxu0 %vm5560_vm4, %v5558_v39  ;;  %2278 = vmatprep.mubr.f32.mxu0 %v5082_v55  ;;  %v2301_v39 = vld [vmem:[#allocation9 + $0x5b8] sm:$0xff]  ;;  %v4325_v15 = vpack.c.bf16 %v2329_v14, %v2327_v13 }
 0x5d8   : > { %4286 = vmatprep.subr.bf16.mxu0 %v4285_v42  ;;  %v4297_v32 = vpack.c.bf16 %v2301_v39, %v2299_v28  ;;  %v4323_v42 = vpack.c.bf16 %v2324_v12, %v2322_v11  ;;  %v2339_v28 = vld [vmem:[#allocation9 + $0x6e8] sm:$0xff]  ;;  %v2341_v39 = vld [vmem:[#allocation9 + $0x6f8] sm:$0xff] }
 0x5d9   : > { %v2516_v11 = vld [vmem:[#allocation9 + $0x7a8] sm:$0xff]  ;;  %v2518_v12 = vld [vmem:[#allocation9 + $0x7b8] sm:$0xff] }
 0x5da   : > { %3802 = vmatmul.mubr.msk.f32.vlgmr.msra.gmra.mrb[18].mxu0 %vm1566_vm5, %v2210_v40  ;;  %v2333_v40 = vld [vmem:[#allocation9 + $0x6b8] sm:$0xff]  ;;  %v4367_v14 = vpack.c.bf16 %v2518_v12, %v2516_v11 }
 0x5db   : > { %4288 = vmatpush1.bf16.msra.mxu0 %v4287_v19  ;;  %v4327_v19 = vpack.c.bf16 %v2328_v17, %v2326_v16  ;;  %v2520_v16 = vld [vmem:[#allocation9 + $0x7c8] sm:$0xff]  ;;  %v2522_v17 = vld [vmem:[#allocation9 + $0x7d8] sm:$0xff] }
 0x5dc   : > { %4290 = vmatprep.subr.bf16.mxu0 %v4289_v22  ;;  %v4329_v22 = vpack.c.bf16 %v2333_v40, %v2331_v18  ;;  %v4371_v40 = vpack.c.bf16 %v2522_v17, %v2520_v16 }
 0x5df   : > { %4292 = vmatpush1.bf16.msra.mxu0 %v4291_v27  ;;  %v4331_v27 = vpack.c.bf16 %v2332_v25, %v2330_v24  ;;  %v2524_v24 = vld [vmem:[#allocation9 + $0x7e8] sm:$0xff]  ;;  %v2526_v25 = vld [vmem:[#allocation9 + $0x7f8] sm:$0xff] }
 0x5e0   : > { %4294 = vmatprep.subr.bf16.mxu0 %v4293_v57  ;;  %v4333_v57 = vpack.c.bf16 %v2337_v26, %v2335_v60  ;;  %v4375_v26 = vpack.c.bf16 %v2526_v25, %v2524_v24  ;;  %v2719_v25 = vld [vmem:[#allocation13 + $0x30] sm:$0xff] }
 0x5e3   : > { %4296 = vmatpush1.bf16.msra.mxu0 %v4295_v31  ;;  %v4335_v31 = vpack.c.bf16 %v2336_v30, %v2334_v29  ;;  %v2528_v29 = vld [vmem:[#allocation9 + $0x808] sm:$0xff]  ;;  %v2530_v30 = vld [vmem:[#allocation9 + $0x818] sm:$0xff] }
 0x5e4   : > { %4298 = vmatprep.subr.bf16.mxu0 %v4297_v32  ;;  %v4337_v32 = vpack.c.bf16 %v2341_v39, %v2339_v28  ;;  %v4379_v39 = vpack.c.bf16 %v2530_v30, %v2528_v29  ;;  %v2723_v30 = vld [vmem:[#allocation13 + $0x50] sm:$0xff] }
 0x5e7   : > { %4300 = vmatpush1.bf16.msra.mxu0 %v4299_v37  ;;  %v2498_v37 = vld [vmem:[#allocation9 + $0x718] sm:$0xff] }
 0x5e8   : > { %4302 = vmatprep.subr.bf16.mxu0 %v4301_v38  ;;  %v4347_v38 = vpack.c.bf16 %v2498_v37, %v2496_v36  ;;  %v4383_v36 = vpack.c.bf16 %v2534_v34, %v2532_v33  ;;  %v2531_v37 = vld [vmem:[#allocation9 + $0x820] sm:$0xff]  ;;  %v2727_v34 = vld [vmem:[#allocation13 + $0x70] sm:$0xff] }
 0x5eb   : > { %4304 = vmatpush1.bf16.msra.mxu0 %v4303_v47  ;;  %v2500_v47 = vld [vmem:[#allocation9 + $0x728] sm:$0xff] }
 0x5ec   : > { %4306 = vmatprep.subr.bf16.mxu0 %v4305_v48  ;;  %v2502_v48 = vld [vmem:[#allocation9 + $0x738] sm:$0xff] }
 0x5ed   : > { %v4351_v52 = vpack.c.bf16 %v2502_v48, %v2500_v47  ;;  %v2535_v48 = vld [vmem:[#allocation9 + $0x840] sm:$0xff] }
 0x5ef   : > { %4308 = vmatpush1.bf16.msra.mxu0 %v4307_v53  ;;  %v2499_v53 = vld [vmem:[#allocation9 + $0x720] sm:$0xff] }
 0x5f0   : > { %4310 = vmatprep.subr.bf16.mxu0 %v4309_v54  ;;  %v2501_v54 = vld [vmem:[#allocation9 + $0x730] sm:$0xff] }
 0x5f1   : > { %v4353_v59 = vpack.c.bf16 %v2501_v54, %v2499_v53  ;;  %v2539_v54 = vld [vmem:[#allocation9 + $0x860] sm:$0xff] }
 0x5f3   : > { %4312 = vmatpush1.bf16.msra.mxu0 %v4311_v62  ;;  %v2503_v62 = vld [vmem:[#allocation9 + $0x740] sm:$0xff] }
 0x5f4   : > { %4314 = vmatprep.subr.bf16.mxu0 %v4313_v63  ;;  %v2505_v63 = vld [vmem:[#allocation9 + $0x750] sm:$0xff] }
 0x5f5   : > { %v4357_v2 = vpack.c.bf16 %v2505_v63, %v2503_v62  ;;  %v2543_v63 = vld [vmem:[#allocation9 + $0x880] sm:$0xff] }
 0x5f7   : > { %4316 = vmatpush1.bf16.msra.mxu0 %v4315_v4  ;;  %v2507_v4 = vld [vmem:[#allocation9 + $0x760] sm:$0xff] }
 0x5f8   : > { %4318 = vmatprep.subr.bf16.mxu0 %v4317_v5  ;;  %v2509_v5 = vld [vmem:[#allocation9 + $0x770] sm:$0xff] }
 0x5f9   : > { %v4361_v7 = vpack.c.bf16 %v2509_v5, %v2507_v4  ;;  %v2547_v5 = vld [vmem:[#allocation9 + $0x8a0] sm:$0xff] }
 0x5fa   : > { %v4401_v6 = vpack.c.bf16 %v2549_v45, %v2547_v5  ;;  %v2894_v5 = vld [vmem:[#allocation13 + $0xf0] sm:$0xff]  ;;  %v2895_v45 = vld [vmem:[#allocation13 + $0xf8] sm:$0xff] }
 0x5fb   : > { %4320 = vmatpush1.bf16.msra.mxu0 %v4319_v9  ;;  %v2511_v9 = vld [vmem:[#allocation9 + $0x780] sm:$0xff] }
 0x5fc   : > { %4322 = vmatprep.subr.bf16.mxu0 %v4321_v10  ;;  %v2513_v10 = vld [vmem:[#allocation9 + $0x790] sm:$0xff] }
 0x5fd   : > { %v4365_v13 = vpack.c.bf16 %v2513_v10, %v2511_v9 }
 0x5ff   : > { %4324 = vmatpush1.bf16.msra.mxu0 %v4323_v42  ;;  %v2515_v42 = vld [vmem:[#allocation9 + $0x7a0] sm:$0xff] }
 0x600   : > { %4326 = vmatprep.subr.bf16.mxu0 %v4325_v15  ;;  %v2517_v15 = vld [vmem:[#allocation9 + $0x7b0] sm:$0xff] }
 0x601   : > { %v4369_v18 = vpack.c.bf16 %v2517_v15, %v2515_v42  ;;  %v2713_v42 = vld [vmem:[#allocation13] sm:$0xff]  ;;  %v2714_v15 = vld [vmem:[#allocation13 + $0x8] sm:$0xff] }
 0x603   : > { %4328 = vmatpush1.bf16.msra.mxu0 %v4327_v19  ;;  %v2519_v19 = vld [vmem:[#allocation9 + $0x7c0] sm:$0xff] }
 0x604   : > { %4330 = vmatprep.subr.bf16.mxu0 %v4329_v22  ;;  %v2521_v22 = vld [vmem:[#allocation9 + $0x7d0] sm:$0xff] }
 0x605   : > { %v4373_v60 = vpack.c.bf16 %v2521_v22, %v2519_v19  ;;  %v2717_v19 = vld [vmem:[#allocation13 + $0x20] sm:$0xff]  ;;  %v2718_v22 = vld [vmem:[#allocation13 + $0x28] sm:$0xff] }
 0x606   : > { %v4410_v24 = vpack.c.bf16 %v2718_v22, %v2717_v19  ;;  %v3055_v19 = vld [vmem:[#allocation13 + $0x140] sm:$0xff]  ;;  %v3056_v22 = vld [vmem:[#allocation13 + $0x148] sm:$0xff] }
 0x607   : > { %4332 = vmatpush1.bf16.msra.mxu0 %v4331_v27  ;;  %v2523_v27 = vld [vmem:[#allocation9 + $0x7e0] sm:$0xff] }
 0x608   : > { %4334 = vmatprep.subr.bf16.mxu0 %v4333_v57  ;;  %v2525_v57 = vld [vmem:[#allocation9 + $0x7f0] sm:$0xff] }
 0x609   : > { %v4377_v28 = vpack.c.bf16 %v2525_v57, %v2523_v27  ;;  %v2721_v27 = vld [vmem:[#allocation13 + $0x40] sm:$0xff]  ;;  %v2722_v57 = vld [vmem:[#allocation13 + $0x48] sm:$0xff] }
 0x60a   : > { %v4416_v29 = vpack.c.bf16 %v2722_v57, %v2721_v27  ;;  %v3059_v57 = vld [vmem:[#allocation13 + $0x160] sm:$0xff] }
 0x60b   : > { %4336 = vmatpush1.bf16.msra.mxu0 %v4335_v31  ;;  %v2527_v31 = vld [vmem:[#allocation9 + $0x800] sm:$0xff] }
 0x60c   : > { %4338 = vmatprep.subr.bf16.mxu0 %v4337_v32  ;;  %v2529_v32 = vld [vmem:[#allocation9 + $0x810] sm:$0xff] }
 0x60f   : > { %4340 = vmatpush1.bf16.msra.mxu0 %v4339_v35  ;;  %v4381_v35 = vpack.c.bf16 %v2529_v32, %v2527_v31  ;;  %v2725_v31 = vld [vmem:[#allocation13 + $0x60] sm:$0xff]  ;;  %v2726_v32 = vld [vmem:[#allocation13 + $0x68] sm:$0xff] }
 0x610   : > { %4348 = vmatprep.subr.bf16.mxu0 %v4347_v38  ;;  %v2533_v38 = vld [vmem:[#allocation9 + $0x830] sm:$0xff]  ;;  %v4422_v33 = vpack.c.bf16 %v2726_v32, %v2725_v31  ;;  %v3063_v32 = vld [vmem:[#allocation13 + $0x180] sm:$0xff] }
 0x611   : > { %v4385_v46 = vpack.c.bf16 %v2533_v38, %v2531_v37  ;;  %v2729_v37 = vld [vmem:[#allocation13 + $0x80] sm:$0xff]  ;;  %v2730_v38 = vld [vmem:[#allocation13 + $0x88] sm:$0xff] }
 0x6ad   : > { %v2280_v49 = vpop.f32.mrb[18].mxu0 }
 0x6ae   : > { %v2282_v51 = vpop.f32.mrb[19].mxu0 }
 0x6af   : > { %3803 = vmatprep.mubr.msk.f32.mxu0 %vm677_vm1, %v2282_v51  ;;  %v2542_v51 = vld [vmem:[#allocation9 + $0x878] sm:$0xff] }
 0x6b0   : > { %2410 = vmatmul.mubr.f32.vlgmr.msra.gmra.mrb[12].mxu0 %v2280_v49  ;;  %v2537_v49 = vld [vmem:[#allocation9 + $0x850] sm:$0xff] }
 0x6b1   : > { %4350 = vmatpush1.bf16.msra.mxu0 %v4349_v50  ;;  %3807 = vmatprep.mubr.msk.f32.mxu0 %vm677_vm1, %v2491_v43  ;;  %v2536_v43 = vld [vmem:[#allocation9 + $0x848] sm:$0xff] }
 0x6b2   : > { %4352 = vmatprep.subr.bf16.mxu0 %v4351_v52  ;;  %v4387_v47 = vpack.c.bf16 %v2538_v44, %v2536_v43  ;;  %v2540_v50 = vld [vmem:[#allocation9 + $0x868] sm:$0xff]  ;;  %v4389_v52 = vpack.c.bf16 %v2537_v49, %v2535_v48  ;;  %v4428_v43 = vpack.c.bf16 %v2730_v38, %v2729_v37  ;;  %v2731_v44 = vld [vmem:[#allocation13 + $0x90] sm:$0xff] }
 0x6b3   : > { %v4391_v53 = vpack.c.bf16 %v2542_v51, %v2540_v50  ;;  %v2884_v50 = vld [vmem:[#allocation13 + $0xa0] sm:$0xff]  ;;  %v2885_v51 = vld [vmem:[#allocation13 + $0xa8] sm:$0xff] }
 0x6b4   : > { %v3067_v38 = vld [vmem:[#allocation13 + $0x1a0] sm:$0xff] }
 0x6b5   : > { %4354 = vmatpush1.bf16.msra.mxu0 %v4353_v59  ;;  %v2546_v59 = vld [vmem:[#allocation9 + $0x898] sm:$0xff] }
 0x6b6   : > { %4356 = vmatprep.subr.bf16.mxu0 %v4355_v61  ;;  %v4393_v61 = vpack.c.bf16 %v2541_v56, %v2539_v54  ;;  %v4395_v62 = vpack.c.bf16 %v2546_v59, %v2544_v58  ;;  %v2886_v54 = vld [vmem:[#allocation13 + $0xb0] sm:$0xff]  ;;  %v2887_v56 = vld [vmem:[#allocation13 + $0xb8] sm:$0xff]  ;;  %v2888_v59 = vld [vmem:[#allocation13 + $0xc0] sm:$0xff] }
 0x6b7   : > { %v4437_v58 = vpack.c.bf16 %v2887_v56, %v2886_v54 }
 0x6b9   : > { %4358 = vmatpush1.bf16.msra.mxu0 %v4357_v2  ;;  %v2550_v2 = vld [vmem:[#allocation9 + $0x8b8] sm:$0xff] }
 0x6ba   : > { %4360 = vmatprep.subr.bf16.mxu0 %v4359_v3  ;;  %v4397_v3 = vpack.c.bf16 %v2545_v0, %v2543_v63  ;;  %v4399_v4 = vpack.c.bf16 %v2550_v2, %v2548_v1  ;;  %v2890_v63 = vld [vmem:[#allocation13 + $0xd0] sm:$0xff]  ;;  %v2891_v0 = vld [vmem:[#allocation13 + $0xd8] sm:$0xff]  ;;  %v2892_v2 = vld [vmem:[#allocation13 + $0xe0] sm:$0xff] }
 0x6bb   : > { %v4443_v1 = vpack.c.bf16 %v2891_v0, %v2890_v63  ;;  %v3228_v0 = vld [vmem:[#allocation13 + $0x1f0] sm:$0xff] }
 0x6bd   : > { %4362 = vmatpush1.bf16.msra.mxu0 %v4361_v7  ;;  %v5084_v7 = vmov 0.0|0.0  }
 0x6be   : > { %4364 = vmatprep.subr.bf16.mxu0 %v4363_v8  ;;  %v1564_v8 = vld [vmem:[#allocation10] sm:$0x3] }
 0x6bf   : > { %v1782_v9 = vrot.slane %v1564_v8, %v5552_v21  ;;  %v1786_v10 = vrot.slane %v1564_v8, %v768_v23  ;;  %v2896_v8 = vld [vmem:[#allocation13 + $0x100] sm:$0xff] }
 0x6c1   : > { %4366 = vmatpush1.bf16.msra.mxu0 %v4365_v13 }
 0x6c2   : > { %4368 = vmatprep.subr.bf16.mxu0 %v4367_v14 }
 0x6c5   : > { %4370 = vmatpush1.bf16.msra.mxu0 %v4369_v18  ;;  %v4404_v18 = vpack.c.bf16 %v2714_v15, %v2713_v42  ;;  %v2901_v42 = vld [vmem:[#allocation13 + $0x128] sm:$0xff] }
 0x6c6   : > { %4372 = vmatprep.subr.bf16.mxu0 %v4371_v40  ;;  %v2715_v40 = vld [vmem:[#allocation13 + $0x10] sm:$0xff] }
 0x6c7   : > { %v4407_v23 = vpack.c.bf16 %v2716_v20, %v2715_v40 }
 0x6c9   : > { %4374 = vmatpush1.bf16.msra.mxu0 %v4373_v60  ;;  %v2720_v60 = vld [vmem:[#allocation13 + $0x38] sm:$0xff] }
 0x6ca   : > { %4376 = vmatprep.subr.bf16.mxu0 %v4375_v26  ;;  %v4413_v26 = vpack.c.bf16 %v2720_v60, %v2719_v25  ;;  %v4464_v25 = vpack.c.bf16 %v3056_v22, %v3055_v19  ;;  %v3057_v60 = vld [vmem:[#allocation13 + $0x150] sm:$0xff]  ;;  %v3243_v19 = vld [vmem:[#allocation13 + $0x268] sm:$0xff] }
 0x6cd   : > { %4378 = vmatpush1.bf16.msra.mxu0 %v4377_v28  ;;  %v2724_v28 = vld [vmem:[#allocation13 + $0x58] sm:$0xff] }
 0x6ce   : > { %4380 = vmatprep.subr.bf16.mxu0 %v4379_v39  ;;  %v4419_v39 = vpack.c.bf16 %v2724_v28, %v2723_v30  ;;  %v3061_v28 = vld [vmem:[#allocation13 + $0x170] sm:$0xff] }
 0x6d1   : > { %4382 = vmatpush1.bf16.msra.mxu0 %v4381_v35  ;;  %v2728_v35 = vld [vmem:[#allocation13 + $0x78] sm:$0xff] }
 0x6d2   : > { %4384 = vmatprep.subr.bf16.mxu0 %v4383_v36  ;;  %v4425_v36 = vpack.c.bf16 %v2728_v35, %v2727_v34  ;;  %v3065_v35 = vld [vmem:[#allocation13 + $0x190] sm:$0xff] }
 0x6d5   : > { %4386 = vmatpush1.bf16.msra.mxu0 %v4385_v46  ;;  %v2732_v46 = vld [vmem:[#allocation13 + $0x98] sm:$0xff] }
 0x6d6   : > { %4388 = vmatprep.subr.bf16.mxu0 %v4387_v47  ;;  %v4431_v47 = vpack.c.bf16 %v2732_v46, %v2731_v44  ;;  %v3069_v46 = vld [vmem:[#allocation13 + $0x1b0] sm:$0xff] }
 0x6d9   : > { %4390 = vmatpush1.bf16.msra.mxu0 %v4389_v52  ;;  %v2808_v52 = vld [vmem:[#allocation12 + $0x1] sm:$0x1] }
 0x6da   : > { %4392 = vmatprep.subr.bf16.mxu0 %v4391_v53  ;;  %v4434_v53 = vpack.c.bf16 %v2885_v51, %v2884_v50  ;;  %v3072_v50 = vld [vmem:[#allocation13 + $0x1c8] sm:$0xff] }
 0x6dd   : > { %4394 = vmatpush1.bf16.msra.mxu0 %v4393_v61  ;;  %v2889_v61 = vld [vmem:[#allocation13 + $0xc8] sm:$0xff] }
 0x6de   : > { %4396 = vmatprep.subr.bf16.mxu0 %v4395_v62  ;;  %v4440_v62 = vpack.c.bf16 %v2889_v61, %v2888_v59  ;;  %v3226_v59 = vld [vmem:[#allocation13 + $0x1e0] sm:$0xff]  ;;  %v3227_v61 = vld [vmem:[#allocation13 + $0x1e8] sm:$0xff] }
 0x6df   : > { %v4494_v63 = vpack.c.bf16 %v3227_v61, %v3226_v59  ;;  %v3415_v59 = vld [vmem:[#allocation13 + $0x310] sm:$0xff]  ;;  %v3416_v61 = vld [vmem:[#allocation13 + $0x318] sm:$0xff] }
 0x6e1   : > { %4398 = vmatpush1.bf16.msra.mxu0 %v4397_v3  ;;  %v2893_v3 = vld [vmem:[#allocation13 + $0xe8] sm:$0xff] }
 0x6e2   : > { %4400 = vmatprep.subr.bf16.mxu0 %v4399_v4  ;;  %v4446_v4 = vpack.c.bf16 %v2893_v3, %v2892_v2  ;;  %v3230_v3 = vld [vmem:[#allocation13 + $0x200] sm:$0xff] }
 0x6e5   : > { %4402 = vmatpush1.bf16.msra.mxu0 %v4401_v6  ;;  %v4449_v6 = vpack.c.bf16 %v2895_v45, %v2894_v5  ;;  %v3232_v45 = vld [vmem:[#allocation13 + $0x210] sm:$0xff] }
 0x6e6   : > { %4553 = vmatprep.subr.bf16.mxu0 %v5084_v7 }
 0x6e8   : > { %2619 = vmatmul.mubr.f32.vlgmr.msra.gmra.mrb[12].mxu0 %v5608_v41  ;;  %v2630_v41 = vld [vmem:[#allocation12] sm:$0x1] }
 0x6e9   : > { %3930 = vmatprep.mubr.msk.f32.mxu0 %vm5085_vm8, %v5082_v55 }
 0x7bb   : > { %v2620_v11 = vpop.f32.mrb[12].mxu0 }
 0x7bc   : > { %v4563_v12 = vadd.f32 %v2620_v11, %v1782_v9  ;;  %v2622_v13 = vpop.f32.mrb[13].mxu0  ;;  %v2897_v9 = vld [vmem:[#allocation13 + $0x108] sm:$0xff]  ;;  %v2898_v11 = vld [vmem:[#allocation13 + $0x110] sm:$0xff] }
 0x7bd   : > { %v4564_v14 = vadd.f32 %v2622_v13, %v1786_v10  ;;  %v4452_v10 = vpack.c.bf16 %v2897_v9, %v2896_v8  ;;  %v3234_v9 = vld [vmem:[#allocation13 + $0x220] sm:$0xff] }
 0x7be   : > { %v5619_v17 = vmax.f32 %v4563_v12, 0.0  ;;  %v2899_v12 = vld [vmem:[#allocation13 + $0x118] sm:$0xff] }
 0x7bf   : > { %v5617_v16 = vmax.f32 %v4564_v14, 0.0  ;;  %v4455_v13 = vpack.c.bf16 %v2899_v12, %v2898_v11  ;;  %v2900_v14 = vld [vmem:[#allocation13 + $0x120] sm:$0xff]  ;;  %v3236_v12 = vld [vmem:[#allocation13 + $0x230] sm:$0xff] }
 0x7c0   : > { %v4458_v15 = vpack.c.bf16 %v2901_v42, %v2900_v14  ;;  %v3238_v42 = vld [vmem:[#allocation13 + $0x240] sm:$0xff] }
 0x7c1   : > { %3808 = vmatprep.subr.msk.mxu1 %vm2635_vm6, %v5617_v16 }
 0x7c2   : > { %3809 = vmatpush1.msk.msra.mxu1 %vm2635_vm6, %v5619_v17 }
 0x7c3   : > { %3810 = vmatmul.mubr.msk.f32.vlgmr.msra.gmra.mrb[6].mxu1 %vm2631_vm7, %v2630_v41  ;;  %4403 = vmatprep.subr.bf16.mxu1 %v5084_v7  ;;  %v2902_v41 = vld [vmem:[#allocation13 + $0x130] sm:$0xff] }
 0x7c4   : > { %4405 = vmatpush1.bf16.msra.mxu1 %v4404_v18  ;;  %v2903_v18 = vld [vmem:[#allocation13 + $0x138] sm:$0xff] }
 0x7c5   : > { %4406 = vmatprep.subr.bf16.mxu1 %v5084_v7  ;;  %v4461_v40 = vpack.c.bf16 %v2903_v18, %v2902_v41  ;;  %v3240_v18 = vld [vmem:[#allocation13 + $0x250] sm:$0xff] }
 0x7c8   : > { %4408 = vmatpush1.bf16.msra.mxu1 %v4407_v23 }
 0x7c9   : > { %4409 = vmatprep.subr.bf16.mxu1 %v5084_v7 }
 0x7cc   : > { %4411 = vmatpush1.bf16.msra.mxu1 %v4410_v24  ;;  %v2979_v24 = vld [vmem:[#allocation12 + $0x2] sm:$0x1] }
 0x7cd   : > { %4412 = vmatprep.subr.bf16.mxu1 %v5084_v7 }
 0x7d0   : > { %4414 = vmatpush1.bf16.msra.mxu1 %v4413_v26  ;;  %v3058_v26 = vld [vmem:[#allocation13 + $0x158] sm:$0xff] }
 0x7d1   : > { %4415 = vmatprep.subr.bf16.mxu1 %v5084_v7  ;;  %v4467_v27 = vpack.c.bf16 %v3058_v26, %v3057_v60 }
 0x7d4   : > { %4417 = vmatpush1.bf16.msra.mxu1 %v4416_v29  ;;  %v3060_v29 = vld [vmem:[#allocation13 + $0x168] sm:$0xff] }
 0x7d5   : > { %4418 = vmatprep.subr.bf16.mxu1 %v5084_v7  ;;  %v4470_v30 = vpack.c.bf16 %v3060_v29, %v3059_v57  ;;  %v3397_v57 = vld [vmem:[#allocation13 + $0x280] sm:$0xff]  ;;  %v3398_v29 = vld [vmem:[#allocation13 + $0x288] sm:$0xff] }
 0x7d8   : > { %4420 = vmatpush1.bf16.msra.mxu1 %v4419_v39  ;;  %v3062_v39 = vld [vmem:[#allocation13 + $0x178] sm:$0xff] }
 0x7d9   : > { %4421 = vmatprep.subr.bf16.mxu1 %v5084_v7  ;;  %v4473_v31 = vpack.c.bf16 %v3062_v39, %v3061_v28  ;;  %v4524_v28 = vpack.c.bf16 %v3398_v29, %v3397_v57  ;;  %v3399_v39 = vld [vmem:[#allocation13 + $0x290] sm:$0xff] }
 0x7dc   : > { %4423 = vmatpush1.bf16.msra.mxu1 %v4422_v33  ;;  %v3064_v33 = vld [vmem:[#allocation13 + $0x188] sm:$0xff] }
 0x7dd   : > { %4424 = vmatprep.subr.bf16.mxu1 %v5084_v7  ;;  %v4476_v34 = vpack.c.bf16 %v3064_v33, %v3063_v32  ;;  %v3401_v32 = vld [vmem:[#allocation13 + $0x2a0] sm:$0xff]  ;;  %v3402_v33 = vld [vmem:[#allocation13 + $0x2a8] sm:$0xff] }
 0x7e0   : > { %4426 = vmatpush1.bf16.msra.mxu1 %v4425_v36  ;;  %v3066_v36 = vld [vmem:[#allocation13 + $0x198] sm:$0xff] }
 0x7e1   : > { %4427 = vmatprep.subr.bf16.mxu1 %v5084_v7  ;;  %v4479_v37 = vpack.c.bf16 %v3066_v36, %v3065_v35  ;;  %v3404_v35 = vld [vmem:[#allocation13 + $0x2b8] sm:$0xff] }
 0x7e4   : > { %4429 = vmatpush1.bf16.msra.mxu1 %v4428_v43  ;;  %v3068_v43 = vld [vmem:[#allocation13 + $0x1a8] sm:$0xff] }
 0x7e5   : > { %4430 = vmatprep.subr.bf16.mxu1 %v5084_v7  ;;  %v4482_v44 = vpack.c.bf16 %v3068_v43, %v3067_v38  ;;  %v3406_v38 = vld [vmem:[#allocation13 + $0x2c8] sm:$0xff] }
 0x7e8   : > { %4432 = vmatpush1.bf16.msra.mxu1 %v4431_v47  ;;  %v3070_v47 = vld [vmem:[#allocation13 + $0x1b8] sm:$0xff] }
 0x7e9   : > { %3812 = vmatprep.subr.msk.mxu1 %vm2635_vm6, %v5617_v16 }
 0x896   : > { %v2708_v48 = vpop.f32.mrb[6].mxu1 }
 0x897   : > { %v2710_v49 = vpop.f32.mrb[7].mxu1 }
 0x898   : > { %3811 = vmatprep.mubr.msk.f32.mxu1 %vm571_vm0, %v2710_v49  ;;  %v3071_v49 = vld [vmem:[#allocation13 + $0x1c0] sm:$0xff] }
 0x899   : > { %2801 = vmatmul.mubr.f32.vlgmr.msra.gmra.mrb[8].mxu1 %v2708_v48  ;;  %v4485_v48 = vpack.c.bf16 %v3070_v47, %v3069_v46  ;;  %v4488_v51 = vpack.c.bf16 %v3072_v50, %v3071_v49  ;;  %v3408_v46 = vld [vmem:[#allocation13 + $0x2d8] sm:$0xff]  ;;  %v3410_v49 = vld [vmem:[#allocation13 + $0x2e8] sm:$0xff] }
 0x89a   : > { %3813 = vmatpush1.msk.msra.mxu1 %vm2635_vm6, %v5619_v17  ;;  %2876 = vmatprep.mubr.f32.mxu1 %v5082_v55 }
 0x89b   : > { %4433 = vmatprep.subr.bf16.mxu1 %v5084_v7 }
 0x89d   : > { %3814 = vmatmul.mubr.msk.f32.vlgmr.msra.gmra.mrb[10].mxu1 %vm2631_vm7, %v2808_v52  ;;  %v3073_v52 = vld [vmem:[#allocation13 + $0x1d0] sm:$0xff] }
 0x89e   : > { %4435 = vmatpush1.bf16.msra.mxu1 %v4434_v53  ;;  %v3074_v53 = vld [vmem:[#allocation13 + $0x1d8] sm:$0xff] }
 0x89f   : > { %4436 = vmatprep.subr.bf16.mxu1 %v5084_v7  ;;  %v4491_v54 = vpack.c.bf16 %v3074_v53, %v3073_v52  ;;  %v3412_v52 = vld [vmem:[#allocation13 + $0x2f8] sm:$0xff] }
 0x8a2   : > { %4438 = vmatpush1.bf16.msra.mxu1 %v4437_v58 }
 0x8a3   : > { %4439 = vmatprep.subr.bf16.mxu1 %v5084_v7 }
 0x8a6   : > { %4441 = vmatpush1.bf16.msra.mxu1 %v4440_v62  ;;  %v3150_v62 = vld [vmem:[#allocation12 + $0x3] sm:$0x1] }
 0x8a7   : > { %4442 = vmatprep.subr.bf16.mxu1 %v5084_v7 }
 0x8aa   : > { %4444 = vmatpush1.bf16.msra.mxu1 %v4443_v1  ;;  %v3229_v1 = vld [vmem:[#allocation13 + $0x1f8] sm:$0xff] }
 0x8ab   : > { %4445 = vmatprep.subr.bf16.mxu1 %v5084_v7  ;;  %v4497_v2 = vpack.c.bf16 %v3229_v1, %v3228_v0  ;;  %v3494_v0 = vld [vmem:[#allocation16 + $0x8] sm:$0xff] }
 0x8ae   : > { %4447 = vmatpush1.bf16.msra.mxu1 %v4446_v4  ;;  %v3231_v4 = vld [vmem:[#allocation13 + $0x208] sm:$0xff] }
 0x8af   : > { %4448 = vmatprep.subr.bf16.mxu1 %v5084_v7  ;;  %v4500_v5 = vpack.c.bf16 %v3231_v4, %v3230_v3  ;;  %v3495_v4 = vld [vmem:[#allocation16 + $0x10] sm:$0xff] }
 0x8b2   : > { %4450 = vmatpush1.bf16.msra.mxu1 %v4449_v6  ;;  %v3233_v6 = vld [vmem:[#allocation13 + $0x218] sm:$0xff] }
 0x8b3   : > { %4451 = vmatprep.subr.bf16.mxu1 %v5084_v7  ;;  %v4503_v8 = vpack.c.bf16 %v3233_v6, %v3232_v45  ;;  %v2629_v6 = vld [vmem:[#allocation15] sm:$0x1] }
 0x8b6   : > { %4453 = vmatpush1.bf16.msra.mxu1 %v4452_v10  ;;  %v3235_v10 = vld [vmem:[#allocation13 + $0x228] sm:$0xff] }
 0x8b7   : > { %4454 = vmatprep.subr.bf16.mxu1 %v5084_v7  ;;  %v4506_v11 = vpack.c.bf16 %v3235_v10, %v3234_v9 }
 0x8ba   : > { %4456 = vmatpush1.bf16.msra.mxu1 %v4455_v13  ;;  %v3237_v13 = vld [vmem:[#allocation13 + $0x238] sm:$0xff] }
 0x8bb   : > { %4457 = vmatprep.subr.bf16.mxu1 %v5084_v7  ;;  %v4509_v14 = vpack.c.bf16 %v3237_v13, %v3236_v12 }
 0x8be   : > { %4459 = vmatpush1.bf16.msra.mxu1 %v4458_v15  ;;  %v3239_v15 = vld [vmem:[#allocation13 + $0x248] sm:$0xff] }
 0x8bf   : > { %4460 = vmatprep.subr.bf16.mxu1 %v5084_v7  ;;  %v4512_v41 = vpack.c.bf16 %v3239_v15, %v3238_v42 }
 0x8c2   : > { %4462 = vmatpush1.bf16.msra.mxu1 %v4461_v40  ;;  %v3241_v40 = vld [vmem:[#allocation13 + $0x258] sm:$0xff] }
 0x8c3   : > { %3816 = vmatprep.subr.msk.mxu1 %vm2635_vm6, %v5617_v16 }
 0x970   : > { %v2878_v20 = vpop.f32.mrb[10].mxu1 }
 0x971   : > { %v2880_v23 = vpop.f32.mrb[11].mxu1 }
 0x972   : > { %3815 = vmatprep.mubr.msk.f32.mxu1 %vm571_vm0, %v2880_v23  ;;  %v3242_v23 = vld [vmem:[#allocation13 + $0x260] sm:$0xff] }
 0x973   : > { %2972 = vmatmul.mubr.f32.vlgmr.msra.gmra.mrb[8].mxu1 %v2878_v20  ;;  %v4515_v20 = vpack.c.bf16 %v3241_v40, %v3240_v18  ;;  %v4518_v22 = vpack.c.bf16 %v3243_v19, %v3242_v23 }
 0x974   : > { %3817 = vmatpush1.msk.msra.mxu1 %vm2635_vm6, %v5619_v17  ;;  %3047 = vmatprep.mubr.f32.mxu1 %v5082_v55 }
 0x975   : > { %4463 = vmatprep.subr.bf16.mxu1 %v5084_v7 }
 0x977   : > { %3818 = vmatmul.mubr.msk.f32.vlgmr.msra.gmra.mrb[12].mxu1 %vm2631_vm7, %v2979_v24  ;;  %v3244_v24 = vld [vmem:[#allocation13 + $0x270] sm:$0xff] }
 0x978   : > { %4465 = vmatpush1.bf16.msra.mxu1 %v4464_v25  ;;  %v3245_v25 = vld [vmem:[#allocation13 + $0x278] sm:$0xff] }
 0x979   : > { %4466 = vmatprep.subr.bf16.mxu1 %v5084_v7  ;;  %v4521_v60 = vpack.c.bf16 %v3245_v25, %v3244_v24 }
 0x97c   : > { %4468 = vmatpush1.bf16.msra.mxu1 %v4467_v27 }
 0x97d   : > { %4469 = vmatprep.subr.bf16.mxu1 %v5084_v7 }
 0x980   : > { %4471 = vmatpush1.bf16.msra.mxu1 %v4470_v30  ;;  %v3321_v30 = vld [vmem:[#allocation12 + $0x4] sm:$0x1] }
 0x981   : > { %4472 = vmatprep.subr.bf16.mxu1 %v5084_v7 }
 0x984   : > { %4474 = vmatpush1.bf16.msra.mxu1 %v4473_v31  ;;  %v3400_v31 = vld [vmem:[#allocation13 + $0x298] sm:$0xff] }
 0x985   : > { %4475 = vmatprep.subr.bf16.mxu1 %v5084_v7 }
 0x988   : > { %4477 = vmatpush1.bf16.msra.mxu1 %v4476_v34  ;;  %v4530_v34 = vpack.c.bf16 %v3402_v33, %v3401_v32 }
 0x989   : > { %4478 = vmatprep.subr.bf16.mxu1 %v5084_v7 }
 0x98c   : > { %4480 = vmatpush1.bf16.msra.mxu1 %v4479_v37  ;;  %v3405_v37 = vld [vmem:[#allocation13 + $0x2c0] sm:$0xff] }
 0x98d   : > { %4481 = vmatprep.subr.bf16.mxu1 %v5084_v7  ;;  %v4536_v43 = vpack.c.bf16 %v3406_v38, %v3405_v37 }
 0x990   : > { %4483 = vmatpush1.bf16.msra.mxu1 %v4482_v44  ;;  %v3407_v44 = vld [vmem:[#allocation13 + $0x2d0] sm:$0xff] }
 0x991   : > { %4484 = vmatprep.subr.bf16.mxu1 %v5084_v7  ;;  %v4539_v47 = vpack.c.bf16 %v3408_v46, %v3407_v44 }
 0x994   : > { %4486 = vmatpush1.bf16.msra.mxu1 %v4485_v48  ;;  %v3409_v48 = vld [vmem:[#allocation13 + $0x2e0] sm:$0xff] }
 0x995   : > { %4487 = vmatprep.subr.bf16.mxu1 %v5084_v7  ;;  %v4542_v50 = vpack.c.bf16 %v3410_v49, %v3409_v48 }
 0x998   : > { %4489 = vmatpush1.bf16.msra.mxu1 %v4488_v51  ;;  %v3411_v51 = vld [vmem:[#allocation13 + $0x2f0] sm:$0xff] }
 0x999   : > { %4490 = vmatprep.subr.bf16.mxu1 %v5084_v7  ;;  %v4545_v53 = vpack.c.bf16 %v3412_v52, %v3411_v51 }
 0x99c   : > { %4492 = vmatpush1.bf16.msra.mxu1 %v4491_v54  ;;  %v3413_v54 = vld [vmem:[#allocation13 + $0x300] sm:$0xff] }
 0x99d   : > { %3820 = vmatprep.subr.msk.mxu1 %vm2635_vm6, %v5617_v16 }
 0xa4a   : > { %v3049_v56 = vpop.f32.mrb[12].mxu1 }
 0xa4b   : > { %v3051_v58 = vpop.f32.mrb[13].mxu1 }
 0xa4c   : > { %3819 = vmatprep.mubr.msk.f32.mxu1 %vm571_vm0, %v3051_v58 }
 0xa4d   : > { %3143 = vmatmul.mubr.f32.vlgmr.msra.gmra.mrb[8].mxu1 %v3049_v56  ;;  %v3414_v56 = vld [vmem:[#allocation13 + $0x308] sm:$0xff] }
 0xa4e   : > { %3821 = vmatpush1.msk.msra.mxu1 %vm2635_vm6, %v5619_v17  ;;  %3218 = vmatprep.mubr.f32.mxu1 %v5082_v55  ;;  %v4548_v58 = vpack.c.bf16 %v3414_v56, %v3413_v54 }
 0xa4f   : > { %4493 = vmatprep.subr.bf16.mxu1 %v5084_v7 }
 0xa51   : > { %3822 = vmatmul.mubr.msk.f32.vlgmr.msra.gmra.mrb[14].mxu1 %vm2631_vm7, %v3150_v62  ;;  %v4551_v62 = vpack.c.bf16 %v3416_v61, %v3415_v59 }
 0xa52   : > { %4495 = vmatpush1.bf16.msra.mxu1 %v4494_v63  ;;  %v3493_v63 = vld [vmem:[#allocation16] sm:$0xff] }
 0xa53   : > { %4496 = vmatprep.subr.bf16.mxu1 %v5084_v7  ;;  %v4554_v1 = vpack.c.bf16 %v3494_v0, %v3493_v63 }
 0xa55   : > { %4555 = vmatpush3.bf16.msra.mxu0 %v4554_v1 }
 0xa56   : > { %4498 = vmatpush1.bf16.msra.mxu1 %v4497_v2  ;;  %4556 = vmatprep.subr.bf16.mxu0 %v5084_v7 }
 0xa57   : > { %4499 = vmatprep.subr.bf16.mxu1 %v5084_v7 }
 0xa5a   : > { %4501 = vmatpush1.bf16.msra.mxu1 %v4500_v5  ;;  %v3496_v5 = vld [vmem:[#allocation16 + $0x18] sm:$0xff] }
 0xa5b   : > { %4502 = vmatprep.subr.bf16.mxu1 %v5084_v7  ;;  %v4557_v45 = vpack.c.bf16 %v3496_v5, %v3495_v4 }
 0xa5d   : > { %4558 = vmatpush3.bf16.msra.mxu0 %v4557_v45 }
 0xa5e   : > { %4504 = vmatpush1.bf16.msra.mxu1 %v4503_v8 }
 0xa5f   : > { %4505 = vmatprep.subr.bf16.mxu1 %v5084_v7 }
 0xa62   : > { %4507 = vmatpush1.bf16.msra.mxu1 %v4506_v11 }
 0xa63   : > { %4508 = vmatprep.subr.bf16.mxu1 %v5084_v7 }
 0xa66   : > { %4510 = vmatpush1.bf16.msra.mxu1 %v4509_v14 }
 0xa67   : > { %4511 = vmatprep.subr.bf16.mxu1 %v5084_v7 }
 0xa6a   : > { %4513 = vmatpush1.bf16.msra.mxu1 %v4512_v41 }
 0xa6b   : > { %4514 = vmatprep.subr.bf16.mxu1 %v5084_v7 }
 0xa6e   : > { %4516 = vmatpush1.bf16.msra.mxu1 %v4515_v20 }
 0xa6f   : > { %4517 = vmatprep.subr.bf16.mxu1 %v5084_v7 }
 0xa72   : > { %4519 = vmatpush1.bf16.msra.mxu1 %v4518_v22 }
 0xa73   : > { %4520 = vmatprep.subr.bf16.mxu1 %v5084_v7 }
 0xa76   : > { %4522 = vmatpush1.bf16.msra.mxu1 %v4521_v60 }
 0xa77   : > { %3824 = vmatprep.subr.msk.mxu1 %vm2635_vm6, %v5617_v16  ;;  %v4527_v16 = vpack.c.bf16 %v3400_v31, %v3399_v39 }
 0xb24   : > { %v3220_v26 = vpop.f32.mrb[14].mxu1 }
 0xb25   : > { %v3222_v27 = vpop.f32.mrb[15].mxu1 }
 0xb26   : > { %3823 = vmatprep.mubr.msk.f32.mxu1 %vm571_vm0, %v3222_v27 }
 0xb27   : > { %3314 = vmatmul.mubr.f32.vlgmr.msra.gmra.mrb[8].mxu1 %v3220_v26 }
 0xb28   : > { %3825 = vmatpush1.msk.msra.mxu1 %vm2635_vm6, %v5619_v17  ;;  %3389 = vmatprep.mubr.f32.mxu1 %v5082_v55  ;;  %v3403_v17 = vld [vmem:[#allocation13 + $0x2b0] sm:$0xff] }
 0xb29   : > { %4523 = vmatprep.subr.bf16.mxu1 %v5084_v7  ;;  %v4533_v36 = vpack.c.bf16 %v3404_v35, %v3403_v17 }
 0xb2b   : > { %3826 = vmatmul.mubr.msk.f32.vlgmr.msra.gmra.mrb[16].mxu1 %vm2631_vm7, %v3321_v30 }
 0xb2c   : > { %4525 = vmatpush1.bf16.msra.mxu1 %v4524_v28 }
 0xb2d   : > { %4526 = vmatprep.subr.bf16.mxu1 %v5084_v7 }
 0xb30   : > { %4528 = vmatpush1.bf16.msra.mxu1 %v4527_v16 }
 0xb31   : > { %4529 = vmatprep.subr.bf16.mxu1 %v5084_v7 }
 0xb34   : > { %4531 = vmatpush1.bf16.msra.mxu1 %v4530_v34 }
 0xb35   : > { %4532 = vmatprep.subr.bf16.mxu1 %v5084_v7 }
 0xb38   : > { %4534 = vmatpush1.bf16.msra.mxu1 %v4533_v36 }
 0xb39   : > { %4535 = vmatprep.subr.bf16.mxu1 %v5084_v7 }
 0xb3c   : > { %4537 = vmatpush1.bf16.msra.mxu1 %v4536_v43 }
 0xb3d   : > { %4538 = vmatprep.subr.bf16.mxu1 %v5084_v7 }
 0xb40   : > { %4540 = vmatpush1.bf16.msra.mxu1 %v4539_v47 }
 0xb41   : > { %4541 = vmatprep.subr.bf16.mxu1 %v5084_v7 }
 0xb44   : > { %4543 = vmatpush1.bf16.msra.mxu1 %v4542_v50 }
 0xb45   : > { %4544 = vmatprep.subr.bf16.mxu1 %v5084_v7 }
 0xb48   : > { %4546 = vmatpush1.bf16.msra.mxu1 %v4545_v53 }
 0xb49   : > { %4547 = vmatprep.subr.bf16.mxu1 %v5084_v7 }
 0xb4c   : > { %4549 = vmatpush1.bf16.msra.mxu1 %v4548_v58 }
 0xb4d   : > { %4550 = vmatprep.subr.bf16.mxu1 %v5084_v7  ;;  %v3492_v7 = vld [vmem:[#allocation18] sm:$0x1] }
 0xb50   : > { %4552 = vmatpush1.bf16.msra.mxu1 %v4551_v62 }
 0xbfe   : > { %v3391_v2 = vpop.f32.mrb[16].mxu1 }
 0xbff   : > { %v3393_v3 = vpop.f32.mrb[17].mxu1 }
 0xc00   : > { %3827 = vmatprep.mubr.msk.f32.mxu1 %vm571_vm0, %v3393_v3 }
 0xc01   : > { %3485 = vmatmul.mubr.f32.vlgmr.msra.gmra.mrb[8].mxu1 %v3391_v2 }
 0xcd4   : > { %v3486_v8 = vpop.f32.mrb[8].mxu1 }
 0xcd5   : > { %v4565_v9 = vadd.f32 %v3486_v8, %v2629_v6  ;;  %v3488_v10 = vpop.f32.mrb[9].mxu1 }
 0xcd7   : > { %v3491_v11 = vmax.f32 %v4565_v9, 0.0 }
 0xcd9   : > { %3931 = vmatmul.mubr.msk.f32.vlgmr.msra.gmra.mrb[20].mxu0 %vm571_vm0, %v3491_v11 }
 0xdac   : > { %v3566_v12 = vpop.f32.mrb[20].mxu0 }
 0xdad   : > { %v3570_v13 = vadd.f32 %v3566_v12, %v3492_v7  ;;  %v3932_v14 = vpop.f32.mrb[21].mxu0 }
 0xdaf   : > { %v3575_v42 = vrot.slane %v3570_v13, %v5552_v21 }
 0xdb1   : > { %3577 = vst [vmem:[%s563_s1] sm:$0xff] %v3575_v42 }
 0xdb2 PF: > { %s5758_s28 = sld [smem:[#allocation25_spill]] }
 0xdb8   : > { %s28_s21 = sadd.s32 1, %s5758_s28  }
 0xdb9   : > { %p25_p13 = scmp.ge.s32.totalorder %s28_s21, 4  }
 0xdbb   :  { %27 = sbr.rel (!%p25_p13) target bundleno = 8 (0x8), region = 167 }
 0xdc2   :  { %3597 = vsyncpa [#allocation3], 1 }
 0xdc3   :  { %3599 = vsyncpa [#allocation3 + $0x1], 1 }
 0xdc4   :  { %3600 = vsyncpa [#allocation5], 1 }
 0xdc5   :  { %3601 = vsyncpa [#allocation8], 1 }
 0xdc6   :  { %3602 = vsyncpa [#allocation11], 1 }
 0xdc7   :  { %3603 = vsyncpa [#allocation14], 1 }
 0xdc8   :  { %3604 = vsyncpa [#allocation17], 1 }

</bundles_post_ra>
